<compile_context>
chip_gen: v7x
topology: tpu7x:2x2x1
jax: 0.10.0
libtpu: 0.0.40
codegen_flags: <defaults>
</compile_context>

<pallas_src>
import math

import jax
import jax.numpy as jnp
import numpy as np
from jax.experimental import pallas as pl
from jax.experimental.pallas import tpu as pltpu

N_QUBITS = 4


# ----------------------------------------------------------------------------
# Pallas kernel: chunked recurrent hot path. Per grid step it processes TC
# timesteps with h/c carried through a fori_loop; h/c persist across chunks in
# VMEM scratch. All four gates share one cos, one fused (16,4H) MXU matmul and
# a batched sigmoid.
# ----------------------------------------------------------------------------
def qlstm_kernel(xp_ref, w16_ref, perm_ref, w_big_ref, b_big_ref,
                 hseq_ref, c_out_ref,
                 h_sc, c_sc):
    chunk = pl.program_id(1)

    @pl.when(chunk == 0)
    def _():
        h_sc[...] = jnp.zeros_like(h_sc)
        c_sc[...] = jnp.zeros_like(c_sc)

    w16 = w16_ref[...]            # (H, 16)   recurrent weight, 4x replicated
    a0 = perm_ref[0]              # (16, 16)  lane-permutation picks for <Z>
    a1 = perm_ref[1]
    a2 = perm_ref[2]
    w_big = w_big_ref[...]        # (16, 4H)  block-diagonal clayer_out
    b_big = b_big_ref[...]        # (1, 4H)

    H = h_sc.shape[1]
    TC = hseq_ref.shape[0]        # timesteps per chunk (static)

    # Hoisted lane-position masks (constants; built once per grid step).
    pos = jax.lax.broadcasted_iota(jnp.int32, (1, 4 * N_QUBITS), 1)
    lane = jnp.bitwise_and(pos, 3)                 # position within gate block
    c2 = (lane == 1).astype(jnp.float32)           # +1 where g2 picks nothing
    m3 = lane == 3                                  # lanes that also need z3

    def step(tl, carry):
        h, c = carry
        # Recurrent projection; x-projection, input bias, gate replication and
        # theta are all pre-folded into xp_ref / w16 in the wrapper.
        ang = (jnp.dot(h, w16, preferred_element_type=jnp.float32)
               + xp_ref[tl])                        # (B, 16)
        z = jnp.cos(ang)                            # one EUP push for all gates

        # Closed-form <Z> products per gate block via constant permutation
        # matmuls (full-width vreg math, no width-1 lane slices / concats):
        #   lane p of each block gets [z1,z0,z0,z0] * [z2,z1,z1,z1]
        #                           * [z3, 1,z2,z2] * [ 1, 1, 1,z3]
        g0 = jnp.dot(z, a0, preferred_element_type=jnp.float32)
        g1 = jnp.dot(z, a1, preferred_element_type=jnp.float32)
        g2 = jnp.dot(z, a2, preferred_element_type=jnp.float32) + c2
        g3 = jnp.where(m3, z, 1.0)
        q = (g0 * g1) * (g2 * g3)                   # (B, 16)

        # One lane-dense MXU matmul computes all four gate pre-activations.
        pre = (jnp.dot(q, w_big, preferred_element_type=jnp.float32)
               + b_big)                             # (B, 4H), 4H = 128

        # Gate order [f, i, o, g]: the three sigmoid gates are batched.
        sig = jax.nn.sigmoid(pre[:, :3 * H])
        f_t = sig[:, 0:H]
        i_t = sig[:, H:2 * H]
        o_t = sig[:, 2 * H:3 * H]
        g_t = jnp.tanh(pre[:, 3 * H:])

        c_new = f_t * c + i_t * g_t
        h_new = o_t * jnp.tanh(c_new)

        hseq_ref[tl] = h_new
        return h_new, c_new

    h_fin, c_fin = jax.lax.fori_loop(0, TC, step, (h_sc[...], c_sc[...]),
                                     unroll=True)

    # Carry h/c to the next chunk.
    h_sc[...] = h_fin
    c_sc[...] = c_fin

    # Final cell state only written on the last time chunk.
    @pl.when(chunk == pl.num_programs(1) - 1)
    def _():
        c_out_ref[...] = c_fin


def _pick_chunk(T, max_chunk=32):
    for tc in range(min(T, max_chunk), 0, -1):
        if T % tc == 0:
            return tc
    return 1


def qlstm_forward(x, w_in, b_in, theta, w_out, b_out,
                  max_chunk=32, batch_blocks=None):
    """x: (B, T, F) float32 (batch_first). Weights in PyTorch layout:
       w_in (4, H+F), b_in (4,), theta (4 gates, 4 wires), w_out (H, 4),
       b_out (H,). Returns (hidden_seq (B,T,H), (h_T, c_T))."""
    B, T, F = x.shape
    H = w_out.shape[0]
    NQ = N_QUBITS

    # Pad batch to a multiple of 8 sublanes; slice the outputs back afterwards.
    B_pad = max(8, ((B + 7) // 8) * 8)
    xp = x if B_pad == B else jnp.pad(x, ((0, B_pad - B), (0, 0), (0, 0)))

    # concat order in the module is (h_t, x_t).
    w_in_h = jnp.transpose(w_in[:, :H]).astype(jnp.float32)   # (H, 4)
    w_in_x = jnp.transpose(w_in[:, H:]).astype(jnp.float32)   # (F, 4)

    # Hoisted non-recurrent input projection (+ bias), time-major.
    x_proj = (jnp.einsum("btf,fq->tbq", xp.astype(jnp.float32), w_in_x)
              + b_in[None, None, :].astype(jnp.float32))       # (T, B_pad, 4)

    # Kernel gate order [forget, input, output, update] so the three sigmoid
    # gates are contiguous and the tanh gate is last.
    gate_order = jnp.array([0, 1, 3, 2], dtype=jnp.int32)
    theta_flat = theta[gate_order].reshape(1, 1, 4 * NQ).astype(jnp.float32)

    # Pre-fold the 4x gate replication + theta into the recurrent weight and
    # the precomputed input term (removes a lane concat + add per timestep).
    w_in_h16 = jnp.tile(w_in_h, (1, 4))                        # (H, 16)
    xp16 = jnp.tile(x_proj, (1, 1, 4)) + theta_flat            # (T, B_pad, 16)

    # Block-diagonal clayer_out weight (one (4,H) block per gate) + tiled bias.
    eye4 = jnp.eye(4, dtype=jnp.float32)
    w_out_t = jnp.transpose(w_out).astype(jnp.float32)         # (4, H)
    w_big = jnp.kron(eye4, w_out_t)                            # (16, 4H)
    b_big = jnp.tile(b_out[None, :].astype(jnp.float32), (1, 4))  # (1, 4H)

    # Constant lane-permutation matrices for the closed-form <Z> products
    # (rows = source wire j, cols = destination lane p within each gate block).
    a0_blk = jnp.array([[0, 1, 1, 1],
                        [1, 0, 0, 0],
                        [0, 0, 0, 0],
                        [0, 0, 0, 0]], jnp.float32)
    a1_blk = jnp.array([[0, 0, 0, 0],
                        [0, 1, 1, 1],
                        [1, 0, 0, 0],
                        [0, 0, 0, 0]], jnp.float32)
    a2_blk = jnp.array([[0, 0, 0, 0],
                        [0, 0, 0, 0],
                        [0, 0, 1, 1],
                        [1, 0, 0, 0]], jnp.float32)
    perm = jnp.stack([jnp.kron(eye4, a0_blk),
                      jnp.kron(eye4, a1_blk),
                      jnp.kron(eye4, a2_blk)])                  # (3, 16, 16)

    TC = _pick_chunk(T, max_chunk)
    n_chunks = T // TC

    if batch_blocks is None:
        # v7x (2 TensorCores): split the batch once each half still has >= 8
        # sublanes. On single-TC chips (v5e/v6e) pass batch_blocks=1 for large
        # batches to avoid the extra grid steps.
        batch_blocks = 2 if (B_pad >= 16 and B_pad % 16 == 0) else 1
    BB = B_pad // batch_blocks

    const2 = lambda b, i: (0, 0)

    # TODO(synk): optional lane-dense hidden_seq layout ((T, B_pad*H) out block)
    # behind a flag; at H=32/B=8 the in-kernel relayout may cost more than the
    # masked vst -- measure before enabling.
    hseq, c_t = pl.pallas_call(
        qlstm_kernel,
        out_shape=(
            jax.ShapeDtypeStruct((T, B_pad, H), jnp.float32),
            jax.ShapeDtypeStruct((B_pad, H), jnp.float32),
        ),
        grid_spec=pltpu.PrefetchScalarGridSpec(
            num_scalar_prefetch=0,
            grid=(batch_blocks, n_chunks),
            in_specs=[
                pl.BlockSpec((TC, BB, 4 * NQ), lambda b, i: (i, b, 0)),  # xp16
                pl.BlockSpec((H, 4 * NQ), const2),                       # w16
                pl.BlockSpec((3, 4 * NQ, 4 * NQ), lambda b, i: (0, 0, 0)),
                pl.BlockSpec((4 * NQ, 4 * H), const2),                   # w_big
                pl.BlockSpec((1, 4 * H), const2),                        # b_big
            ],
            out_specs=[
                pl.BlockSpec((TC, BB, H), lambda b, i: (i, b, 0)),   # hidden_seq
                pl.BlockSpec((BB, H), lambda b, i: (b, 0)),          # c_T
            ],
            scratch_shapes=[pltpu.VMEM((BB, H), jnp.float32),
                            pltpu.VMEM((BB, H), jnp.float32)],
        ),
        compiler_params=pltpu.CompilerParams(
            dimension_semantics=("parallel", "arbitrary")),
    )(xp16, w_in_h16, perm, w_big, b_big)

    hseq = jnp.transpose(hseq, (1, 0, 2))[:B]   # (B, T, H)
    h_t = hseq[:, -1, :]
    c_t = c_t[:B]
    return hseq, (h_t, c_t)


# ----------------------------------------------------------------------------
# Pure-JAX reference (faithful 4-qubit statevector simulation of the VQC).
# ----------------------------------------------------------------------------
def _vqc_statevector(y, theta_g):
    """y: (B,4) encoding angles, theta_g: (4,) trainable RX angles -> <Z> (B,4)."""
    ang = y + theta_g[None, :]
    c = jnp.cos(ang / 2.0)
    s = jnp.sin(ang / 2.0)
    # RX(a)|0> = cos(a/2)|0> - i sin(a/2)|1>
    states = [jnp.stack([c[:, j], -1j * s[:, j]], axis=1).astype(jnp.complex64)
              for j in range(4)]
    psi = jnp.einsum("bi,bj,bk,bl->bijkl",
                     states[0], states[1], states[2], states[3])

    def cnot(psi, ctrl, tgt):
        ac, at = ctrl + 1, tgt + 1
        psi0 = jnp.take(psi, 0, axis=ac)
        psi1 = jnp.take(psi, 1, axis=ac)
        flip_ax = at - 1 if at > ac else at
        psi1 = jnp.flip(psi1, axis=flip_ax)
        return jnp.stack([psi0, psi1], axis=ac)

    psi = cnot(psi, 0, 1)
    psi = cnot(psi, 1, 2)
    psi = cnot(psi, 2, 3)
    psi = cnot(psi, 3, 0)

    probs = jnp.abs(psi) ** 2
    zvals = jnp.array([1.0, -1.0], dtype=jnp.float32)
    exps = []
    for k in range(4):
        axes = tuple(a for a in range(1, 5) if a != k + 1)
        pk = probs.sum(axis=axes)          # (B, 2)
        exps.append(pk @ zvals)
    return jnp.stack(exps, axis=1)         # (B, 4)


def qlstm_reference(x, w_in, b_in, theta, w_out, b_out):
    B, T, F = x.shape
    H = w_out.shape[0]
    h = jnp.zeros((B, H), jnp.float32)
    c = jnp.zeros((B, H), jnp.float32)
    outs = []
    for t in range(T):
        x_t = x[:, t, :]
        v = jnp.concatenate([h, x_t], axis=1)
        y = v @ w_in.T + b_in
        f_t = jax.nn.sigmoid(_vqc_statevector(y, theta[0]) @ w_out.T + b_out)
        i_t = jax.nn.sigmoid(_vqc_statevector(y, theta[1]) @ w_out.T + b_out)
        g_t = jnp.tanh(_vqc_statevector(y, theta[2]) @ w_out.T + b_out)
        o_t = jax.nn.sigmoid(_vqc_statevector(y, theta[3]) @ w_out.T + b_out)
        c = f_t * c + i_t * g_t
        h = o_t * jnp.tanh(c)
        outs.append(h)
    return jnp.stack(outs, axis=1), (h, c)


if __name__ == "__main__":
    # Small deterministic problem: batch=2, seq=8, input_size=4, hidden=32.
    B, T, F, H = 2, 8, 4, 32
    concat = F + H

    key = jax.random.PRNGKey(0)
    k1, k2, k3, k4, k5, k6 = jax.random.split(key, 6)

    w_in = jax.random.uniform(k1, (N_QUBITS, concat), jnp.float32, -0.5, 0.5)
    b_in = jax.random.uniform(k2, (N_QUBITS,), jnp.float32, -0.5, 0.5)
    theta = jax.random.uniform(k3, (4, N_QUBITS), jnp.float32, 0.0, 2.0 * math.pi)
    w_out = jax.random.uniform(k4, (H, N_QUBITS), jnp.float32, -0.5, 0.5)
    b_out = jax.random.uniform(k5, (H,), jnp.float32, -0.5, 0.5)
    x = jax.random.normal(k6, (B, T, F), jnp.float32)

    hseq, (h_t, c_t) = qlstm_forward(x, w_in, b_in, theta, w_out, b_out)
    jax.block_until_ready((hseq, h_t, c_t))

    hseq_ref, (h_ref, c_ref) = qlstm_reference(x, w_in, b_in, theta, w_out, b_out)
    np.testing.assert_allclose(np.asarray(hseq), np.asarray(hseq_ref),
                               rtol=1e-4, atol=1e-4)
    np.testing.assert_allclose(np.asarray(h_t), np.asarray(h_ref),
                               rtol=1e-4, atol=1e-4)
    np.testing.assert_allclose(np.asarray(c_t), np.asarray(c_ref),
                               rtol=1e-4, atol=1e-4)

    print("KERNEL_OK")
</pallas_src>

<mosaic_0001>
module attributes {stable_mosaic.version = 11 : i64} {
  func.func @qlstm_kernel(%arg0: i32, %arg1: i32, %arg2: memref<8x8x16xf32, #tpu.memory_space<vmem>>, %arg3: memref<32x16xf32, #tpu.memory_space<vmem>>, %arg4: memref<3x16x16xf32, #tpu.memory_space<vmem>>, %arg5: memref<16x128xf32, #tpu.memory_space<vmem>>, %arg6: memref<1x128xf32, #tpu.memory_space<vmem>>, %arg7: memref<8x8x32xf32, #tpu.memory_space<vmem>>, %arg8: memref<8x32xf32, #tpu.memory_space<vmem>>, %arg9: memref<8x32xf32, #tpu.memory_space<vmem>>, %arg10: memref<8x32xf32, #tpu.memory_space<vmem>>) attributes {dimension_semantics = [#tpu.dimension_semantics<parallel>, #tpu.dimension_semantics<arbitrary>], iteration_bounds = array<i64: 1, 1>, scalar_prefetch = 0 : i64, scratch_operands = 2 : i64, tpu.core_type = #tpu.core_type<tc>, window_params = [{transform_indices = @transform_0, window_bounds = array<i64: 8, 8, 16>}, {pipeline_mode = #tpu.pipeline_mode<synchronous>, transform_indices = @transform_1, window_bounds = array<i64: 32, 16>}, {pipeline_mode = #tpu.pipeline_mode<synchronous>, transform_indices = @transform_2, window_bounds = array<i64: 3, 16, 16>}, {pipeline_mode = #tpu.pipeline_mode<synchronous>, transform_indices = @transform_3, window_bounds = array<i64: 16, 128>}, {pipeline_mode = #tpu.pipeline_mode<synchronous>, transform_indices = @transform_4, window_bounds = array<i64: 1, 128>}, {transform_indices = @transform_5, window_bounds = array<i64: 8, 8, 32>}, {transform_indices = @transform_6, window_bounds = array<i64: 8, 32>}]} {
    %c0_i32 = arith.constant 0 : i32
    %0 = arith.cmpi eq, %arg1, %c0_i32 : i32
    %1 = arith.extui %0 : i1 to i32
    %c0_i32_0 = arith.constant 0 : i32
    %2 = arith.cmpi ne, %1, %c0_i32_0 : i32
    scf.if %2 {
      %cst_114 = arith.constant 0.000000e+00 : f32
      %356 = vector.broadcast %cst_114 : f32 to vector<8x32xf32>
      %c0_115 = arith.constant 0 : index
      %c0_116 = arith.constant 0 : index
      %357 = vector.load %arg9[%c0_115, %c0_116] : memref<8x32xf32, #tpu.memory_space<vmem>>, vector<8x32xf32>
      tpu.vector_store %arg9[%c0_115, %c0_116], %356 {strides = array<i32>} : memref<8x32xf32, #tpu.memory_space<vmem>>, vector<8x32xf32>,
      %cst_117 = arith.constant 0.000000e+00 : f32
      %358 = vector.broadcast %cst_117 : f32 to vector<8x32xf32>
      %c0_118 = arith.constant 0 : index
      %c0_119 = arith.constant 0 : index
      %359 = vector.load %arg10[%c0_118, %c0_119] : memref<8x32xf32, #tpu.memory_space<vmem>>, vector<8x32xf32>
      tpu.vector_store %arg10[%c0_118, %c0_119], %358 {strides = array<i32>} : memref<8x32xf32, #tpu.memory_space<vmem>>, vector<8x32xf32>,
    } else {
    }
    %c0 = arith.constant 0 : index
    %c0_1 = arith.constant 0 : index
    %3 = vector.load %arg3[%c0, %c0_1] : memref<32x16xf32, #tpu.memory_space<vmem>>, vector<32x16xf32>
    %c0_2 = arith.constant 0 : index
    %c0_3 = arith.constant 0 : index
    %c0_4 = arith.constant 0 : index
    %4 = vector.load %arg4[%c0_2, %c0_3, %c0_4] : memref<3x16x16xf32, #tpu.memory_space<vmem>>, vector<1x16x16xf32>
    %5 = vector.shape_cast %4 : vector<1x16x16xf32> to vector<16x16xf32>
    %c1 = arith.constant 1 : index
    %c0_5 = arith.constant 0 : index
    %c0_6 = arith.constant 0 : index
    %6 = vector.load %arg4[%c1, %c0_5, %c0_6] : memref<3x16x16xf32, #tpu.memory_space<vmem>>, vector<1x16x16xf32>
    %7 = vector.shape_cast %6 : vector<1x16x16xf32> to vector<16x16xf32>
    %c2 = arith.constant 2 : index
    %c0_7 = arith.constant 0 : index
    %c0_8 = arith.constant 0 : index
    %8 = vector.load %arg4[%c2, %c0_7, %c0_8] : memref<3x16x16xf32, #tpu.memory_space<vmem>>, vector<1x16x16xf32>
    %9 = vector.shape_cast %8 : vector<1x16x16xf32> to vector<16x16xf32>
    %c0_9 = arith.constant 0 : index
    %c0_10 = arith.constant 0 : index
    %10 = vector.load %arg5[%c0_9, %c0_10] : memref<16x128xf32, #tpu.memory_space<vmem>>, vector<16x128xf32>
    %c0_11 = arith.constant 0 : index
    %c0_12 = arith.constant 0 : index
    %11 = vector.load %arg6[%c0_11, %c0_12] : memref<1x128xf32, #tpu.memory_space<vmem>>, vector<1x128xf32>
    %12 = tpu.iota {dimensions = array<i32: 1>} : vector<1x16xi32>
    %c3_i32 = arith.constant 3 : i32
    %13 = vector.broadcast %c3_i32 : i32 to vector<1x16xi32>
    %14 = arith.andi %12, %13 : vector<1x16xi32>
    %c1_i32 = arith.constant 1 : i32
    %15 = vector.broadcast %c1_i32 : i32 to vector<1x16xi32>
    %16 = arith.cmpi eq, %14, %15 : vector<1x16xi32>
    %17 = arith.extui %16 : vector<1x16xi1> to vector<1x16xi32>
    %18 = arith.sitofp %17 : vector<1x16xi32> to vector<1x16xf32>
    %c3_i32_13 = arith.constant 3 : i32
    %19 = vector.broadcast %c3_i32_13 : i32 to vector<1x16xi32>
    %20 = arith.cmpi eq, %14, %19 : vector<1x16xi32>
    %c0_14 = arith.constant 0 : index
    %c0_15 = arith.constant 0 : index
    %21 = vector.load %arg9[%c0_14, %c0_15] : memref<8x32xf32, #tpu.memory_space<vmem>>, vector<8x32xf32>
    %c0_16 = arith.constant 0 : index
    %c0_17 = arith.constant 0 : index
    %22 = vector.load %arg10[%c0_16, %c0_17] : memref<8x32xf32, #tpu.memory_space<vmem>>, vector<8x32xf32>
    %c0_i32_18 = arith.constant 0 : i32
    %cst = arith.constant dense<0.000000e+00> : vector<8x16xf32>
    %23 = tpu.matmul %21, %3, %cst {dimension_numbers = #tpu.dot_dimension_numbers<[1], [0], [0], [1], [0, 0, 1, 1], [], []>} : vector<8x32xf32>, vector<32x16xf32>, vector<8x16xf32> -> vector<8x16xf32>
    %24 = arith.index_cast %c0_i32_18 : i32 to index
    %c0_19 = arith.constant 0 : index
    %c0_20 = arith.constant 0 : index
    %25 = vector.load %arg2[%24, %c0_19, %c0_20] : memref<8x8x16xf32, #tpu.memory_space<vmem>>, vector<1x8x16xf32>
    %26 = vector.shape_cast %25 : vector<1x8x16xf32> to vector<8x16xf32>
    %27 = arith.addf %23, %26 : vector<8x16xf32>
    %28 = math.cos %27 : vector<8x16xf32>
    %cst_21 = arith.constant dense<0.000000e+00> : vector<8x16xf32>
    %29 = tpu.matmul %28, %5, %cst_21 {dimension_numbers = #tpu.dot_dimension_numbers<[1], [0], [0], [1], [0, 0, 1, 1], [], []>} : vector<8x16xf32>, vector<16x16xf32>, vector<8x16xf32> -> vector<8x16xf32>
    %cst_22 = arith.constant dense<0.000000e+00> : vector<8x16xf32>
    %30 = tpu.matmul %28, %7, %cst_22 {dimension_numbers = #tpu.dot_dimension_numbers<[1], [0], [0], [1], [0, 0, 1, 1], [], []>} : vector<8x16xf32>, vector<16x16xf32>, vector<8x16xf32> -> vector<8x16xf32>
    %cst_23 = arith.constant dense<0.000000e+00> : vector<8x16xf32>
    %31 = tpu.matmul %28, %9, %cst_23 {dimension_numbers = #tpu.dot_dimension_numbers<[1], [0], [0], [1], [0, 0, 1, 1], [], []>} : vector<8x16xf32>, vector<16x16xf32>, vector<8x16xf32> -> vector<8x16xf32>
    %32 = vector.broadcast %18 : vector<1x16xf32> to vector<8x16xf32>
    %33 = arith.addf %31, %32 : vector<8x16xf32>
    %cst_24 = arith.constant 1.000000e+00 : f32
    %34 = vector.shape_cast %20 : vector<1x16xi1> to vector<1x16xi1>
    %35 = vector.broadcast %34 : vector<1x16xi1> to vector<8x16xi1>
    %36 = vector.broadcast %cst_24 : f32 to vector<8x16xf32>
    %37 = arith.select %35, %28, %36 : vector<8x16xi1>, vector<8x16xf32>
    %38 = arith.mulf %29, %30 : vector<8x16xf32>
    %39 = arith.mulf %33, %37 : vector<8x16xf32>
    %40 = arith.mulf %38, %39 : vector<8x16xf32>
    %cst_25 = arith.constant dense<0.000000e+00> : vector<8x128xf32>
    %41 = tpu.matmul %40, %10, %cst_25 {dimension_numbers = #tpu.dot_dimension_numbers<[1], [0], [0], [1], [0, 0, 1, 1], [], []>} : vector<8x16xf32>, vector<16x128xf32>, vector<8x128xf32> -> vector<8x128xf32>
    %42 = vector.broadcast %11 : vector<1x128xf32> to vector<8x128xf32>
    %43 = arith.addf %41, %42 : vector<8x128xf32>
    %44 = vector.extract_strided_slice %43 {offsets = [0, 0], sizes = [8, 96], strides = [1, 1]} : vector<8x128xf32> to vector<8x96xf32>
    %45 = arith.negf %44 : vector<8x96xf32>
    %46 = math.exp %45 : vector<8x96xf32>
    %cst_26 = arith.constant 1.000000e+00 : f32
    %47 = vector.broadcast %cst_26 : f32 to vector<8x96xf32>
    %48 = arith.addf %47, %46 : vector<8x96xf32>
    %49 = arith.divf %47, %48 : vector<8x96xf32>
    %50 = vector.extract_strided_slice %49 {offsets = [0, 0], sizes = [8, 32], strides = [1, 1]} : vector<8x96xf32> to vector<8x32xf32>
    %51 = vector.extract_strided_slice %49 {offsets = [0, 32], sizes = [8, 32], strides = [1, 1]} : vector<8x96xf32> to vector<8x32xf32>
    %52 = vector.extract_strided_slice %49 {offsets = [0, 64], sizes = [8, 32], strides = [1, 1]} : vector<8x96xf32> to vector<8x32xf32>
    %53 = vector.extract_strided_slice %43 {offsets = [0, 96], sizes = [8, 32], strides = [1, 1]} : vector<8x128xf32> to vector<8x32xf32>
    %54 = math.tanh %53 : vector<8x32xf32>
    %55 = arith.mulf %50, %22 : vector<8x32xf32>
    %56 = arith.mulf %51, %54 : vector<8x32xf32>
    %57 = arith.addf %55, %56 : vector<8x32xf32>
    %58 = math.tanh %57 : vector<8x32xf32>
    %59 = arith.mulf %52, %58 : vector<8x32xf32>
    %60 = arith.index_cast %c0_i32_18 : i32 to index
    %c0_27 = arith.constant 0 : index
    %c0_28 = arith.constant 0 : index
    %61 = vector.load %arg7[%60, %c0_27, %c0_28] : memref<8x8x32xf32, #tpu.memory_space<vmem>>, vector<1x8x32xf32>
    %62 = vector.shape_cast %61 : vector<1x8x32xf32> to vector<8x32xf32>
    %63 = vector.shape_cast %59 : vector<8x32xf32> to vector<1x8x32xf32>
    tpu.vector_store %arg7[%60, %c0_27, %c0_28], %63 {strides = array<i32>} : memref<8x8x32xf32, #tpu.memory_space<vmem>>, vector<1x8x32xf32>,
    %c1_i32_29 = arith.constant 1 : i32
    %cst_30 = arith.constant dense<0.000000e+00> : vector<8x16xf32>
    %64 = tpu.matmul %59, %3, %cst_30 {dimension_numbers = #tpu.dot_dimension_numbers<[1], [0], [0], [1], [0, 0, 1, 1], [], []>} : vector<8x32xf32>, vector<32x16xf32>, vector<8x16xf32> -> vector<8x16xf32>
    %65 = arith.index_cast %c1_i32_29 : i32 to index
    %c0_31 = arith.constant 0 : index
    %c0_32 = arith.constant 0 : index
    %66 = vector.load %arg2[%65, %c0_31, %c0_32] : memref<8x8x16xf32, #tpu.memory_space<vmem>>, vector<1x8x16xf32>
    %67 = vector.shape_cast %66 : vector<1x8x16xf32> to vector<8x16xf32>
    %68 = arith.addf %64, %67 : vector<8x16xf32>
    %69 = math.cos %68 : vector<8x16xf32>
    %cst_33 = arith.constant dense<0.000000e+00> : vector<8x16xf32>
    %70 = tpu.matmul %69, %5, %cst_33 {dimension_numbers = #tpu.dot_dimension_numbers<[1], [0], [0], [1], [0, 0, 1, 1], [], []>} : vector<8x16xf32>, vector<16x16xf32>, vector<8x16xf32> -> vector<8x16xf32>
    %cst_34 = arith.constant dense<0.000000e+00> : vector<8x16xf32>
    %71 = tpu.matmul %69, %7, %cst_34 {dimension_numbers = #tpu.dot_dimension_numbers<[1], [0], [0], [1], [0, 0, 1, 1], [], []>} : vector<8x16xf32>, vector<16x16xf32>, vector<8x16xf32> -> vector<8x16xf32>
    %cst_35 = arith.constant dense<0.000000e+00> : vector<8x16xf32>
    %72 = tpu.matmul %69, %9, %cst_35 {dimension_numbers = #tpu.dot_dimension_numbers<[1], [0], [0], [1], [0, 0, 1, 1], [], []>} : vector<8x16xf32>, vector<16x16xf32>, vector<8x16xf32> -> vector<8x16xf32>
    %73 = vector.broadcast %18 : vector<1x16xf32> to vector<8x16xf32>
    %74 = arith.addf %72, %73 : vector<8x16xf32>
    %cst_36 = arith.constant 1.000000e+00 : f32
    %75 = vector.shape_cast %20 : vector<1x16xi1> to vector<1x16xi1>
    %76 = vector.broadcast %75 : vector<1x16xi1> to vector<8x16xi1>
    %77 = vector.broadcast %cst_36 : f32 to vector<8x16xf32>
    %78 = arith.select %76, %69, %77 : vector<8x16xi1>, vector<8x16xf32>
    %79 = arith.mulf %70, %71 : vector<8x16xf32>
    %80 = arith.mulf %74, %78 : vector<8x16xf32>
    %81 = arith.mulf %79, %80 : vector<8x16xf32>
    %cst_37 = arith.constant dense<0.000000e+00> : vector<8x128xf32>
    %82 = tpu.matmul %81, %10, %cst_37 {dimension_numbers = #tpu.dot_dimension_numbers<[1], [0], [0], [1], [0, 0, 1, 1], [], []>} : vector<8x16xf32>, vector<16x128xf32>, vector<8x128xf32> -> vector<8x128xf32>
    %83 = vector.broadcast %11 : vector<1x128xf32> to vector<8x128xf32>
    %84 = arith.addf %82, %83 : vector<8x128xf32>
    %85 = vector.extract_strided_slice %84 {offsets = [0, 0], sizes = [8, 96], strides = [1, 1]} : vector<8x128xf32> to vector<8x96xf32>
    %86 = arith.negf %85 : vector<8x96xf32>
    %87 = math.exp %86 : vector<8x96xf32>
    %cst_38 = arith.constant 1.000000e+00 : f32
    %88 = vector.broadcast %cst_38 : f32 to vector<8x96xf32>
    %89 = arith.addf %88, %87 : vector<8x96xf32>
    %90 = arith.divf %88, %89 : vector<8x96xf32>
    %91 = vector.extract_strided_slice %90 {offsets = [0, 0], sizes = [8, 32], strides = [1, 1]} : vector<8x96xf32> to vector<8x32xf32>
    %92 = vector.extract_strided_slice %90 {offsets = [0, 32], sizes = [8, 32], strides = [1, 1]} : vector<8x96xf32> to vector<8x32xf32>
    %93 = vector.extract_strided_slice %90 {offsets = [0, 64], sizes = [8, 32], strides = [1, 1]} : vector<8x96xf32> to vector<8x32xf32>
    %94 = vector.extract_strided_slice %84 {offsets = [0, 96], sizes = [8, 32], strides = [1, 1]} : vector<8x128xf32> to vector<8x32xf32>
    %95 = math.tanh %94 : vector<8x32xf32>
    %96 = arith.mulf %91, %57 : vector<8x32xf32>
    %97 = arith.mulf %92, %95 : vector<8x32xf32>
    %98 = arith.addf %96, %97 : vector<8x32xf32>
    %99 = math.tanh %98 : vector<8x32xf32>
    %100 = arith.mulf %93, %99 : vector<8x32xf32>
    %101 = arith.index_cast %c1_i32_29 : i32 to index
    %c0_39 = arith.constant 0 : index
    %c0_40 = arith.constant 0 : index
    %102 = vector.load %arg7[%101, %c0_39, %c0_40] : memref<8x8x32xf32, #tpu.memory_space<vmem>>, vector<1x8x32xf32>
    %103 = vector.shape_cast %102 : vector<1x8x32xf32> to vector<8x32xf32>
    %104 = vector.shape_cast %100 : vector<8x32xf32> to vector<1x8x32xf32>
    tpu.vector_store %arg7[%101, %c0_39, %c0_40], %104 {strides = array<i32>} : memref<8x8x32xf32, #tpu.memory_space<vmem>>, vector<1x8x32xf32>,
    %c2_i32 = arith.constant 2 : i32
    %cst_41 = arith.constant dense<0.000000e+00> : vector<8x16xf32>
    %105 = tpu.matmul %100, %3, %cst_41 {dimension_numbers = #tpu.dot_dimension_numbers<[1], [0], [0], [1], [0, 0, 1, 1], [], []>} : vector<8x32xf32>, vector<32x16xf32>, vector<8x16xf32> -> vector<8x16xf32>
    %106 = arith.index_cast %c2_i32 : i32 to index
    %c0_42 = arith.constant 0 : index
    %c0_43 = arith.constant 0 : index
    %107 = vector.load %arg2[%106, %c0_42, %c0_43] : memref<8x8x16xf32, #tpu.memory_space<vmem>>, vector<1x8x16xf32>
    %108 = vector.shape_cast %107 : vector<1x8x16xf32> to vector<8x16xf32>
    %109 = arith.addf %105, %108 : vector<8x16xf32>
    %110 = math.cos %109 : vector<8x16xf32>
    %cst_44 = arith.constant dense<0.000000e+00> : vector<8x16xf32>
    %111 = tpu.matmul %110, %5, %cst_44 {dimension_numbers = #tpu.dot_dimension_numbers<[1], [0], [0], [1], [0, 0, 1, 1], [], []>} : vector<8x16xf32>, vector<16x16xf32>, vector<8x16xf32> -> vector<8x16xf32>
    %cst_45 = arith.constant dense<0.000000e+00> : vector<8x16xf32>
    %112 = tpu.matmul %110, %7, %cst_45 {dimension_numbers = #tpu.dot_dimension_numbers<[1], [0], [0], [1], [0, 0, 1, 1], [], []>} : vector<8x16xf32>, vector<16x16xf32>, vector<8x16xf32> -> vector<8x16xf32>
    %cst_46 = arith.constant dense<0.000000e+00> : vector<8x16xf32>
    %113 = tpu.matmul %110, %9, %cst_46 {dimension_numbers = #tpu.dot_dimension_numbers<[1], [0], [0], [1], [0, 0, 1, 1], [], []>} : vector<8x16xf32>, vector<16x16xf32>, vector<8x16xf32> -> vector<8x16xf32>
    %114 = vector.broadcast %18 : vector<1x16xf32> to vector<8x16xf32>
    %115 = arith.addf %113, %114 : vector<8x16xf32>
    %cst_47 = arith.constant 1.000000e+00 : f32
    %116 = vector.shape_cast %20 : vector<1x16xi1> to vector<1x16xi1>
    %117 = vector.broadcast %116 : vector<1x16xi1> to vector<8x16xi1>
    %118 = vector.broadcast %cst_47 : f32 to vector<8x16xf32>
    %119 = arith.select %117, %110, %118 : vector<8x16xi1>, vector<8x16xf32>
    %120 = arith.mulf %111, %112 : vector<8x16xf32>
    %121 = arith.mulf %115, %119 : vector<8x16xf32>
    %122 = arith.mulf %120, %121 : vector<8x16xf32>
    %cst_48 = arith.constant dense<0.000000e+00> : vector<8x128xf32>
    %123 = tpu.matmul %122, %10, %cst_48 {dimension_numbers = #tpu.dot_dimension_numbers<[1], [0], [0], [1], [0, 0, 1, 1], [], []>} : vector<8x16xf32>, vector<16x128xf32>, vector<8x128xf32> -> vector<8x128xf32>
    %124 = vector.broadcast %11 : vector<1x128xf32> to vector<8x128xf32>
    %125 = arith.addf %123, %124 : vector<8x128xf32>
    %126 = vector.extract_strided_slice %125 {offsets = [0, 0], sizes = [8, 96], strides = [1, 1]} : vector<8x128xf32> to vector<8x96xf32>
    %127 = arith.negf %126 : vector<8x96xf32>
    %128 = math.exp %127 : vector<8x96xf32>
    %cst_49 = arith.constant 1.000000e+00 : f32
    %129 = vector.broadcast %cst_49 : f32 to vector<8x96xf32>
    %130 = arith.addf %129, %128 : vector<8x96xf32>
    %131 = arith.divf %129, %130 : vector<8x96xf32>
    %132 = vector.extract_strided_slice %131 {offsets = [0, 0], sizes = [8, 32], strides = [1, 1]} : vector<8x96xf32> to vector<8x32xf32>
    %133 = vector.extract_strided_slice %131 {offsets = [0, 32], sizes = [8, 32], strides = [1, 1]} : vector<8x96xf32> to vector<8x32xf32>
    %134 = vector.extract_strided_slice %131 {offsets = [0, 64], sizes = [8, 32], strides = [1, 1]} : vector<8x96xf32> to vector<8x32xf32>
    %135 = vector.extract_strided_slice %125 {offsets = [0, 96], sizes = [8, 32], strides = [1, 1]} : vector<8x128xf32> to vector<8x32xf32>
    %136 = math.tanh %135 : vector<8x32xf32>
    %137 = arith.mulf %132, %98 : vector<8x32xf32>
    %138 = arith.mulf %133, %136 : vector<8x32xf32>
    %139 = arith.addf %137, %138 : vector<8x32xf32>
    %140 = math.tanh %139 : vector<8x32xf32>
    %141 = arith.mulf %134, %140 : vector<8x32xf32>
    %142 = arith.index_cast %c2_i32 : i32 to index
    %c0_50 = arith.constant 0 : index
    %c0_51 = arith.constant 0 : index
    %143 = vector.load %arg7[%142, %c0_50, %c0_51] : memref<8x8x32xf32, #tpu.memory_space<vmem>>, vector<1x8x32xf32>
    %144 = vector.shape_cast %143 : vector<1x8x32xf32> to vector<8x32xf32>
    %145 = vector.shape_cast %141 : vector<8x32xf32> to vector<1x8x32xf32>
    tpu.vector_store %arg7[%142, %c0_50, %c0_51], %145 {strides = array<i32>} : memref<8x8x32xf32, #tpu.memory_space<vmem>>, vector<1x8x32xf32>,
    %c3_i32_52 = arith.constant 3 : i32
    %cst_53 = arith.constant dense<0.000000e+00> : vector<8x16xf32>
    %146 = tpu.matmul %141, %3, %cst_53 {dimension_numbers = #tpu.dot_dimension_numbers<[1], [0], [0], [1], [0, 0, 1, 1], [], []>} : vector<8x32xf32>, vector<32x16xf32>, vector<8x16xf32> -> vector<8x16xf32>
    %147 = arith.index_cast %c3_i32_52 : i32 to index
    %c0_54 = arith.constant 0 : index
    %c0_55 = arith.constant 0 : index
    %148 = vector.load %arg2[%147, %c0_54, %c0_55] : memref<8x8x16xf32, #tpu.memory_space<vmem>>, vector<1x8x16xf32>
    %149 = vector.shape_cast %148 : vector<1x8x16xf32> to vector<8x16xf32>
    %150 = arith.addf %146, %149 : vector<8x16xf32>
    %151 = math.cos %150 : vector<8x16xf32>
    %cst_56 = arith.constant dense<0.000000e+00> : vector<8x16xf32>
    %152 = tpu.matmul %151, %5, %cst_56 {dimension_numbers = #tpu.dot_dimension_numbers<[1], [0], [0], [1], [0, 0, 1, 1], [], []>} : vector<8x16xf32>, vector<16x16xf32>, vector<8x16xf32> -> vector<8x16xf32>
    %cst_57 = arith.constant dense<0.000000e+00> : vector<8x16xf32>
    %153 = tpu.matmul %151, %7, %cst_57 {dimension_numbers = #tpu.dot_dimension_numbers<[1], [0], [0], [1], [0, 0, 1, 1], [], []>} : vector<8x16xf32>, vector<16x16xf32>, vector<8x16xf32> -> vector<8x16xf32>
    %cst_58 = arith.constant dense<0.000000e+00> : vector<8x16xf32>
    %154 = tpu.matmul %151, %9, %cst_58 {dimension_numbers = #tpu.dot_dimension_numbers<[1], [0], [0], [1], [0, 0, 1, 1], [], []>} : vector<8x16xf32>, vector<16x16xf32>, vector<8x16xf32> -> vector<8x16xf32>
    %155 = vector.broadcast %18 : vector<1x16xf32> to vector<8x16xf32>
    %156 = arith.addf %154, %155 : vector<8x16xf32>
    %cst_59 = arith.constant 1.000000e+00 : f32
    %157 = vector.shape_cast %20 : vector<1x16xi1> to vector<1x16xi1>
    %158 = vector.broadcast %157 : vector<1x16xi1> to vector<8x16xi1>
    %159 = vector.broadcast %cst_59 : f32 to vector<8x16xf32>
    %160 = arith.select %158, %151, %159 : vector<8x16xi1>, vector<8x16xf32>
    %161 = arith.mulf %152, %153 : vector<8x16xf32>
    %162 = arith.mulf %156, %160 : vector<8x16xf32>
    %163 = arith.mulf %161, %162 : vector<8x16xf32>
    %cst_60 = arith.constant dense<0.000000e+00> : vector<8x128xf32>
    %164 = tpu.matmul %163, %10, %cst_60 {dimension_numbers = #tpu.dot_dimension_numbers<[1], [0], [0], [1], [0, 0, 1, 1], [], []>} : vector<8x16xf32>, vector<16x128xf32>, vector<8x128xf32> -> vector<8x128xf32>
    %165 = vector.broadcast %11 : vector<1x128xf32> to vector<8x128xf32>
    %166 = arith.addf %164, %165 : vector<8x128xf32>
    %167 = vector.extract_strided_slice %166 {offsets = [0, 0], sizes = [8, 96], strides = [1, 1]} : vector<8x128xf32> to vector<8x96xf32>
    %168 = arith.negf %167 : vector<8x96xf32>
    %169 = math.exp %168 : vector<8x96xf32>
    %cst_61 = arith.constant 1.000000e+00 : f32
    %170 = vector.broadcast %cst_61 : f32 to vector<8x96xf32>
    %171 = arith.addf %170, %169 : vector<8x96xf32>
    %172 = arith.divf %170, %171 : vector<8x96xf32>
    %173 = vector.extract_strided_slice %172 {offsets = [0, 0], sizes = [8, 32], strides = [1, 1]} : vector<8x96xf32> to vector<8x32xf32>
    %174 = vector.extract_strided_slice %172 {offsets = [0, 32], sizes = [8, 32], strides = [1, 1]} : vector<8x96xf32> to vector<8x32xf32>
    %175 = vector.extract_strided_slice %172 {offsets = [0, 64], sizes = [8, 32], strides = [1, 1]} : vector<8x96xf32> to vector<8x32xf32>
    %176 = vector.extract_strided_slice %166 {offsets = [0, 96], sizes = [8, 32], strides = [1, 1]} : vector<8x128xf32> to vector<8x32xf32>
    %177 = math.tanh %176 : vector<8x32xf32>
    %178 = arith.mulf %173, %139 : vector<8x32xf32>
    %179 = arith.mulf %174, %177 : vector<8x32xf32>
    %180 = arith.addf %178, %179 : vector<8x32xf32>
    %181 = math.tanh %180 : vector<8x32xf32>
    %182 = arith.mulf %175, %181 : vector<8x32xf32>
    %183 = arith.index_cast %c3_i32_52 : i32 to index
    %c0_62 = arith.constant 0 : index
    %c0_63 = arith.constant 0 : index
    %184 = vector.load %arg7[%183, %c0_62, %c0_63] : memref<8x8x32xf32, #tpu.memory_space<vmem>>, vector<1x8x32xf32>
    %185 = vector.shape_cast %184 : vector<1x8x32xf32> to vector<8x32xf32>
    %186 = vector.shape_cast %182 : vector<8x32xf32> to vector<1x8x32xf32>
    tpu.vector_store %arg7[%183, %c0_62, %c0_63], %186 {strides = array<i32>} : memref<8x8x32xf32, #tpu.memory_space<vmem>>, vector<1x8x32xf32>,
    %c4_i32 = arith.constant 4 : i32
    %cst_64 = arith.constant dense<0.000000e+00> : vector<8x16xf32>
    %187 = tpu.matmul %182, %3, %cst_64 {dimension_numbers = #tpu.dot_dimension_numbers<[1], [0], [0], [1], [0, 0, 1, 1], [], []>} : vector<8x32xf32>, vector<32x16xf32>, vector<8x16xf32> -> vector<8x16xf32>
    %188 = arith.index_cast %c4_i32 : i32 to index
    %c0_65 = arith.constant 0 : index
    %c0_66 = arith.constant 0 : index
    %189 = vector.load %arg2[%188, %c0_65, %c0_66] : memref<8x8x16xf32, #tpu.memory_space<vmem>>, vector<1x8x16xf32>
    %190 = vector.shape_cast %189 : vector<1x8x16xf32> to vector<8x16xf32>
    %191 = arith.addf %187, %190 : vector<8x16xf32>
    %192 = math.cos %191 : vector<8x16xf32>
    %cst_67 = arith.constant dense<0.000000e+00> : vector<8x16xf32>
    %193 = tpu.matmul %192, %5, %cst_67 {dimension_numbers = #tpu.dot_dimension_numbers<[1], [0], [0], [1], [0, 0, 1, 1], [], []>} : vector<8x16xf32>, vector<16x16xf32>, vector<8x16xf32> -> vector<8x16xf32>
    %cst_68 = arith.constant dense<0.000000e+00> : vector<8x16xf32>
    %194 = tpu.matmul %192, %7, %cst_68 {dimension_numbers = #tpu.dot_dimension_numbers<[1], [0], [0], [1], [0, 0, 1, 1], [], []>} : vector<8x16xf32>, vector<16x16xf32>, vector<8x16xf32> -> vector<8x16xf32>
    %cst_69 = arith.constant dense<0.000000e+00> : vector<8x16xf32>
    %195 = tpu.matmul %192, %9, %cst_69 {dimension_numbers = #tpu.dot_dimension_numbers<[1], [0], [0], [1], [0, 0, 1, 1], [], []>} : vector<8x16xf32>, vector<16x16xf32>, vector<8x16xf32> -> vector<8x16xf32>
    %196 = vector.broadcast %18 : vector<1x16xf32> to vector<8x16xf32>
    %197 = arith.addf %195, %196 : vector<8x16xf32>
    %cst_70 = arith.constant 1.000000e+00 : f32
    %198 = vector.shape_cast %20 : vector<1x16xi1> to vector<1x16xi1>
    %199 = vector.broadcast %198 : vector<1x16xi1> to vector<8x16xi1>
    %200 = vector.broadcast %cst_70 : f32 to vector<8x16xf32>
    %201 = arith.select %199, %192, %200 : vector<8x16xi1>, vector<8x16xf32>
    %202 = arith.mulf %193, %194 : vector<8x16xf32>
    %203 = arith.mulf %197, %201 : vector<8x16xf32>
    %204 = arith.mulf %202, %203 : vector<8x16xf32>
    %cst_71 = arith.constant dense<0.000000e+00> : vector<8x128xf32>
    %205 = tpu.matmul %204, %10, %cst_71 {dimension_numbers = #tpu.dot_dimension_numbers<[1], [0], [0], [1], [0, 0, 1, 1], [], []>} : vector<8x16xf32>, vector<16x128xf32>, vector<8x128xf32> -> vector<8x128xf32>
    %206 = vector.broadcast %11 : vector<1x128xf32> to vector<8x128xf32>
    %207 = arith.addf %205, %206 : vector<8x128xf32>
    %208 = vector.extract_strided_slice %207 {offsets = [0, 0], sizes = [8, 96], strides = [1, 1]} : vector<8x128xf32> to vector<8x96xf32>
    %209 = arith.negf %208 : vector<8x96xf32>
    %210 = math.exp %209 : vector<8x96xf32>
    %cst_72 = arith.constant 1.000000e+00 : f32
    %211 = vector.broadcast %cst_72 : f32 to vector<8x96xf32>
    %212 = arith.addf %211, %210 : vector<8x96xf32>
    %213 = arith.divf %211, %212 : vector<8x96xf32>
    %214 = vector.extract_strided_slice %213 {offsets = [0, 0], sizes = [8, 32], strides = [1, 1]} : vector<8x96xf32> to vector<8x32xf32>
    %215 = vector.extract_strided_slice %213 {offsets = [0, 32], sizes = [8, 32], strides = [1, 1]} : vector<8x96xf32> to vector<8x32xf32>
    %216 = vector.extract_strided_slice %213 {offsets = [0, 64], sizes = [8, 32], strides = [1, 1]} : vector<8x96xf32> to vector<8x32xf32>
    %217 = vector.extract_strided_slice %207 {offsets = [0, 96], sizes = [8, 32], strides = [1, 1]} : vector<8x128xf32> to vector<8x32xf32>
    %218 = math.tanh %217 : vector<8x32xf32>
    %219 = arith.mulf %214, %180 : vector<8x32xf32>
    %220 = arith.mulf %215, %218 : vector<8x32xf32>
    %221 = arith.addf %219, %220 : vector<8x32xf32>
    %222 = math.tanh %221 : vector<8x32xf32>
    %223 = arith.mulf %216, %222 : vector<8x32xf32>
    %224 = arith.index_cast %c4_i32 : i32 to index
    %c0_73 = arith.constant 0 : index
    %c0_74 = arith.constant 0 : index
    %225 = vector.load %arg7[%224, %c0_73, %c0_74] : memref<8x8x32xf32, #tpu.memory_space<vmem>>, vector<1x8x32xf32>
    %226 = vector.shape_cast %225 : vector<1x8x32xf32> to vector<8x32xf32>
    %227 = vector.shape_cast %223 : vector<8x32xf32> to vector<1x8x32xf32>
    tpu.vector_store %arg7[%224, %c0_73, %c0_74], %227 {strides = array<i32>} : memref<8x8x32xf32, #tpu.memory_space<vmem>>, vector<1x8x32xf32>,
    %c5_i32 = arith.constant 5 : i32
    %cst_75 = arith.constant dense<0.000000e+00> : vector<8x16xf32>
    %228 = tpu.matmul %223, %3, %cst_75 {dimension_numbers = #tpu.dot_dimension_numbers<[1], [0], [0], [1], [0, 0, 1, 1], [], []>} : vector<8x32xf32>, vector<32x16xf32>, vector<8x16xf32> -> vector<8x16xf32>
    %229 = arith.index_cast %c5_i32 : i32 to index
    %c0_76 = arith.constant 0 : index
    %c0_77 = arith.constant 0 : index
    %230 = vector.load %arg2[%229, %c0_76, %c0_77] : memref<8x8x16xf32, #tpu.memory_space<vmem>>, vector<1x8x16xf32>
    %231 = vector.shape_cast %230 : vector<1x8x16xf32> to vector<8x16xf32>
    %232 = arith.addf %228, %231 : vector<8x16xf32>
    %233 = math.cos %232 : vector<8x16xf32>
    %cst_78 = arith.constant dense<0.000000e+00> : vector<8x16xf32>
    %234 = tpu.matmul %233, %5, %cst_78 {dimension_numbers = #tpu.dot_dimension_numbers<[1], [0], [0], [1], [0, 0, 1, 1], [], []>} : vector<8x16xf32>, vector<16x16xf32>, vector<8x16xf32> -> vector<8x16xf32>
    %cst_79 = arith.constant dense<0.000000e+00> : vector<8x16xf32>
    %235 = tpu.matmul %233, %7, %cst_79 {dimension_numbers = #tpu.dot_dimension_numbers<[1], [0], [0], [1], [0, 0, 1, 1], [], []>} : vector<8x16xf32>, vector<16x16xf32>, vector<8x16xf32> -> vector<8x16xf32>
    %cst_80 = arith.constant dense<0.000000e+00> : vector<8x16xf32>
    %236 = tpu.matmul %233, %9, %cst_80 {dimension_numbers = #tpu.dot_dimension_numbers<[1], [0], [0], [1], [0, 0, 1, 1], [], []>} : vector<8x16xf32>, vector<16x16xf32>, vector<8x16xf32> -> vector<8x16xf32>
    %237 = vector.broadcast %18 : vector<1x16xf32> to vector<8x16xf32>
    %238 = arith.addf %236, %237 : vector<8x16xf32>
    %cst_81 = arith.constant 1.000000e+00 : f32
    %239 = vector.shape_cast %20 : vector<1x16xi1> to vector<1x16xi1>
    %240 = vector.broadcast %239 : vector<1x16xi1> to vector<8x16xi1>
    %241 = vector.broadcast %cst_81 : f32 to vector<8x16xf32>
    %242 = arith.select %240, %233, %241 : vector<8x16xi1>, vector<8x16xf32>
    %243 = arith.mulf %234, %235 : vector<8x16xf32>
    %244 = arith.mulf %238, %242 : vector<8x16xf32>
    %245 = arith.mulf %243, %244 : vector<8x16xf32>
    %cst_82 = arith.constant dense<0.000000e+00> : vector<8x128xf32>
    %246 = tpu.matmul %245, %10, %cst_82 {dimension_numbers = #tpu.dot_dimension_numbers<[1], [0], [0], [1], [0, 0, 1, 1], [], []>} : vector<8x16xf32>, vector<16x128xf32>, vector<8x128xf32> -> vector<8x128xf32>
    %247 = vector.broadcast %11 : vector<1x128xf32> to vector<8x128xf32>
    %248 = arith.addf %246, %247 : vector<8x128xf32>
    %249 = vector.extract_strided_slice %248 {offsets = [0, 0], sizes = [8, 96], strides = [1, 1]} : vector<8x128xf32> to vector<8x96xf32>
    %250 = arith.negf %249 : vector<8x96xf32>
    %251 = math.exp %250 : vector<8x96xf32>
    %cst_83 = arith.constant 1.000000e+00 : f32
    %252 = vector.broadcast %cst_83 : f32 to vector<8x96xf32>
    %253 = arith.addf %252, %251 : vector<8x96xf32>
    %254 = arith.divf %252, %253 : vector<8x96xf32>
    %255 = vector.extract_strided_slice %254 {offsets = [0, 0], sizes = [8, 32], strides = [1, 1]} : vector<8x96xf32> to vector<8x32xf32>
    %256 = vector.extract_strided_slice %254 {offsets = [0, 32], sizes = [8, 32], strides = [1, 1]} : vector<8x96xf32> to vector<8x32xf32>
    %257 = vector.extract_strided_slice %254 {offsets = [0, 64], sizes = [8, 32], strides = [1, 1]} : vector<8x96xf32> to vector<8x32xf32>
    %258 = vector.extract_strided_slice %248 {offsets = [0, 96], sizes = [8, 32], strides = [1, 1]} : vector<8x128xf32> to vector<8x32xf32>
    %259 = math.tanh %258 : vector<8x32xf32>
    %260 = arith.mulf %255, %221 : vector<8x32xf32>
    %261 = arith.mulf %256, %259 : vector<8x32xf32>
    %262 = arith.addf %260, %261 : vector<8x32xf32>
    %263 = math.tanh %262 : vector<8x32xf32>
    %264 = arith.mulf %257, %263 : vector<8x32xf32>
    %265 = arith.index_cast %c5_i32 : i32 to index
    %c0_84 = arith.constant 0 : index
    %c0_85 = arith.constant 0 : index
    %266 = vector.load %arg7[%265, %c0_84, %c0_85] : memref<8x8x32xf32, #tpu.memory_space<vmem>>, vector<1x8x32xf32>
    %267 = vector.shape_cast %266 : vector<1x8x32xf32> to vector<8x32xf32>
    %268 = vector.shape_cast %264 : vector<8x32xf32> to vector<1x8x32xf32>
    tpu.vector_store %arg7[%265, %c0_84, %c0_85], %268 {strides = array<i32>} : memref<8x8x32xf32, #tpu.memory_space<vmem>>, vector<1x8x32xf32>,
    %c6_i32 = arith.constant 6 : i32
    %cst_86 = arith.constant dense<0.000000e+00> : vector<8x16xf32>
    %269 = tpu.matmul %264, %3, %cst_86 {dimension_numbers = #tpu.dot_dimension_numbers<[1], [0], [0], [1], [0, 0, 1, 1], [], []>} : vector<8x32xf32>, vector<32x16xf32>, vector<8x16xf32> -> vector<8x16xf32>
    %270 = arith.index_cast %c6_i32 : i32 to index
    %c0_87 = arith.constant 0 : index
    %c0_88 = arith.constant 0 : index
    %271 = vector.load %arg2[%270, %c0_87, %c0_88] : memref<8x8x16xf32, #tpu.memory_space<vmem>>, vector<1x8x16xf32>
    %272 = vector.shape_cast %271 : vector<1x8x16xf32> to vector<8x16xf32>
    %273 = arith.addf %269, %272 : vector<8x16xf32>
    %274 = math.cos %273 : vector<8x16xf32>
    %cst_89 = arith.constant dense<0.000000e+00> : vector<8x16xf32>
    %275 = tpu.matmul %274, %5, %cst_89 {dimension_numbers = #tpu.dot_dimension_numbers<[1], [0], [0], [1], [0, 0, 1, 1], [], []>} : vector<8x16xf32>, vector<16x16xf32>, vector<8x16xf32> -> vector<8x16xf32>
    %cst_90 = arith.constant dense<0.000000e+00> : vector<8x16xf32>
    %276 = tpu.matmul %274, %7, %cst_90 {dimension_numbers = #tpu.dot_dimension_numbers<[1], [0], [0], [1], [0, 0, 1, 1], [], []>} : vector<8x16xf32>, vector<16x16xf32>, vector<8x16xf32> -> vector<8x16xf32>
    %cst_91 = arith.constant dense<0.000000e+00> : vector<8x16xf32>
    %277 = tpu.matmul %274, %9, %cst_91 {dimension_numbers = #tpu.dot_dimension_numbers<[1], [0], [0], [1], [0, 0, 1, 1], [], []>} : vector<8x16xf32>, vector<16x16xf32>, vector<8x16xf32> -> vector<8x16xf32>
    %278 = vector.broadcast %18 : vector<1x16xf32> to vector<8x16xf32>
    %279 = arith.addf %277, %278 : vector<8x16xf32>
    %cst_92 = arith.constant 1.000000e+00 : f32
    %280 = vector.shape_cast %20 : vector<1x16xi1> to vector<1x16xi1>
    %281 = vector.broadcast %280 : vector<1x16xi1> to vector<8x16xi1>
    %282 = vector.broadcast %cst_92 : f32 to vector<8x16xf32>
    %283 = arith.select %281, %274, %282 : vector<8x16xi1>, vector<8x16xf32>
    %284 = arith.mulf %275, %276 : vector<8x16xf32>
    %285 = arith.mulf %279, %283 : vector<8x16xf32>
    %286 = arith.mulf %284, %285 : vector<8x16xf32>
    %cst_93 = arith.constant dense<0.000000e+00> : vector<8x128xf32>
    %287 = tpu.matmul %286, %10, %cst_93 {dimension_numbers = #tpu.dot_dimension_numbers<[1], [0], [0], [1], [0, 0, 1, 1], [], []>} : vector<8x16xf32>, vector<16x128xf32>, vector<8x128xf32> -> vector<8x128xf32>
    %288 = vector.broadcast %11 : vector<1x128xf32> to vector<8x128xf32>
    %289 = arith.addf %287, %288 : vector<8x128xf32>
    %290 = vector.extract_strided_slice %289 {offsets = [0, 0], sizes = [8, 96], strides = [1, 1]} : vector<8x128xf32> to vector<8x96xf32>
    %291 = arith.negf %290 : vector<8x96xf32>
    %292 = math.exp %291 : vector<8x96xf32>
    %cst_94 = arith.constant 1.000000e+00 : f32
    %293 = vector.broadcast %cst_94 : f32 to vector<8x96xf32>
    %294 = arith.addf %293, %292 : vector<8x96xf32>
    %295 = arith.divf %293, %294 : vector<8x96xf32>
    %296 = vector.extract_strided_slice %295 {offsets = [0, 0], sizes = [8, 32], strides = [1, 1]} : vector<8x96xf32> to vector<8x32xf32>
    %297 = vector.extract_strided_slice %295 {offsets = [0, 32], sizes = [8, 32], strides = [1, 1]} : vector<8x96xf32> to vector<8x32xf32>
    %298 = vector.extract_strided_slice %295 {offsets = [0, 64], sizes = [8, 32], strides = [1, 1]} : vector<8x96xf32> to vector<8x32xf32>
    %299 = vector.extract_strided_slice %289 {offsets = [0, 96], sizes = [8, 32], strides = [1, 1]} : vector<8x128xf32> to vector<8x32xf32>
    %300 = math.tanh %299 : vector<8x32xf32>
    %301 = arith.mulf %296, %262 : vector<8x32xf32>
    %302 = arith.mulf %297, %300 : vector<8x32xf32>
    %303 = arith.addf %301, %302 : vector<8x32xf32>
    %304 = math.tanh %303 : vector<8x32xf32>
    %305 = arith.mulf %298, %304 : vector<8x32xf32>
    %306 = arith.index_cast %c6_i32 : i32 to index
    %c0_95 = arith.constant 0 : index
    %c0_96 = arith.constant 0 : index
    %307 = vector.load %arg7[%306, %c0_95, %c0_96] : memref<8x8x32xf32, #tpu.memory_space<vmem>>, vector<1x8x32xf32>
    %308 = vector.shape_cast %307 : vector<1x8x32xf32> to vector<8x32xf32>
    %309 = vector.shape_cast %305 : vector<8x32xf32> to vector<1x8x32xf32>
    tpu.vector_store %arg7[%306, %c0_95, %c0_96], %309 {strides = array<i32>} : memref<8x8x32xf32, #tpu.memory_space<vmem>>, vector<1x8x32xf32>,
    %c7_i32 = arith.constant 7 : i32
    %cst_97 = arith.constant dense<0.000000e+00> : vector<8x16xf32>
    %310 = tpu.matmul %305, %3, %cst_97 {dimension_numbers = #tpu.dot_dimension_numbers<[1], [0], [0], [1], [0, 0, 1, 1], [], []>} : vector<8x32xf32>, vector<32x16xf32>, vector<8x16xf32> -> vector<8x16xf32>
    %311 = arith.index_cast %c7_i32 : i32 to index
    %c0_98 = arith.constant 0 : index
    %c0_99 = arith.constant 0 : index
    %312 = vector.load %arg2[%311, %c0_98, %c0_99] : memref<8x8x16xf32, #tpu.memory_space<vmem>>, vector<1x8x16xf32>
    %313 = vector.shape_cast %312 : vector<1x8x16xf32> to vector<8x16xf32>
    %314 = arith.addf %310, %313 : vector<8x16xf32>
    %315 = math.cos %314 : vector<8x16xf32>
    %cst_100 = arith.constant dense<0.000000e+00> : vector<8x16xf32>
    %316 = tpu.matmul %315, %5, %cst_100 {dimension_numbers = #tpu.dot_dimension_numbers<[1], [0], [0], [1], [0, 0, 1, 1], [], []>} : vector<8x16xf32>, vector<16x16xf32>, vector<8x16xf32> -> vector<8x16xf32>
    %cst_101 = arith.constant dense<0.000000e+00> : vector<8x16xf32>
    %317 = tpu.matmul %315, %7, %cst_101 {dimension_numbers = #tpu.dot_dimension_numbers<[1], [0], [0], [1], [0, 0, 1, 1], [], []>} : vector<8x16xf32>, vector<16x16xf32>, vector<8x16xf32> -> vector<8x16xf32>
    %cst_102 = arith.constant dense<0.000000e+00> : vector<8x16xf32>
    %318 = tpu.matmul %315, %9, %cst_102 {dimension_numbers = #tpu.dot_dimension_numbers<[1], [0], [0], [1], [0, 0, 1, 1], [], []>} : vector<8x16xf32>, vector<16x16xf32>, vector<8x16xf32> -> vector<8x16xf32>
    %319 = vector.broadcast %18 : vector<1x16xf32> to vector<8x16xf32>
    %320 = arith.addf %318, %319 : vector<8x16xf32>
    %cst_103 = arith.constant 1.000000e+00 : f32
    %321 = vector.shape_cast %20 : vector<1x16xi1> to vector<1x16xi1>
    %322 = vector.broadcast %321 : vector<1x16xi1> to vector<8x16xi1>
    %323 = vector.broadcast %cst_103 : f32 to vector<8x16xf32>
    %324 = arith.select %322, %315, %323 : vector<8x16xi1>, vector<8x16xf32>
    %325 = arith.mulf %316, %317 : vector<8x16xf32>
    %326 = arith.mulf %320, %324 : vector<8x16xf32>
    %327 = arith.mulf %325, %326 : vector<8x16xf32>
    %cst_104 = arith.constant dense<0.000000e+00> : vector<8x128xf32>
    %328 = tpu.matmul %327, %10, %cst_104 {dimension_numbers = #tpu.dot_dimension_numbers<[1], [0], [0], [1], [0, 0, 1, 1], [], []>} : vector<8x16xf32>, vector<16x128xf32>, vector<8x128xf32> -> vector<8x128xf32>
    %329 = vector.broadcast %11 : vector<1x128xf32> to vector<8x128xf32>
    %330 = arith.addf %328, %329 : vector<8x128xf32>
    %331 = vector.extract_strided_slice %330 {offsets = [0, 0], sizes = [8, 96], strides = [1, 1]} : vector<8x128xf32> to vector<8x96xf32>
    %332 = arith.negf %331 : vector<8x96xf32>
    %333 = math.exp %332 : vector<8x96xf32>
    %cst_105 = arith.constant 1.000000e+00 : f32
    %334 = vector.broadcast %cst_105 : f32 to vector<8x96xf32>
    %335 = arith.addf %334, %333 : vector<8x96xf32>
    %336 = arith.divf %334, %335 : vector<8x96xf32>
    %337 = vector.extract_strided_slice %336 {offsets = [0, 0], sizes = [8, 32], strides = [1, 1]} : vector<8x96xf32> to vector<8x32xf32>
    %338 = vector.extract_strided_slice %336 {offsets = [0, 32], sizes = [8, 32], strides = [1, 1]} : vector<8x96xf32> to vector<8x32xf32>
    %339 = vector.extract_strided_slice %336 {offsets = [0, 64], sizes = [8, 32], strides = [1, 1]} : vector<8x96xf32> to vector<8x32xf32>
    %340 = vector.extract_strided_slice %330 {offsets = [0, 96], sizes = [8, 32], strides = [1, 1]} : vector<8x128xf32> to vector<8x32xf32>
    %341 = math.tanh %340 : vector<8x32xf32>
    %342 = arith.mulf %337, %303 : vector<8x32xf32>
    %343 = arith.mulf %338, %341 : vector<8x32xf32>
    %344 = arith.addf %342, %343 : vector<8x32xf32>
    %345 = math.tanh %344 : vector<8x32xf32>
    %346 = arith.mulf %339, %345 : vector<8x32xf32>
    %347 = arith.index_cast %c7_i32 : i32 to index
    %c0_106 = arith.constant 0 : index
    %c0_107 = arith.constant 0 : index
    %348 = vector.load %arg7[%347, %c0_106, %c0_107] : memref<8x8x32xf32, #tpu.memory_space<vmem>>, vector<1x8x32xf32>
    %349 = vector.shape_cast %348 : vector<1x8x32xf32> to vector<8x32xf32>
    %350 = vector.shape_cast %346 : vector<8x32xf32> to vector<1x8x32xf32>
    tpu.vector_store %arg7[%347, %c0_106, %c0_107], %350 {strides = array<i32>} : memref<8x8x32xf32, #tpu.memory_space<vmem>>, vector<1x8x32xf32>,
    %c8_i32 = arith.constant 8 : i32
    %c0_108 = arith.constant 0 : index
    %c0_109 = arith.constant 0 : index
    %351 = vector.load %arg9[%c0_108, %c0_109] : memref<8x32xf32, #tpu.memory_space<vmem>>, vector<8x32xf32>
    tpu.vector_store %arg9[%c0_108, %c0_109], %346 {strides = array<i32>} : memref<8x32xf32, #tpu.memory_space<vmem>>, vector<8x32xf32>,
    %c0_110 = arith.constant 0 : index
    %c0_111 = arith.constant 0 : index
    %352 = vector.load %arg10[%c0_110, %c0_111] : memref<8x32xf32, #tpu.memory_space<vmem>>, vector<8x32xf32>
    tpu.vector_store %arg10[%c0_110, %c0_111], %344 {strides = array<i32>} : memref<8x32xf32, #tpu.memory_space<vmem>>, vector<8x32xf32>,
    %c0_i32_112 = arith.constant 0 : i32
    %353 = arith.cmpi eq, %arg1, %c0_i32_112 : i32
    %354 = arith.extui %353 : i1 to i32
    %c0_i32_113 = arith.constant 0 : i32
    %355 = arith.cmpi ne, %354, %c0_i32_113 : i32
    scf.if %355 {
      %c0_114 = arith.constant 0 : index
      %c0_115 = arith.constant 0 : index
      %356 = vector.load %arg8[%c0_114, %c0_115] : memref<8x32xf32, #tpu.memory_space<vmem>>, vector<8x32xf32>
      tpu.vector_store %arg8[%c0_114, %c0_115], %344 {strides = array<i32>} : memref<8x32xf32, #tpu.memory_space<vmem>>, vector<8x32xf32>,
    } else {
    }
    return
  }
  func.func @transform_0(%arg0: i32, %arg1: i32) -> (i32, i32, i32) {
    %c0_i32 = arith.constant 0 : i32
    %c0_i32_0 = arith.constant 0 : i32
    return %arg1, %arg0, %c0_i32 : i32, i32, i32
  }
  func.func @transform_1(%arg0: i32, %arg1: i32) -> (i32, i32) {
    %c0_i32 = arith.constant 0 : i32
    %c0_i32_0 = arith.constant 0 : i32
    %c0_i32_1 = arith.constant 0 : i32
    return %c0_i32, %c0_i32_0 : i32, i32
  }
  func.func @transform_2(%arg0: i32, %arg1: i32) -> (i32, i32, i32) {
    %c0_i32 = arith.constant 0 : i32
    %c0_i32_0 = arith.constant 0 : i32
    %c0_i32_1 = arith.constant 0 : i32
    %c0_i32_2 = arith.constant 0 : i32
    return %c0_i32, %c0_i32_0, %c0_i32_1 : i32, i32, i32
  }
  func.func @transform_3(%arg0: i32, %arg1: i32) -> (i32, i32) {
    %c0_i32 = arith.constant 0 : i32
    %c0_i32_0 = arith.constant 0 : i32
    %c0_i32_1 = arith.constant 0 : i32
    return %c0_i32, %c0_i32_0 : i32, i32
  }
  func.func @transform_4(%arg0: i32, %arg1: i32) -> (i32, i32) {
    %c0_i32 = arith.constant 0 : i32
    %c0_i32_0 = arith.constant 0 : i32
    %c0_i32_1 = arith.constant 0 : i32
    return %c0_i32, %c0_i32_0 : i32, i32
  }
  func.func @transform_5(%arg0: i32, %arg1: i32) -> (i32, i32, i32) {
    %c0_i32 = arith.constant 0 : i32
    %c0_i32_0 = arith.constant 0 : i32
    return %arg1, %arg0, %c0_i32 : i32, i32, i32
  }
  func.func @transform_6(%arg0: i32, %arg1: i32) -> (i32, i32) {
    %c0_i32 = arith.constant 0 : i32
    %c0_i32_0 = arith.constant 0 : i32
    return %arg0, %c0_i32 : i32, i32
  }
}

</mosaic_0001>

<bundles_post_ra>
// kernel: tpu_custom_call.1
= control target key start
LH: loop header
LB: loop body
LE: loop exit
PB: predicated region body
PF: predicated region fallthrough
CT: control target
= control target key end

     0   :  { %12 = vsyncpa [#allocation5], 0  ;;  %s5773_s0 = inlined_call_operand.hbm [shape: f32[8,8,16], index: 0, kind: input, shape index: {}]   ;;  %s5774_s1 = inlined_call_operand.vmem [shape: f32[32,16], index: 1, kind: input, shape index: {}]   ;;  %s5775_s2 = inlined_call_operand.vmem [shape: f32[3,16,16], index: 2, kind: input, shape index: {}]   ;;  %s5776_s3 = inlined_call_operand.hbm [shape: f32[16,128], index: 3, kind: input, shape index: {}]   ;;  %s5777_s4 = inlined_call_operand.vmem [shape: f32[1,128], index: 4, kind: input, shape index: {}]   ;;  %s5778_s5 = inlined_call_operand.hbm [shape: f32[8,8,32], index: 5, kind: output, shape index: {0}]   ;;  %s5779_s6 = inlined_call_operand.hbm [shape: f32[8,32], index: 6, kind: output, shape index: {1}]  }
   0x1   :  { %13 = vsyncpa [#allocation8], 0 }
   0x2   :  { %14 = vsyncpa [#allocation6], 0 }
   0x3   :  { %15 = vsyncpa [#allocation11], 0  ;;  %s5026_s21 = smov [#allocation4]   ;;  %s4930_s25 = scalar_lea.hbm %s5773_s0, 1024 }
   0x4   :  { %s21_s22 = sshll.u32 %s5026_s21, 4  ;;  %p4931_p0 = scmp.ne.s32.totalorder %s5773_s0, %s4930_s25  ;;  %s22_s22 = int_to_ptr.vmem [resolvable:$true] %s21_s22 }
   0x5   :  { %p4934_p1 = scmp.lt.u32.totalorder %s4930_s25, %s5773_s0 }
   0x7   :  { %p4936_p2 = pnand %p4934_p1, %p4931_p0 }
   0x9   :  { %4939 = shalt.err (!%p4936_p2)
}
   0xa   :  { %s4940_s30 = scalar_lea.vmem %s22_s22, 1024  ;;  %p4945_p4 = scmp.lt.s32.totalorder %s22_s22, %s22_s22 }
   0xb   :  { %p4941_p3 = scmp.ne.s32.totalorder %s22_s22, %s4940_s30  ;;  %p4946_p5 = scmp.lt.s32.totalorder %s4940_s30, %s4940_s30 }
   0xd   :  { %p4947_p6 = por %p4946_p5, %p4945_p4 }
   0xf   :  { %p4948_p7 = pnand %p4947_p6, %p4941_p3 }
  0x11   :  { %4951 = shalt.err (!%p4948_p7)
}
  0x12   :  { %s5027_s7 = smov 128   ;;  %s5028_s8 = smov 8  }
  0x13   :  { %27 = dma.hbm_to_vmem [thread:$0]  %s5773_s0, 1024, %s22_s22, [#allocation5], %s5027_s7, %s5027_s7, %s5028_s8  }
  0x14   :  { %s5029_s11 = smov [#allocation7]   ;;  %s4952_s15 = scalar_lea.hbm %s5776_s3, 256 }
  0x15   :  { %s37_s12 = sshll.u32 %s5029_s11, 4  ;;  %p4953_p8 = scmp.ne.s32.totalorder %s5776_s3, %s4952_s15  ;;  %s38_s12 = int_to_ptr.vmem [resolvable:$true] %s37_s12 }
  0x16   :  { %p4956_p9 = scmp.lt.u32.totalorder %s4952_s15, %s5776_s3 }
  0x18   :  { %p4958_p10 = pnand %p4956_p9, %p4953_p8 }
  0x1a   :  { %4961 = shalt.err (!%p4958_p10)
}
  0x1b   :  { %s4962_s20 = scalar_lea.vmem %s38_s12, 256  ;;  %p4967_p12 = scmp.lt.s32.totalorder %s38_s12, %s38_s12 }
  0x1c   :  { %p4963_p11 = scmp.ne.s32.totalorder %s38_s12, %s4962_s20  ;;  %p4968_p13 = scmp.lt.s32.totalorder %s4962_s20, %s4962_s20 }
  0x1e   :  { %p4969_p0 = por %p4968_p13, %p4967_p12 }
  0x20   :  { %p4970_p1 = pnand %p4969_p0, %p4963_p11 }
  0x22   :  { %4973 = shalt.err (!%p4970_p1)
}
  0x23   :  { %43 = dma.hbm_to_vmem [thread:$0]  %s5776_s3, 256, %s38_s12, [#allocation8], %s5027_s7, %s5027_s7, %s5028_s8  }
  0x24   :  { %5018 = dma.done.wait [#allocation5], 1024  }
  0x25   :  { %5019 = vsyncadd [#allocation5], 4294966272 }
  0x26   :  { %5020 = dma.done.wait [#allocation8], 256  }
  0x27   :  { %5021 = vsyncadd [#allocation8], 4294967040  ;;  %vm56_vm0 = vcmask 261120   ;;  %v5030_v0 = vmov 0.0|0.0   ;;  %vm5031_vm1 = vmmov 0   ;;  %v5032_v1 = vmov 0.0  }
  0x28   :  { %4640 = vmatprep.subr.bf16.mxu0 %v5030_v0  ;;  %4336 = vmatprep.mubr.msk.f32.mxu0 %vm5031_vm1, %v5032_v1  ;;  %57 = vst.msk [vmem:[#allocation2] sm:$0xff] %vm56_vm0, %v5032_v1  ;;  %58 = vst.msk [vmem:[#allocation3] sm:$0xff] %vm56_vm0, %v5032_v1  ;;  %v59_v2 = vld [vmem:[%s5774_s1] sm:$0xff]  ;;  %v60_v3 = vld [vmem:[%s5774_s1 + $0x8] sm:$0xff]  ;;  %v5033_v29 = vmov 683565275  }
  0x29   :  { %4646 = vmatprep.subr.bf16.mxu1 %v5030_v0  ;;  %4343 = vmatprep.mubr.msk.f32.mxu1 %vm5031_vm1, %v5032_v1  ;;  %v61_v4 = vld [vmem:[%s5774_s1 + $0x10] sm:$0xff]  ;;  %v5127_v5 = vpack.c.bf16 %v60_v3, %v59_v2  ;;  %v62_v6 = vld [vmem:[%s5774_s1 + $0x18] sm:$0xff]  ;;  %v63_v9 = vld [vmem:[%s5775_s2] sm:$0xff]  ;;  %v5034_v31 = vmov 2475754826   ;;  %vm261_vm14 = vcmask 130048  }
  0x2a   :  { %v5133_v7 = vpack.c.bf16 %v62_v6, %v61_v4  ;;  %v64_v10 = vld [vmem:[%s5775_s2 + $0x8] sm:$0xff]  ;;  %v4108_v11 = vld [vmem:[%s5775_s2 + $0x20] sm:$0xff]  ;;  %v83_v15 = vld [vmem:[#allocation4] sm:$0xff]  ;;  %v5035_v34 = vmov 2131351028   ;;  %s5039_s19 = smov 64  }
  0x2b   :  { %4642 = vmatpush3.bf16.msra.mxu0 %v5127_v5  ;;  %v5150_v12 = vpack.c.bf16 %v64_v10, %v63_v9  ;;  %v4109_v13 = vld [vmem:[%s5775_s2 + $0x28] sm:$0xff]  ;;  %v5036_v37 = vmov 2102212464   ;;  %v5037_v40 = vmov 920167782   ;;  %s5040_s20 = smov 96  }
  0x2c   :  { %4643 = vmatprep.subr.bf16.mxu0 %v5030_v0  ;;  %v5155_v14 = vpack.c.bf16 %v4109_v13, %v4108_v11  ;;  %v5038_v43 = vmov 1326507024  }
  0x2d   :  { %4648 = vmatpush3.bf16.msra.mxu1 %v5150_v12 }
  0x2e   :  { %4649 = vmatprep.subr.bf16.mxu1 %v5030_v0 }
  0x2f   :  { %4645 = vmatpush3.bf16.msra.mxu0 %v5133_v7  ;;  %v81_v8 = vld [vmem:[#allocation2] sm:$0xff] }
  0x30   :  { %4652 = vmatprep.subr.bf16.mxu0 %v5030_v0 }
  0x32   :  { %4337 = vmatmul.mubr.msk.f32.vlgmr.msra.gmra.mrb[0].mxu0 %vm56_vm0, %v81_v8 }
  0x33   :  { %4357 = vmatprep.mubr.msk.f32.mxu0 %vm5031_vm1, %v5032_v1  ;;  %4654 = vmatpush3.bf16.msra.mxu0 %v5155_v14 }
  0x34   :  { %4658 = vmatprep.subr.bf16.mxu0 %v5030_v0 }
 0x105   :  { %v154_v16 = vpop.f32.mrb[0].mxu0 }
 0x106   :  { %v5161_v17 = vadd.f32 %v154_v16, %v83_v15  ;;  %v4338_v18 = vpop.f32.mrb[1].mxu0 }
 0x108   :  { %v161_v19 = vand.u32 2139095040, %v5161_v17  ;;  %v158_v23 = vand.u32 2147483647, %v5161_v17  ;;  %vm160_vm9 = vcmp.lt.s32.totalorder %v5161_v17, 0  ;;  %vm250_vm15 = vweird.f32 %v5161_v17 }
 0x10a   :  { %v162_v20 = vshrl.u32 %v161_v19, 23  ;;  %v165_v26 = vand.u32 8388607, %v158_v23  ;;  %vm159_vm10 = vcmp.le.f32.partialorder %v158_v23, 0.7853982 }
 0x10c   :  { %v4112_v21 = vadd.s32 4294967169, %v162_v20  ;;  %v166_v45 = vor.u32 8388608, %v165_v26 }
 0x10e   :  { %v168_v22 = vadd.s32 1, %v4112_v21  ;;  %v206_v59 = vshll.u32 %v166_v45, 8 }
 0x110   :  { %vm169_vm2 = vcmp.gt.s32.totalorder %v168_v22, 0 }
 0x111   :  { %v170_v24 = vsel %vm169_vm2, %v168_v22, 0 }
 0x112   :  { %v172_v25 = vand.u32 31, %v170_v24  ;;  %v171_v28 = vshrl.u32 %v170_v24, 5 }
 0x114   :  { %v173_v27 = vsub.s32 32, %v172_v25  ;;  %v175_v30 = vshll.u32 %v5033_v29, %v172_v25  ;;  %v178_v32 = vshll.u32 %v5034_v31, %v172_v25  ;;  %v181_v36 = vshll.u32 %v5035_v34, %v172_v25 }
 0x115   :  { %v184_v39 = vshll.u32 %v5036_v37, %v172_v25  ;;  %v187_v42 = vshll.u32 %v5037_v40, %v172_v25  ;;  %vm190_vm3 = vcmp.lt.s32.totalorder %v171_v28, 1  ;;  %vm193_vm4 = vcmp.lt.s32.totalorder %v171_v28, 4 }
 0x116   :  { %v176_v33 = vshrl.u32 %v5034_v31, %v173_v27  ;;  %v179_v35 = vshrl.u32 %v5035_v34, %v173_v27  ;;  %v182_v38 = vshrl.u32 %v5036_v37, %v173_v27  ;;  %v185_v41 = vshrl.u32 %v5037_v40, %v173_v27 }
 0x117   :  { %v188_v44 = vshrl.u32 %v5038_v43, %v173_v27  ;;  %v174_v54 = vshrl.u32 %v5033_v29, %v173_v27  ;;  %vm192_vm5 = vcmp.lt.s32.totalorder %v171_v28, 3  ;;  %vm191_vm6 = vcmp.lt.s32.totalorder %v171_v28, 2 }
 0x118   :  { %v177_v46 = vor.u32 %v176_v33, %v175_v30  ;;  %v180_v47 = vor.u32 %v179_v35, %v178_v32  ;;  %v183_v48 = vor.u32 %v182_v38, %v181_v36  ;;  %v186_v49 = vor.u32 %v185_v41, %v184_v39 }
 0x119   :  { %v189_v50 = vor.u32 %v188_v44, %v187_v42 }
 0x11a   :  { %v195_v51 = vsel %vm193_vm4, %v183_v48, 2102212464  ;;  %v198_v52 = vsel %vm190_vm3, %v177_v46, %v180_v47  ;;  %v202_v53 = vsel %vm190_vm3, %v180_v47, %v183_v48  ;;  %v199_v55 = vsel %vm193_vm4, %v186_v49, 920167782 }
 0x11b   :  { %v203_v56 = vsel %vm193_vm4, %v189_v50, 1326507024  ;;  %v200_v57 = vsel %vm192_vm5, %v183_v48, %v199_v55  ;;  %v194_v60 = vsel %vm190_vm3, %v174_v54, %v177_v46  ;;  %v196_v61 = vsel %vm192_vm5, %v180_v47, %v195_v51  ;;  %v4106_v54 = vld [vmem:[%s5775_s2 + $0x10] sm:$0xff]  ;;  %v4107_v55 = vld [vmem:[%s5775_s2 + $0x18] sm:$0xff] }
 0x11c   :  { %v204_v58 = vsel %vm192_vm5, %v186_v49, %v203_v56  ;;  %v201_v62 = vsel %vm191_vm6, %v198_v52, %v200_v57  ;;  %v197_v8 = vsel %vm191_vm6, %v194_v60, %v196_v61  ;;  %v72_v61 = vld [vmem:[#allocation7 + $0x8] sm:$0xff] }
 0x11d   :  { %v205_v63 = vsel %vm191_vm6, %v202_v53, %v204_v58  ;;  %v5181_v4 = vmul.u32.u64.low %v206_v59, %v201_v62  ;;  %v5182_v6 = vmul.u32.u64.high %v206_v59, %v201_v62, %v5181_v4  ;;  %v213_v10 = vmul.u32 %v206_v59, %v197_v8 }
 0x11e   :  { %v5178_v2 = vmul.u32.u64.low %v206_v59, %v205_v63  ;;  %v5179_v3 = vmul.u32.u64.high %v206_v59, %v205_v63, %v5178_v2  ;;  %v5198_v58 = vpack.c.bf16 %v4107_v55, %v4106_v54  ;;  %v74_v63 = vlaneseq }
 0x11f   :  { %v216_v9 = vadd.s32 1, %v5182_v6 }
 0x120   :  { %vm215_vm7 = vc.u32 %v5179_v3, %v5181_v4  ;;  %v214_v26 = vadd.s32 %v5181_v4, %v5179_v3  ;;  %v75_v2 = vand.u32 127, %v74_v63 }
 0x121   :  { %v217_v11 = vsel %vm215_vm7, %v216_v9, %v5182_v6 }
 0x122   :  { %v218_v13 = vadd.s32 %v217_v11, %v213_v10  ;;  %v76_v3 = vand.u32 3, %v75_v2 }
 0x124   :  { %v219_v15 = vadd.s32 536870912, %v218_v13  ;;  %vm77_vm2 = vcmp.eq.s32.totalorder %v76_v3, 1  ;;  %vm5223_vm3 = vcmp.eq.s32.totalorder %v76_v3, 3 }
 0x125   :  { %v5221_v4 = vsel %vm77_vm2, 1.0, %v5032_v1 }
 0x126   :  { %v220_v16 = vshrl.u32 %v219_v15, 30 }
 0x128   :  { %v221_v18 = vshll.u32 %v220_v16, 30  ;;  %v244_v46 = vsub.s32 4, %v220_v16 }
 0x12a   :  { %v222_v19 = vsub.s32 %v218_v13, %v221_v18  ;;  %v245_v48 = vsel %vm160_vm9, %v244_v46, %v220_v16 }
 0x12b   :  { %v247_v49 = vsel %vm159_vm10, 0, %v245_v48  ;;  %v590_v48 = vld [vmem:[#allocation4 + $0x8] sm:$0xff] }
 0x12c   :  { %v224_v20 = vsub.s32 0, %v222_v19  ;;  %v251_v50 = vand.u32 3, %v247_v49 }
 0x12e   :  { %v4113_v21 = vmin.u32 %v224_v20, %v222_v19  ;;  %vm256_vm11 = vcmp.eq.s32.totalorder %v251_v50, 2  ;;  %vm253_vm12 = vcmp.eq.s32.totalorder %v251_v50, 0  ;;  %vm252_vm13 = vcmp.lt.s32.totalorder %v251_v50, 2 }
 0x130   :  { %v226_v22 = vclz %v4113_v21 }
 0x132   :  { %v4114_v24 = vadd.s32 4294967294, %v226_v22  ;;  %v5238_v22 = vld [vmem:[%s5777_s4] ss:$0 sm:$0xff] }
 0x134   :  { %vm4115_vm8 = vcmp.lt.s32.totalorder %v4114_v24, 0 }
 0x135   :  { %v229_v25 = vsel %vm4115_vm8, 0, %v4114_v24 }
 0x136   :  { %v230_v27 = vsub.s32 32, %v229_v25  ;;  %v234_v28 = vsub.s32 4294967266, %v229_v25  ;;  %v231_v30 = vshll.u32 %v222_v19, %v229_v25 }
 0x138   :  { %v232_v32 = vshrl.u32 %v214_v26, %v230_v27  ;;  %v235_v33 = vadd.s32 127, %v234_v28 }
 0x13a   :  { %v233_v35 = vor.u32 %v232_v32, %v231_v30  ;;  %v236_v36 = vshll.u32 %v235_v33, 23 }
 0x13c   :  { %v237_v38 = vor.u32 4788187, %v236_v36  ;;  %v240_v41 = vcvt.s32.f32 %v233_v35 }
 0x13e   :  { %v238_v39 = vand.u32 2147483647, %v237_v38  ;;  %v82_v38 = vld [vmem:[#allocation3] sm:$0xff] }
 0x140   :  { %v241_v42 = vmul.f32 %v240_v41, %v238_v39 }
 0x142   :  { %v242_v44 = vxor.u32 2147483648, %v241_v42 }
 0x144   :  { %v243_v45 = vsel %vm160_vm9, %v242_v44, %v241_v42 }
 0x145   :  { %v246_v47 = vsel %vm159_vm10, %v5161_v17, %v243_v45  ;;  %v71_v17 = vld [vmem:[#allocation7] sm:$0xff] }
 0x146   :  { %4833 = vcosq.f32 %v246_v47  ;;  %v5216_v62 = vpack.c.bf16 %v72_v61, %v71_v17 }
 0x147   :  { %4835 = vsinq.f32 %v246_v47 }
 0x150   :  { %v4834_v51 = vpop.eup %4833 }
 0x151   :  { %v4836_v52 = vpop.eup %4835  ;;  %v257_v53 = vxor.u32 2147483648, %v4834_v51 }
 0x152   :  { %v254_v23 = vxor.u32 2147483648, %v4836_v52 }
 0x153   :  { %v258_v56 = vsel %vm256_vm11, %v257_v53, %v4836_v52 }
 0x154   :  { %v255_v57 = vsel %vm253_vm12, %v4834_v51, %v254_v23 }
 0x155   :  { %v259_v59 = vsel %vm252_vm13, %v255_v57, %v258_v56 }
 0x156   :  { %v260_v60 = vsel %vm250_vm15, nan, %v259_v59 }
 0x157   :  { %4344 = vmatmul.mubr.msk.f32.vlgmr.msra.gmra.mrb[0].mxu1 %vm261_vm14, %v260_v60  ;;  %4358 = vmatmul.mubr.msk.f32.vlgmr.msra.gmra.mrb[2].mxu0 %vm261_vm14, %v260_v60  ;;  %v477_v15 = vsel %vm5223_vm3, %v260_v60, 1.0 }
 0x158   :  { %4651 = vmatpush3.bf16.msra.mxu1 %v5198_v58  ;;  %4350 = vmatprep.mubr.msk.f32.mxu1 %vm5031_vm1, %v5032_v1 }
 0x159   :  { %4655 = vmatprep.subr.bf16.mxu1 %v5030_v0  ;;  %4660 = vmatpush3.bf16.msra.mxu0 %v5127_v5 }
 0x15a   :  { %4661 = vmatprep.subr.bf16.mxu0 %v5030_v0  ;;  %4375 = vmatprep.mubr.msk.f32.mxu0 %vm5031_vm1, %v5032_v1 }
 0x15b   :  { %4351 = vmatmul.mubr.msk.f32.vlgmr.msra.gmra.mrb[2].mxu1 %vm261_vm14, %v260_v60 }
 0x15c   :  { %4364 = vmatprep.mubr.msk.f32.mxu1 %vm5031_vm1, %v5032_v1  ;;  %4657 = vmatpush3.bf16.msra.mxu1 %v5216_v62 }
 0x15d   :  { %4663 = vmatpush3.bf16.msra.mxu0 %v5133_v7  ;;  %4664 = vmatprep.subr.bf16.mxu1 %v5030_v0 }
 0x15e   :  { %4670 = vmatprep.subr.bf16.mxu0 %v5030_v0 }
 0x22a   :  { %v331_v8 = vpop.f32.mrb[0].mxu1  ;;  %v471_v9 = vpop.f32.mrb[2].mxu0 }
 0x22b   :  { %v472_v10 = vadd.f32 %v5221_v4, %v471_v9  ;;  %v4345_v11 = vpop.f32.mrb[1].mxu1  ;;  %v4359_v13 = vpop.f32.mrb[3].mxu0 }
 0x22d   :  { %v479_v16 = vmul.f32 %v477_v15, %v472_v10 }
 0x22e   :  { %v401_v18 = vpop.f32.mrb[2].mxu1 }
 0x22f   :  { %v478_v19 = vmul.f32 %v401_v18, %v331_v8  ;;  %v4352_v20 = vpop.f32.mrb[3].mxu1 }
 0x231   :  { %v480_v21 = vmul.f32 %v479_v16, %v478_v19 }
 0x233   :  { %4365 = vmatmul.mubr.msk.f32.vlgmr.msra.gmra.mrb[4].mxu1 %vm261_vm14, %v480_v21 }
 0x234   :  { %4666 = vmatpush3.bf16.msra.mxu1 %v5150_v12  ;;  %4382 = vmatprep.mubr.msk.f32.mxu1 %vm5031_vm1, %v5032_v1 }
 0x235   :  { %4667 = vmatprep.subr.bf16.mxu1 %v5030_v0 }
 0x306   :  { %v556_v24 = vpop.f32.mrb[4].mxu1 }
 0x307   :  { %v557_v25 = vadd.f32 %v5238_v22, %v556_v24  ;;  %v4366_v26 = vpop.f32.mrb[5].mxu1 }
 0x309   :  { %4837 = vtanh.f32 %v557_v25  ;;  %v4121_v28 = vmul.f32 -1.442695, %v557_v25 }
 0x30b   :  { %4839 = vpow2.f32 %v4121_v28 }
 0x313   :  { %v4838_v27 = vpop.eup %4837 }
 0x314   :  { %569 = vrot.lane.b32.xlu0 %v4838_v27, %s5039_s19 }
 0x315   :  { %v4840_v30 = vpop.eup %4839 }
 0x316   :  { %v563_v32 = vadd.f32 1.0, %v4840_v30 }
 0x318   :  { %4841 = vrcp.f32 %v563_v32 }
 0x322   :  { %v4842_v33 = vpop.eup %4841 }
 0x323   :  { %v567_v39 = vmul.f32 %v4842_v33, %v82_v38 }
 0x386   :  { %v570_v35 = vpop.permute.xlu0 %569 }
 0x387   :  { %v572_v36 = vmul.f32 %v4842_v33, %v570_v35 }
 0x389   :  { %574 = vrot.lane.b32.xlu0 %v572_v36, %s5040_s20 }
 0x3fb   :  { %v575_v41 = vpop.permute.xlu0 %574 }
 0x3fc   :  { %v5243_v42 = vadd.f32 %v575_v41, %v567_v39 }
 0x3fe   :  { %4843 = vtanh.f32 %v5243_v42 }
 0x408   :  { %v4844_v44 = vpop.eup %4843 }
 0x409   :  { %580 = vrot.lane.b32.xlu1 %v4844_v44, %s5039_s19 }
 0x47b   :  { %v581_v45 = vpop.permute.xlu1 %580 }
 0x47c   :  { %v583_v46 = vmul.f32 %v4842_v33, %v581_v45 }
 0x47e   :  { %585 = vrot.lane.b32.xlu1 %v583_v46, %s5039_s19 }
 0x4f0   :  { %v586_v47 = vpop.permute.xlu1 %585 }
 0x4f1   :  { %588 = vst.msk [vmem:[#allocation9] sm:$0xff] %vm56_vm0, %v586_v47  ;;  %4376 = vmatmul.mubr.msk.f32.vlgmr.msra.gmra.mrb[4].mxu0 %vm56_vm0, %v586_v47 }
 0x4f2   :  { %4672 = vmatpush3.bf16.msra.mxu0 %v5155_v14  ;;  %4396 = vmatprep.mubr.msk.f32.mxu0 %vm5031_vm1, %v5032_v1 }
 0x4f3   :  { %4676 = vmatprep.subr.bf16.mxu0 %v5030_v0 }
 0x5c4   :  { %v659_v49 = vpop.f32.mrb[4].mxu0 }
 0x5c5   :  { %v5254_v50 = vadd.f32 %v659_v49, %v590_v48  ;;  %v4377_v51 = vpop.f32.mrb[5].mxu0 }
 0x5c7   :  { %v666_v52 = vand.u32 2139095040, %v5254_v50  ;;  %v663_v23 = vand.u32 2147483647, %v5254_v50  ;;  %vm665_vm11 = vcmp.lt.s32.totalorder %v5254_v50, 0 }
 0x5c9   :  { %v667_v53 = vshrl.u32 %v666_v52, 23  ;;  %v670_v59 = vand.u32 8388607, %v663_v23  ;;  %vm664_vm12 = vcmp.le.f32.partialorder %v663_v23, 0.7853982 }
 0x5cb   :  { %v4123_v54 = vadd.s32 4294967169, %v667_v53  ;;  %v671_v16 = vor.u32 8388608, %v670_v59 }
 0x5cd   :  { %v673_v55 = vadd.s32 1, %v4123_v54  ;;  %v711_v36 = vshll.u32 %v671_v16, 8 }
 0x5cf   :  { %vm674_vm4 = vcmp.gt.s32.totalorder %v673_v55, 0 }
 0x5d0   :  { %v675_v56 = vsel %vm674_vm4, %v673_v55, 0  ;;  %vm755_vm4 = vweird.f32 %v5254_v50 }
 0x5d1   :  { %v677_v57 = vand.u32 31, %v675_v56  ;;  %v676_v17 = vshrl.u32 %v675_v56, 5 }
 0x5d3   :  { %v678_v60 = vsub.s32 32, %v677_v57  ;;  %v680_v61 = vshll.u32 %v5033_v29, %v677_v57  ;;  %v683_v63 = vshll.u32 %v5034_v31, %v677_v57  ;;  %v686_v8 = vshll.u32 %v5035_v34, %v677_v57 }
 0x5d4   :  { %v689_v10 = vshll.u32 %v5036_v37, %v677_v57  ;;  %v692_v13 = vshll.u32 %v5037_v40, %v677_v57  ;;  %vm695_vm5 = vcmp.lt.s32.totalorder %v676_v17, 1  ;;  %vm698_vm6 = vcmp.lt.s32.totalorder %v676_v17, 4 }
 0x5d5   :  { %v681_v2 = vshrl.u32 %v5034_v31, %v678_v60  ;;  %v684_v3 = vshrl.u32 %v5035_v34, %v678_v60  ;;  %v687_v9 = vshrl.u32 %v5036_v37, %v678_v60  ;;  %v690_v11 = vshrl.u32 %v5037_v40, %v678_v60 }
 0x5d6   :  { %v693_v15 = vshrl.u32 %v5038_v43, %v678_v60  ;;  %v679_v28 = vshrl.u32 %v5033_v29, %v678_v60  ;;  %vm697_vm7 = vcmp.lt.s32.totalorder %v676_v17, 3  ;;  %vm696_vm8 = vcmp.lt.s32.totalorder %v676_v17, 2 }
 0x5d7   :  { %v682_v18 = vor.u32 %v681_v2, %v680_v61  ;;  %v685_v19 = vor.u32 %v684_v3, %v683_v63  ;;  %v688_v20 = vor.u32 %v687_v9, %v686_v8  ;;  %v691_v21 = vor.u32 %v690_v11, %v689_v10 }
 0x5d8   :  { %v694_v24 = vor.u32 %v693_v15, %v692_v13 }
 0x5d9   :  { %v700_v25 = vsel %vm698_vm6, %v688_v20, 2102212464  ;;  %v703_v26 = vsel %vm695_vm5, %v682_v18, %v685_v19  ;;  %v707_v27 = vsel %vm695_vm5, %v685_v19, %v688_v20  ;;  %v704_v30 = vsel %vm698_vm6, %v691_v21, 920167782 }
 0x5da   :  { %v708_v32 = vsel %vm698_vm6, %v694_v24, 1326507024  ;;  %v705_v33 = vsel %vm697_vm7, %v688_v20, %v704_v30  ;;  %v699_v38 = vsel %vm695_vm5, %v679_v28, %v682_v18  ;;  %v701_v39 = vsel %vm697_vm7, %v685_v19, %v700_v25 }
 0x5db   :  { %v709_v35 = vsel %vm697_vm7, %v691_v21, %v708_v32  ;;  %v706_v41 = vsel %vm696_vm8, %v703_v26, %v705_v33  ;;  %v702_v49 = vsel %vm696_vm8, %v699_v38, %v701_v39 }
 0x5dc   :  { %v710_v44 = vsel %vm696_vm8, %v707_v27, %v709_v35  ;;  %v5274_v47 = vmul.u32.u64.low %v711_v36, %v706_v41  ;;  %v5275_v48 = vmul.u32.u64.high %v711_v36, %v706_v41, %v5274_v47  ;;  %v718_v52 = vmul.u32 %v711_v36, %v702_v49 }
 0x5dd   :  { %v5271_v45 = vmul.u32.u64.low %v711_v36, %v710_v44  ;;  %v5272_v46 = vmul.u32.u64.high %v711_v36, %v710_v44, %v5271_v45 }
 0x5de   :  { %v721_v51 = vadd.s32 1, %v5275_v48 }
 0x5df   :  { %vm720_vm9 = vc.u32 %v5272_v46, %v5274_v47  ;;  %v719_v3 = vadd.s32 %v5274_v47, %v5272_v46 }
 0x5e0   :  { %v722_v53 = vsel %vm720_vm9, %v721_v51, %v5275_v48 }
 0x5e1   :  { %v723_v54 = vadd.s32 %v722_v53, %v718_v52 }
 0x5e3   :  { %v724_v55 = vadd.s32 536870912, %v723_v54 }
 0x5e5   :  { %v725_v56 = vshrl.u32 %v724_v55, 30 }
 0x5e7   :  { %v726_v57 = vshll.u32 %v725_v56, 30  ;;  %v749_v26 = vsub.s32 4, %v725_v56 }
 0x5e9   :  { %v727_v59 = vsub.s32 %v723_v54, %v726_v57  ;;  %v750_v28 = vsel %vm665_vm11, %v749_v26, %v725_v56 }
 0x5ea   :  { %v752_v30 = vsel %vm664_vm12, 0, %v750_v28 }
 0x5eb   :  { %v729_v60 = vsub.s32 0, %v727_v59  ;;  %v756_v32 = vand.u32 3, %v752_v30 }
 0x5ed   :  { %v4124_v17 = vmin.u32 %v729_v60, %v727_v59  ;;  %vm761_vm13 = vcmp.eq.s32.totalorder %v756_v32, 2  ;;  %vm758_vm15 = vcmp.eq.s32.totalorder %v756_v32, 0  ;;  %vm757_vm2 = vcmp.lt.s32.totalorder %v756_v32, 2 }
 0x5ef   :  { %v731_v61 = vclz %v4124_v17 }
 0x5f1   :  { %v4125_v63 = vadd.s32 4294967294, %v731_v61 }
 0x5f3   :  { %vm4126_vm10 = vcmp.lt.s32.totalorder %v4125_v63, 0 }
 0x5f4   :  { %v734_v2 = vsel %vm4126_vm10, 0, %v4125_v63 }
 0x5f5   :  { %v735_v8 = vsub.s32 32, %v734_v2  ;;  %v739_v9 = vsub.s32 4294967266, %v734_v2  ;;  %v736_v10 = vshll.u32 %v727_v59, %v734_v2 }
 0x5f7   :  { %v737_v11 = vshrl.u32 %v719_v3, %v735_v8  ;;  %v740_v13 = vadd.s32 127, %v739_v9 }
 0x5f9   :  { %v738_v15 = vor.u32 %v737_v11, %v736_v10  ;;  %v741_v16 = vshll.u32 %v740_v13, 23 }
 0x5fb   :  { %v742_v18 = vor.u32 4788187, %v741_v16  ;;  %v745_v20 = vcvt.s32.f32 %v738_v15 }
 0x5fd   :  { %v743_v19 = vand.u32 2147483647, %v742_v18 }
 0x5ff   :  { %v746_v21 = vmul.f32 %v745_v20, %v743_v19 }
 0x601   :  { %v747_v24 = vxor.u32 2147483648, %v746_v21 }
 0x603   :  { %v748_v25 = vsel %vm665_vm11, %v747_v24, %v746_v21 }
 0x604   :  { %v751_v27 = vsel %vm664_vm12, %v5254_v50, %v748_v25 }
 0x605   :  { %4845 = vcosq.f32 %v751_v27 }
 0x606   :  { %4847 = vsinq.f32 %v751_v27 }
 0x60f   :  { %v4846_v33 = vpop.eup %4845 }
 0x610   :  { %v4848_v35 = vpop.eup %4847  ;;  %v762_v36 = vxor.u32 2147483648, %v4846_v33 }
 0x611   :  { %v759_v38 = vxor.u32 2147483648, %v4848_v35 }
 0x612   :  { %v763_v39 = vsel %vm761_vm13, %v762_v36, %v4848_v35 }
 0x613   :  { %v760_v41 = vsel %vm758_vm15, %v4846_v33, %v759_v38 }
 0x614   :  { %v764_v23 = vsel %vm757_vm2, %v760_v41, %v763_v39 }
 0x615   :  { %v765_v44 = vsel %vm755_vm4, nan, %v764_v23 }
 0x616   :  { %4383 = vmatmul.mubr.msk.f32.vlgmr.msra.gmra.mrb[6].mxu1 %vm261_vm14, %v765_v44  ;;  %4397 = vmatmul.mubr.msk.f32.vlgmr.msra.gmra.mrb[6].mxu0 %vm261_vm14, %v765_v44  ;;  %v979_v49 = vsel %vm5223_vm3, %v765_v44, 1.0 }
 0x617   :  { %4669 = vmatpush3.bf16.msra.mxu1 %v5198_v58  ;;  %4389 = vmatprep.mubr.msk.f32.mxu1 %vm5031_vm1, %v5032_v1 }
 0x618   :  { %4673 = vmatprep.subr.bf16.mxu1 %v5030_v0  ;;  %4678 = vmatpush3.bf16.msra.mxu0 %v5127_v5 }
 0x619   :  { %4679 = vmatprep.subr.bf16.mxu0 %v5030_v0  ;;  %4414 = vmatprep.mubr.msk.f32.mxu0 %vm5031_vm1, %v5032_v1 }
 0x61a   :  { %4390 = vmatmul.mubr.msk.f32.vlgmr.msra.gmra.mrb[8].mxu1 %vm261_vm14, %v765_v44 }
 0x61b   :  { %4675 = vmatpush3.bf16.msra.mxu1 %v5216_v62  ;;  %4403 = vmatprep.mubr.msk.f32.mxu1 %vm5031_vm1, %v5032_v1 }
 0x61c   :  { %4681 = vmatpush3.bf16.msra.mxu0 %v5133_v7  ;;  %4682 = vmatprep.subr.bf16.mxu1 %v5030_v0 }
 0x61d   :  { %4688 = vmatprep.subr.bf16.mxu0 %v5030_v0 }
 0x6e9   :  { %v835_v50 = vpop.f32.mrb[6].mxu1  ;;  %v975_v45 = vpop.f32.mrb[6].mxu0 }
 0x6ea   :  { %v976_v46 = vadd.f32 %v5221_v4, %v975_v45  ;;  %v4384_v47 = vpop.f32.mrb[7].mxu1  ;;  %v4398_v48 = vpop.f32.mrb[7].mxu0 }
 0x6ec   :  { %v981_v51 = vmul.f32 %v979_v49, %v976_v46 }
 0x6ed   :  { %v905_v52 = vpop.f32.mrb[8].mxu1 }
 0x6ee   :  { %v980_v53 = vmul.f32 %v905_v52, %v835_v50  ;;  %v4391_v54 = vpop.f32.mrb[9].mxu1 }
 0x6f0   :  { %v982_v55 = vmul.f32 %v981_v51, %v980_v53 }
 0x6f2   :  { %4404 = vmatmul.mubr.msk.f32.vlgmr.msra.gmra.mrb[10].mxu1 %vm261_vm14, %v982_v55 }
 0x6f3   :  { %4684 = vmatpush3.bf16.msra.mxu1 %v5150_v12  ;;  %4421 = vmatprep.mubr.msk.f32.mxu1 %vm5031_vm1, %v5032_v1 }
 0x6f4   :  { %4685 = vmatprep.subr.bf16.mxu1 %v5030_v0 }
 0x7c5   :  { %v1052_v56 = vpop.f32.mrb[10].mxu1 }
 0x7c6   :  { %v1053_v57 = vadd.f32 %v5238_v22, %v1052_v56  ;;  %v4405_v59 = vpop.f32.mrb[11].mxu1 }
 0x7c8   :  { %4849 = vtanh.f32 %v1053_v57  ;;  %v4131_v17 = vmul.f32 -1.442695, %v1053_v57 }
 0x7ca   :  { %4851 = vpow2.f32 %v4131_v17 }
 0x7d2   :  { %v4850_v60 = vpop.eup %4849 }
 0x7d3   :  { %1065 = vrot.lane.b32.xlu0 %v4850_v60, %s5039_s19 }
 0x7d4   :  { %v4852_v61 = vpop.eup %4851 }
 0x7d5   :  { %v1059_v63 = vadd.f32 1.0, %v4852_v61 }
 0x7d7   :  { %4853 = vrcp.f32 %v1059_v63 }
 0x7e1   :  { %v4854_v2 = vpop.eup %4853 }
 0x7e2   :  { %v1063_v9 = vmul.f32 %v4854_v2, %v5243_v42  ;;  %v1087_v42 = vld [vmem:[#allocation4 + $0x10] sm:$0xff] }
 0x845   :  { %v1066_v3 = vpop.permute.xlu0 %1065 }
 0x846   :  { %v1068_v8 = vmul.f32 %v4854_v2, %v1066_v3 }
 0x848   :  { %1070 = vrot.lane.b32.xlu1 %v1068_v8, %s5040_s20 }
 0x8ba   :  { %v1071_v10 = vpop.permute.xlu1 %1070 }
 0x8bb   :  { %v5315_v11 = vadd.f32 %v1071_v10, %v1063_v9 }
 0x8bd   :  { %4855 = vtanh.f32 %v5315_v11 }
 0x8c7   :  { %v4856_v13 = vpop.eup %4855 }
 0x8c8   :  { %1076 = vrot.lane.b32.xlu0 %v4856_v13, %s5039_s19 }
 0x93a   :  { %v1077_v15 = vpop.permute.xlu0 %1076 }
 0x93b   :  { %v1079_v16 = vmul.f32 %v4854_v2, %v1077_v15 }
 0x93d   :  { %1081 = vrot.lane.b32.xlu1 %v1079_v16, %s5039_s19 }
 0x9af   :  { %v1082_v18 = vpop.permute.xlu1 %1081 }
 0x9b0   :  { %1085 = vst.msk [vmem:[#allocation9 + $0x8] sm:$0xff] %vm56_vm0, %v1082_v18  ;;  %4415 = vmatmul.mubr.msk.f32.vlgmr.msra.gmra.mrb[8].mxu0 %vm56_vm0, %v1082_v18 }
 0x9b1   :  { %4690 = vmatpush3.bf16.msra.mxu0 %v5155_v14  ;;  %4435 = vmatprep.mubr.msk.f32.mxu0 %vm5031_vm1, %v5032_v1 }
 0x9b2   :  { %4694 = vmatprep.subr.bf16.mxu0 %v5030_v0 }
 0xa83   :  { %v1156_v19 = vpop.f32.mrb[8].mxu0 }
 0xa84   :  { %v5326_v20 = vadd.f32 %v1156_v19, %v1087_v42  ;;  %v4416_v21 = vpop.f32.mrb[9].mxu0 }
 0xa86   :  { %v1163_v24 = vand.u32 2139095040, %v5326_v20  ;;  %v1160_v28 = vand.u32 2147483647, %v5326_v20  ;;  %vm1162_vm12 = vcmp.lt.s32.totalorder %v5326_v20, 0 }
 0xa88   :  { %v1164_v25 = vshrl.u32 %v1163_v24, 23  ;;  %v1167_v33 = vand.u32 8388607, %v1160_v28  ;;  %vm1161_vm13 = vcmp.le.f32.partialorder %v1160_v28, 0.7853982 }
 0xa8a   :  { %v4133_v26 = vadd.s32 4294967169, %v1164_v25  ;;  %v1168_v49 = vor.u32 8388608, %v1167_v33 }
 0xa8c   :  { %v1170_v27 = vadd.s32 1, %v4133_v26  ;;  %v1208_v3 = vshll.u32 %v1168_v49, 8 }
 0xa8e   :  { %vm1171_vm5 = vcmp.gt.s32.totalorder %v1170_v27, 0 }
 0xa8f   :  { %v1172_v30 = vsel %vm1171_vm5, %v1170_v27, 0  ;;  %vm1252_vm5 = vweird.f32 %v5326_v20 }
 0xa90   :  { %v1174_v32 = vand.u32 31, %v1172_v30  ;;  %v1173_v36 = vshrl.u32 %v1172_v30, 5 }
 0xa92   :  { %v1175_v35 = vsub.s32 32, %v1174_v32  ;;  %v1177_v38 = vshll.u32 %v5033_v29, %v1174_v32  ;;  %v1180_v39 = vshll.u32 %v5034_v31, %v1174_v32  ;;  %v1183_v44 = vshll.u32 %v5035_v34, %v1174_v32 }
 0xa93   :  { %v1186_v45 = vshll.u32 %v5036_v37, %v1174_v32  ;;  %v1189_v47 = vshll.u32 %v5037_v40, %v1174_v32  ;;  %vm1192_vm6 = vcmp.lt.s32.totalorder %v1173_v36, 1  ;;  %vm1195_vm7 = vcmp.lt.s32.totalorder %v1173_v36, 4 }
 0xa94   :  { %v1178_v41 = vshrl.u32 %v5034_v31, %v1175_v35  ;;  %v1181_v23 = vshrl.u32 %v5035_v34, %v1175_v35  ;;  %v1184_v50 = vshrl.u32 %v5036_v37, %v1175_v35  ;;  %v1187_v46 = vshrl.u32 %v5037_v40, %v1175_v35 }
 0xa95   :  { %v1190_v48 = vshrl.u32 %v5038_v43, %v1175_v35  ;;  %v1176_v60 = vshrl.u32 %v5033_v29, %v1175_v35  ;;  %vm1194_vm8 = vcmp.lt.s32.totalorder %v1173_v36, 3  ;;  %vm1193_vm9 = vcmp.lt.s32.totalorder %v1173_v36, 2 }
 0xa96   :  { %v1179_v51 = vor.u32 %v1178_v41, %v1177_v38  ;;  %v1182_v52 = vor.u32 %v1181_v23, %v1180_v39  ;;  %v1185_v53 = vor.u32 %v1184_v50, %v1183_v44  ;;  %v1188_v54 = vor.u32 %v1187_v46, %v1186_v45 }
 0xa97   :  { %v1191_v55 = vor.u32 %v1190_v48, %v1189_v47 }
 0xa98   :  { %v1197_v56 = vsel %vm1195_vm7, %v1185_v53, 2102212464  ;;  %v1200_v57 = vsel %vm1192_vm6, %v1179_v51, %v1182_v52  ;;  %v1204_v59 = vsel %vm1192_vm6, %v1182_v52, %v1185_v53  ;;  %v1201_v17 = vsel %vm1195_vm7, %v1188_v54, 920167782 }
 0xa99   :  { %v1205_v61 = vsel %vm1195_vm7, %v1191_v55, 1326507024  ;;  %v1202_v63 = vsel %vm1194_vm8, %v1185_v53, %v1201_v17  ;;  %v1196_v8 = vsel %vm1192_vm6, %v1176_v60, %v1179_v51  ;;  %v1198_v9 = vsel %vm1194_vm8, %v1182_v52, %v1197_v56 }
 0xa9a   :  { %v1206_v2 = vsel %vm1194_vm8, %v1188_v54, %v1205_v61  ;;  %v1203_v10 = vsel %vm1193_vm9, %v1200_v57, %v1202_v63  ;;  %v1199_v19 = vsel %vm1193_vm9, %v1196_v8, %v1198_v9 }
 0xa9b   :  { %v1207_v13 = vsel %vm1193_vm9, %v1204_v59, %v1206_v2  ;;  %v5346_v18 = vmul.u32.u64.low %v1208_v3, %v1203_v10  ;;  %v5347_v42 = vmul.u32.u64.high %v1208_v3, %v1203_v10, %v5346_v18  ;;  %v1215_v24 = vmul.u32 %v1208_v3, %v1199_v19 }
 0xa9c   :  { %v5343_v15 = vmul.u32.u64.low %v1208_v3, %v1207_v13  ;;  %v5344_v16 = vmul.u32.u64.high %v1208_v3, %v1207_v13, %v5343_v15 }
 0xa9d   :  { %v1218_v21 = vadd.s32 1, %v5347_v42 }
 0xa9e   :  { %vm1217_vm10 = vc.u32 %v5344_v16, %v5346_v18  ;;  %v1216_v23 = vadd.s32 %v5346_v18, %v5344_v16 }
 0xa9f   :  { %v1219_v25 = vsel %vm1217_vm10, %v1218_v21, %v5347_v42 }
 0xaa0   :  { %v1220_v26 = vadd.s32 %v1219_v25, %v1215_v24 }
 0xaa2   :  { %v1221_v27 = vadd.s32 536870912, %v1220_v26 }
 0xaa4   :  { %v1222_v30 = vshrl.u32 %v1221_v27, 30 }
 0xaa6   :  { %v1223_v32 = vshll.u32 %v1222_v30, 30  ;;  %v1246_v57 = vsub.s32 4, %v1222_v30 }
 0xaa8   :  { %v1224_v33 = vsub.s32 %v1220_v26, %v1223_v32  ;;  %v1247_v60 = vsel %vm1162_vm12, %v1246_v57, %v1222_v30 }
 0xaa9   :  { %v1249_v17 = vsel %vm1161_vm13, 0, %v1247_v60 }
 0xaaa   :  { %v1226_v35 = vsub.s32 0, %v1224_v33  ;;  %v1253_v61 = vand.u32 3, %v1249_v17 }
 0xaac   :  { %v4134_v36 = vmin.u32 %v1226_v35, %v1224_v33  ;;  %vm1258_vm15 = vcmp.eq.s32.totalorder %v1253_v61, 2  ;;  %vm1255_vm2 = vcmp.eq.s32.totalorder %v1253_v61, 0  ;;  %vm1254_vm4 = vcmp.lt.s32.totalorder %v1253_v61, 2 }
 0xaae   :  { %v1228_v38 = vclz %v4134_v36 }
 0xab0   :  { %v4135_v39 = vadd.s32 4294967294, %v1228_v38 }
 0xab2   :  { %vm4136_vm11 = vcmp.lt.s32.totalorder %v4135_v39, 0 }
 0xab3   :  { %v1231_v41 = vsel %vm4136_vm11, 0, %v4135_v39 }
 0xab4   :  { %v1232_v44 = vsub.s32 32, %v1231_v41  ;;  %v1236_v50 = vsub.s32 4294967266, %v1231_v41  ;;  %v1233_v45 = vshll.u32 %v1224_v33, %v1231_v41 }
 0xab6   :  { %v1234_v46 = vshrl.u32 %v1216_v23, %v1232_v44  ;;  %v1237_v47 = vadd.s32 127, %v1236_v50 }
 0xab8   :  { %v1235_v48 = vor.u32 %v1234_v46, %v1233_v45  ;;  %v1238_v49 = vshll.u32 %v1237_v47, 23 }
 0xaba   :  { %v1239_v51 = vor.u32 4788187, %v1238_v49  ;;  %v1242_v53 = vcvt.s32.f32 %v1235_v48 }
 0xabc   :  { %v1240_v52 = vand.u32 2147483647, %v1239_v51 }
 0xabe   :  { %v1243_v54 = vmul.f32 %v1242_v53, %v1240_v52 }
 0xac0   :  { %v1244_v55 = vxor.u32 2147483648, %v1243_v54 }
 0xac2   :  { %v1245_v56 = vsel %vm1162_vm12, %v1244_v55, %v1243_v54 }
 0xac3   :  { %v1248_v59 = vsel %vm1161_vm13, %v5326_v20, %v1245_v56 }
 0xac4   :  { %4857 = vcosq.f32 %v1248_v59 }
 0xac5   :  { %4859 = vsinq.f32 %v1248_v59 }
 0xace   :  { %v4858_v63 = vpop.eup %4857 }
 0xacf   :  { %v4860_v2 = vpop.eup %4859  ;;  %v1259_v3 = vxor.u32 2147483648, %v4858_v63 }
 0xad0   :  { %v1256_v8 = vxor.u32 2147483648, %v4860_v2 }
 0xad1   :  { %v1260_v9 = vsel %vm1258_vm15, %v1259_v3, %v4860_v2 }
 0xad2   :  { %v1257_v10 = vsel %vm1255_vm2, %v4858_v63, %v1256_v8 }
 0xad3   :  { %v1261_v28 = vsel %vm1254_vm4, %v1257_v10, %v1260_v9 }
 0xad4   :  { %v1262_v13 = vsel %vm1252_vm5, nan, %v1261_v28 }
 0xad5   :  { %4422 = vmatmul.mubr.msk.f32.vlgmr.msra.gmra.mrb[12].mxu1 %vm261_vm14, %v1262_v13  ;;  %4436 = vmatmul.mubr.msk.f32.vlgmr.msra.gmra.mrb[10].mxu0 %vm261_vm14, %v1262_v13  ;;  %v1476_v19 = vsel %vm5223_vm3, %v1262_v13, 1.0 }
 0xad6   :  { %4687 = vmatpush3.bf16.msra.mxu1 %v5198_v58  ;;  %4428 = vmatprep.mubr.msk.f32.mxu1 %vm5031_vm1, %v5032_v1 }
 0xad7   :  { %4691 = vmatprep.subr.bf16.mxu1 %v5030_v0  ;;  %4696 = vmatpush3.bf16.msra.mxu0 %v5127_v5 }
 0xad8   :  { %4697 = vmatprep.subr.bf16.mxu0 %v5030_v0  ;;  %4453 = vmatprep.mubr.msk.f32.mxu0 %vm5031_vm1, %v5032_v1 }
 0xad9   :  { %4429 = vmatmul.mubr.msk.f32.vlgmr.msra.gmra.mrb[14].mxu1 %vm261_vm14, %v1262_v13 }
 0xada   :  { %4693 = vmatpush3.bf16.msra.mxu1 %v5216_v62  ;;  %4442 = vmatprep.mubr.msk.f32.mxu1 %vm5031_vm1, %v5032_v1 }
 0xadb   :  { %4699 = vmatpush3.bf16.msra.mxu0 %v5133_v7  ;;  %4700 = vmatprep.subr.bf16.mxu1 %v5030_v0 }
 0xadc   :  { %4706 = vmatprep.subr.bf16.mxu0 %v5030_v0 }
 0xba8   :  { %v1332_v20 = vpop.f32.mrb[12].mxu1  ;;  %v1472_v15 = vpop.f32.mrb[10].mxu0 }
 0xba9   :  { %v1473_v16 = vadd.f32 %v5221_v4, %v1472_v15  ;;  %v4423_v18 = vpop.f32.mrb[13].mxu1  ;;  %v4437_v42 = vpop.f32.mrb[11].mxu0 }
 0xbab   :  { %v1478_v21 = vmul.f32 %v1476_v19, %v1473_v16 }
 0xbac   :  { %v1402_v24 = vpop.f32.mrb[14].mxu1 }
 0xbad   :  { %v1477_v25 = vmul.f32 %v1402_v24, %v1332_v20  ;;  %v4430_v26 = vpop.f32.mrb[15].mxu1 }
 0xbaf   :  { %v1479_v27 = vmul.f32 %v1478_v21, %v1477_v25 }
 0xbb1   :  { %4443 = vmatmul.mubr.msk.f32.vlgmr.msra.gmra.mrb[16].mxu1 %vm261_vm14, %v1479_v27 }
 0xbb2   :  { %4702 = vmatpush3.bf16.msra.mxu1 %v5150_v12  ;;  %4460 = vmatprep.mubr.msk.f32.mxu1 %vm5031_vm1, %v5032_v1 }
 0xbb3   :  { %4703 = vmatprep.subr.bf16.mxu1 %v5030_v0 }
 0xc84   :  { %v1549_v30 = vpop.f32.mrb[16].mxu1 }
 0xc85   :  { %v1550_v32 = vadd.f32 %v5238_v22, %v1549_v30  ;;  %v4444_v33 = vpop.f32.mrb[17].mxu1 }
 0xc87   :  { %4861 = vtanh.f32 %v1550_v32  ;;  %v4141_v36 = vmul.f32 -1.442695, %v1550_v32 }
 0xc89   :  { %4863 = vpow2.f32 %v4141_v36 }
 0xc91   :  { %v4862_v35 = vpop.eup %4861 }
 0xc92   :  { %1562 = vrot.lane.b32.xlu0 %v4862_v35, %s5039_s19 }
 0xc93   :  { %v4864_v38 = vpop.eup %4863 }
 0xc94   :  { %v1556_v39 = vadd.f32 1.0, %v4864_v38 }
 0xc96   :  { %4865 = vrcp.f32 %v1556_v39 }
 0xca0   :  { %v4866_v41 = vpop.eup %4865 }
 0xca1   :  { %v1560_v50 = vmul.f32 %v4866_v41, %v5315_v11  ;;  %v1584_v11 = vld [vmem:[#allocation4 + $0x18] sm:$0xff] }
 0xd04   :  { %v1563_v23 = vpop.permute.xlu0 %1562 }
 0xd05   :  { %v1565_v44 = vmul.f32 %v4866_v41, %v1563_v23 }
 0xd07   :  { %1567 = vrot.lane.b32.xlu1 %v1565_v44, %s5040_s20 }
 0xd79   :  { %v1568_v45 = vpop.permute.xlu1 %1567 }
 0xd7a   :  { %v5387_v46 = vadd.f32 %v1568_v45, %v1560_v50 }
 0xd7c   :  { %4867 = vtanh.f32 %v5387_v46 }
 0xd86   :  { %v4868_v47 = vpop.eup %4867 }
 0xd87   :  { %1573 = vrot.lane.b32.xlu0 %v4868_v47, %s5039_s19 }
 0xdf9   :  { %v1574_v48 = vpop.permute.xlu0 %1573 }
 0xdfa   :  { %v1576_v49 = vmul.f32 %v4866_v41, %v1574_v48 }
 0xdfc   :  { %1578 = vrot.lane.b32.xlu1 %v1576_v49, %s5039_s19 }
 0xe6e   :  { %v1579_v51 = vpop.permute.xlu1 %1578 }
 0xe6f   :  { %1582 = vst.msk [vmem:[#allocation9 + $0x10] sm:$0xff] %vm56_vm0, %v1579_v51  ;;  %4454 = vmatmul.mubr.msk.f32.vlgmr.msra.gmra.mrb[12].mxu0 %vm56_vm0, %v1579_v51 }
 0xe70   :  { %4708 = vmatpush3.bf16.msra.mxu0 %v5155_v14  ;;  %4474 = vmatprep.mubr.msk.f32.mxu0 %vm5031_vm1, %v5032_v1 }
 0xe71   :  { %4712 = vmatprep.subr.bf16.mxu0 %v5030_v0 }
 0xf42   :  { %v1653_v52 = vpop.f32.mrb[12].mxu0 }
 0xf43   :  { %v5398_v53 = vadd.f32 %v1653_v52, %v1584_v11  ;;  %v4455_v54 = vpop.f32.mrb[13].mxu0 }
 0xf45   :  { %v1660_v55 = vand.u32 2139095040, %v5398_v53  ;;  %v1657_v60 = vand.u32 2147483647, %v5398_v53  ;;  %vm1659_vm13 = vcmp.lt.s32.totalorder %v5398_v53, 0 }
 0xf47   :  { %v1661_v56 = vshrl.u32 %v1660_v55, 23  ;;  %v1664_v63 = vand.u32 8388607, %v1657_v60  ;;  %vm1658_vm15 = vcmp.le.f32.partialorder %v1657_v60, 0.7853982 }
 0xf49   :  { %v4143_v57 = vadd.s32 4294967169, %v1661_v56  ;;  %v1665_v19 = vor.u32 8388608, %v1664_v63 }
 0xf4b   :  { %v1667_v59 = vadd.s32 1, %v4143_v57  ;;  %v1705_v23 = vshll.u32 %v1665_v19, 8 }
 0xf4d   :  { %vm1668_vm6 = vcmp.gt.s32.totalorder %v1667_v59, 0 }
 0xf4e   :  { %v1669_v17 = vsel %vm1668_vm6, %v1667_v59, 0  ;;  %vm1749_vm6 = vweird.f32 %v5398_v53 }
 0xf4f   :  { %v1671_v61 = vand.u32 31, %v1669_v17  ;;  %v1670_v3 = vshrl.u32 %v1669_v17, 5 }
 0xf51   :  { %v1672_v2 = vsub.s32 32, %v1671_v61  ;;  %v1674_v8 = vshll.u32 %v5033_v29, %v1671_v61  ;;  %v1677_v9 = vshll.u32 %v5034_v31, %v1671_v61  ;;  %v1680_v13 = vshll.u32 %v5035_v34, %v1671_v61 }
 0xf52   :  { %v1683_v15 = vshll.u32 %v5036_v37, %v1671_v61  ;;  %v1686_v18 = vshll.u32 %v5037_v40, %v1671_v61  ;;  %vm1689_vm7 = vcmp.lt.s32.totalorder %v1670_v3, 1  ;;  %vm1692_vm8 = vcmp.lt.s32.totalorder %v1670_v3, 4 }
 0xf53   :  { %v1675_v10 = vshrl.u32 %v5034_v31, %v1672_v2  ;;  %v1678_v28 = vshrl.u32 %v5035_v34, %v1672_v2  ;;  %v1681_v20 = vshrl.u32 %v5036_v37, %v1672_v2  ;;  %v1684_v16 = vshrl.u32 %v5037_v40, %v1672_v2 }
 0xf54   :  { %v1687_v42 = vshrl.u32 %v5038_v43, %v1672_v2  ;;  %v1673_v35 = vshrl.u32 %v5033_v29, %v1672_v2  ;;  %vm1691_vm9 = vcmp.lt.s32.totalorder %v1670_v3, 3  ;;  %vm1690_vm10 = vcmp.lt.s32.totalorder %v1670_v3, 2 }
 0xf55   :  { %v1676_v21 = vor.u32 %v1675_v10, %v1674_v8  ;;  %v1679_v24 = vor.u32 %v1678_v28, %v1677_v9  ;;  %v1682_v25 = vor.u32 %v1681_v20, %v1680_v13  ;;  %v1685_v26 = vor.u32 %v1684_v16, %v1683_v15 }
 0xf56   :  { %v1688_v27 = vor.u32 %v1687_v42, %v1686_v18 }
 0xf57   :  { %v1694_v30 = vsel %vm1692_vm8, %v1682_v25, 2102212464  ;;  %v1697_v32 = vsel %vm1689_vm7, %v1676_v21, %v1679_v24  ;;  %v1701_v33 = vsel %vm1689_vm7, %v1679_v24, %v1682_v25  ;;  %v1698_v36 = vsel %vm1692_vm8, %v1685_v26, 920167782 }
 0xf58   :  { %v1702_v38 = vsel %vm1692_vm8, %v1688_v27, 1326507024  ;;  %v1699_v39 = vsel %vm1691_vm9, %v1682_v25, %v1698_v36  ;;  %v1693_v44 = vsel %vm1689_vm7, %v1673_v35, %v1676_v21  ;;  %v1695_v50 = vsel %vm1691_vm9, %v1679_v24, %v1694_v30 }
 0xf59   :  { %v1703_v41 = vsel %vm1691_vm9, %v1685_v26, %v1702_v38  ;;  %v1700_v45 = vsel %vm1690_vm10, %v1697_v32, %v1699_v39  ;;  %v1696_v52 = vsel %vm1690_vm10, %v1693_v44, %v1695_v50 }
 0xf5a   :  { %v1704_v47 = vsel %vm1690_vm10, %v1701_v33, %v1703_v41  ;;  %v5418_v51 = vmul.u32.u64.low %v1705_v23, %v1700_v45  ;;  %v5419_v11 = vmul.u32.u64.high %v1705_v23, %v1700_v45, %v5418_v51  ;;  %v1712_v55 = vmul.u32 %v1705_v23, %v1696_v52 }
 0xf5b   :  { %v5415_v48 = vmul.u32.u64.low %v1705_v23, %v1704_v47  ;;  %v5416_v49 = vmul.u32.u64.high %v1705_v23, %v1704_v47, %v5415_v48 }
 0xf5c   :  { %v1715_v54 = vadd.s32 1, %v5419_v11 }
 0xf5d   :  { %vm1714_vm11 = vc.u32 %v5416_v49, %v5418_v51  ;;  %v1713_v28 = vadd.s32 %v5418_v51, %v5416_v49 }
 0xf5e   :  { %v1716_v56 = vsel %vm1714_vm11, %v1715_v54, %v5419_v11 }
 0xf5f   :  { %v1717_v57 = vadd.s32 %v1716_v56, %v1712_v55 }
 0xf61   :  { %v1718_v59 = vadd.s32 536870912, %v1717_v57 }
 0xf63   :  { %v1719_v17 = vshrl.u32 %v1718_v59, 30 }
 0xf65   :  { %v1720_v61 = vshll.u32 %v1719_v17, 30  ;;  %v1743_v32 = vsub.s32 4, %v1719_v17 }
 0xf67   :  { %v1721_v63 = vsub.s32 %v1717_v57, %v1720_v61  ;;  %v1744_v35 = vsel %vm1659_vm13, %v1743_v32, %v1719_v17 }
 0xf68   :  { %v1746_v36 = vsel %vm1658_vm15, 0, %v1744_v35 }
 0xf69   :  { %v1723_v2 = vsub.s32 0, %v1721_v63  ;;  %v1750_v38 = vand.u32 3, %v1746_v36 }
 0xf6b   :  { %v4144_v3 = vmin.u32 %v1723_v2, %v1721_v63  ;;  %vm1755_vm2 = vcmp.eq.s32.totalorder %v1750_v38, 2  ;;  %vm1752_vm4 = vcmp.eq.s32.totalorder %v1750_v38, 0  ;;  %vm1751_vm5 = vcmp.lt.s32.totalorder %v1750_v38, 2 }
 0xf6d   :  { %v1725_v8 = vclz %v4144_v3 }
 0xf6f   :  { %v4145_v9 = vadd.s32 4294967294, %v1725_v8 }
 0xf71   :  { %vm4146_vm12 = vcmp.lt.s32.totalorder %v4145_v9, 0 }
 0xf72   :  { %v1728_v10 = vsel %vm4146_vm12, 0, %v4145_v9 }
 0xf73   :  { %v1729_v13 = vsub.s32 32, %v1728_v10  ;;  %v1733_v20 = vsub.s32 4294967266, %v1728_v10  ;;  %v1730_v15 = vshll.u32 %v1721_v63, %v1728_v10 }
 0xf75   :  { %v1731_v16 = vshrl.u32 %v1713_v28, %v1729_v13  ;;  %v1734_v18 = vadd.s32 127, %v1733_v20 }
 0xf77   :  { %v1732_v42 = vor.u32 %v1731_v16, %v1730_v15  ;;  %v1735_v19 = vshll.u32 %v1734_v18, 23 }
 0xf79   :  { %v1736_v21 = vor.u32 4788187, %v1735_v19  ;;  %v1739_v25 = vcvt.s32.f32 %v1732_v42 }
 0xf7b   :  { %v1737_v24 = vand.u32 2147483647, %v1736_v21 }
 0xf7d   :  { %v1740_v26 = vmul.f32 %v1739_v25, %v1737_v24 }
 0xf7f   :  { %v1741_v27 = vxor.u32 2147483648, %v1740_v26 }
 0xf81   :  { %v1742_v30 = vsel %vm1659_vm13, %v1741_v27, %v1740_v26 }
 0xf82   :  { %v1745_v33 = vsel %vm1658_vm15, %v5398_v53, %v1742_v30 }
 0xf83   :  { %4869 = vcosq.f32 %v1745_v33 }
 0xf84   :  { %4871 = vsinq.f32 %v1745_v33 }
 0xf8d   :  { %v4870_v39 = vpop.eup %4869 }
 0xf8e   :  { %v4872_v41 = vpop.eup %4871  ;;  %v1756_v23 = vxor.u32 2147483648, %v4870_v39 }
 0xf8f   :  { %v1753_v44 = vxor.u32 2147483648, %v4872_v41 }
 0xf90   :  { %v1757_v50 = vsel %vm1755_vm2, %v1756_v23, %v4872_v41 }
 0xf91   :  { %v1754_v45 = vsel %vm1752_vm4, %v4870_v39, %v1753_v44 }
 0xf92   :  { %v1758_v60 = vsel %vm1751_vm5, %v1754_v45, %v1757_v50 }
 0xf93   :  { %v1759_v47 = vsel %vm1749_vm6, nan, %v1758_v60 }
 0xf94   :  { %4461 = vmatmul.mubr.msk.f32.vlgmr.msra.gmra.mrb[18].mxu1 %vm261_vm14, %v1759_v47  ;;  %4475 = vmatmul.mubr.msk.f32.vlgmr.msra.gmra.mrb[14].mxu0 %vm261_vm14, %v1759_v47  ;;  %v1973_v52 = vsel %vm5223_vm3, %v1759_v47, 1.0 }
 0xf95   :  { %4705 = vmatpush3.bf16.msra.mxu1 %v5198_v58  ;;  %4467 = vmatprep.mubr.msk.f32.mxu1 %vm5031_vm1, %v5032_v1 }
 0xf96   :  { %4709 = vmatprep.subr.bf16.mxu1 %v5030_v0  ;;  %4714 = vmatpush3.bf16.msra.mxu0 %v5127_v5 }
 0xf97   :  { %4715 = vmatprep.subr.bf16.mxu0 %v5030_v0  ;;  %4492 = vmatprep.mubr.msk.f32.mxu0 %vm5031_vm1, %v5032_v1 }
 0xf98   :  { %4468 = vmatmul.mubr.msk.f32.vlgmr.msra.gmra.mrb[20].mxu1 %vm261_vm14, %v1759_v47 }
 0xf99   :  { %4711 = vmatpush3.bf16.msra.mxu1 %v5216_v62  ;;  %4481 = vmatprep.mubr.msk.f32.mxu1 %vm5031_vm1, %v5032_v1 }
 0xf9a   :  { %4717 = vmatpush3.bf16.msra.mxu0 %v5133_v7  ;;  %4718 = vmatprep.subr.bf16.mxu1 %v5030_v0 }
 0xf9b   :  { %4724 = vmatprep.subr.bf16.mxu0 %v5030_v0 }
0x1067   :  { %v1829_v53 = vpop.f32.mrb[18].mxu1  ;;  %v1969_v48 = vpop.f32.mrb[14].mxu0 }
0x1068   :  { %v1970_v49 = vadd.f32 %v5221_v4, %v1969_v48  ;;  %v4462_v51 = vpop.f32.mrb[19].mxu1  ;;  %v4476_v11 = vpop.f32.mrb[15].mxu0 }
0x106a   :  { %v1975_v54 = vmul.f32 %v1973_v52, %v1970_v49 }
0x106b   :  { %v1899_v55 = vpop.f32.mrb[20].mxu1 }
0x106c   :  { %v1974_v56 = vmul.f32 %v1899_v55, %v1829_v53  ;;  %v4469_v57 = vpop.f32.mrb[21].mxu1 }
0x106e   :  { %v1976_v59 = vmul.f32 %v1975_v54, %v1974_v56 }
0x1070   :  { %4482 = vmatmul.mubr.msk.f32.vlgmr.msra.gmra.mrb[22].mxu1 %vm261_vm14, %v1976_v59 }
0x1071   :  { %4720 = vmatpush3.bf16.msra.mxu1 %v5150_v12  ;;  %4499 = vmatprep.mubr.msk.f32.mxu1 %vm5031_vm1, %v5032_v1 }
0x1072   :  { %4721 = vmatprep.subr.bf16.mxu1 %v5030_v0 }
0x1143   :  { %v2046_v17 = vpop.f32.mrb[22].mxu1 }
0x1144   :  { %v2047_v61 = vadd.f32 %v5238_v22, %v2046_v17  ;;  %v4483_v63 = vpop.f32.mrb[23].mxu1 }
0x1146   :  { %4873 = vtanh.f32 %v2047_v61  ;;  %v4151_v3 = vmul.f32 -1.442695, %v2047_v61 }
0x1148   :  { %4875 = vpow2.f32 %v4151_v3 }
0x1150   :  { %v4874_v2 = vpop.eup %4873 }
0x1151   :  { %2059 = vrot.lane.b32.xlu0 %v4874_v2, %s5039_s19 }
0x1152   :  { %v4876_v8 = vpop.eup %4875 }
0x1153   :  { %v2053_v9 = vadd.f32 1.0, %v4876_v8 }
0x1155   :  { %4877 = vrcp.f32 %v2053_v9 }
0x115f   :  { %v4878_v10 = vpop.eup %4877 }
0x1160   :  { %v2057_v20 = vmul.f32 %v4878_v10, %v5387_v46  ;;  %v2081_v46 = vld [vmem:[#allocation4 + $0x20] sm:$0xff] }
0x11c3   :  { %v2060_v28 = vpop.permute.xlu0 %2059 }
0x11c4   :  { %v2062_v13 = vmul.f32 %v4878_v10, %v2060_v28 }
0x11c6   :  { %2064 = vrot.lane.b32.xlu1 %v2062_v13, %s5040_s20 }
0x1238   :  { %v2065_v15 = vpop.permute.xlu1 %2064 }
0x1239   :  { %v5459_v16 = vadd.f32 %v2065_v15, %v2057_v20 }
0x123b   :  { %4879 = vtanh.f32 %v5459_v16 }
0x1245   :  { %v4880_v22 = vpop.eup %4879 }
0x1246   :  { %2070 = vrot.lane.b32.xlu0 %v4880_v22, %s5039_s19 }
0x12b8   :  { %v2071_v18 = vpop.permute.xlu0 %2070 }
0x12b9   :  { %v2073_v42 = vmul.f32 %v4878_v10, %v2071_v18 }
0x12bb   :  { %2075 = vrot.lane.b32.xlu1 %v2073_v42, %s5039_s19 }
0x132d   :  { %v2076_v19 = vpop.permute.xlu1 %2075 }
0x132e   :  { %2079 = vst.msk [vmem:[#allocation9 + $0x18] sm:$0xff] %vm56_vm0, %v2076_v19  ;;  %4493 = vmatmul.mubr.msk.f32.vlgmr.msra.gmra.mrb[16].mxu0 %vm56_vm0, %v2076_v19 }
0x132f   :  { %4726 = vmatpush3.bf16.msra.mxu0 %v5155_v14  ;;  %4513 = vmatprep.mubr.msk.f32.mxu0 %vm5031_vm1, %v5032_v1 }
0x1330   :  { %4730 = vmatprep.subr.bf16.mxu0 %v5030_v0 }
0x1401   :  { %v2150_v21 = vpop.f32.mrb[16].mxu0 }
0x1402   :  { %v5470_v24 = vadd.f32 %v2150_v21, %v2081_v46  ;;  %v4494_v25 = vpop.f32.mrb[17].mxu0 }
0x1404   :  { %v2157_v26 = vand.u32 2139095040, %v5470_v24  ;;  %v2154_v33 = vand.u32 2147483647, %v5470_v24  ;;  %vm2156_vm15 = vcmp.lt.s32.totalorder %v5470_v24, 0 }
0x1406   :  { %v2158_v27 = vshrl.u32 %v2157_v26, 23  ;;  %v2161_v38 = vand.u32 8388607, %v2154_v33  ;;  %vm2155_vm2 = vcmp.le.f32.partialorder %v2154_v33, 0.7853982 }
0x1408   :  { %v4153_v30 = vadd.s32 4294967169, %v2158_v27  ;;  %v2162_v11 = vor.u32 8388608, %v2161_v38 }
0x140a   :  { %v2164_v32 = vadd.s32 1, %v4153_v30  ;;  %v2202_v10 = vshll.u32 %v2162_v11, 8 }
0x140c   :  { %vm2165_vm7 = vcmp.gt.s32.totalorder %v2164_v32, 0 }
0x140d   :  { %v2166_v35 = vsel %vm2165_vm7, %v2164_v32, 0  ;;  %vm2246_vm7 = vweird.f32 %v5470_v24 }
0x140e   :  { %v2168_v36 = vand.u32 31, %v2166_v35  ;;  %v2167_v41 = vshrl.u32 %v2166_v35, 5 }
0x1410   :  { %v2169_v39 = vsub.s32 32, %v2168_v36  ;;  %v2171_v23 = vshll.u32 %v5033_v29, %v2168_v36  ;;  %v2174_v44 = vshll.u32 %v5034_v31, %v2168_v36  ;;  %v2177_v60 = vshll.u32 %v5035_v34, %v2168_v36 }
0x1411   :  { %v2180_v53 = vshll.u32 %v5036_v37, %v2168_v36  ;;  %v2183_v49 = vshll.u32 %v5037_v40, %v2168_v36  ;;  %vm2186_vm8 = vcmp.lt.s32.totalorder %v2167_v41, 1  ;;  %vm2189_vm9 = vcmp.lt.s32.totalorder %v2167_v41, 4 }
0x1412   :  { %v2172_v50 = vshrl.u32 %v5034_v31, %v2169_v39  ;;  %v2175_v45 = vshrl.u32 %v5035_v34, %v2169_v39  ;;  %v2178_v47 = vshrl.u32 %v5036_v37, %v2169_v39  ;;  %v2181_v48 = vshrl.u32 %v5037_v40, %v2169_v39 }
0x1413   :  { %v2184_v51 = vshrl.u32 %v5038_v43, %v2169_v39  ;;  %v2170_v63 = vshrl.u32 %v5033_v29, %v2169_v39  ;;  %vm2188_vm10 = vcmp.lt.s32.totalorder %v2167_v41, 3  ;;  %vm2187_vm11 = vcmp.lt.s32.totalorder %v2167_v41, 2 }
0x1414   :  { %v2173_v52 = vor.u32 %v2172_v50, %v2171_v23  ;;  %v2176_v54 = vor.u32 %v2175_v45, %v2174_v44  ;;  %v2179_v55 = vor.u32 %v2178_v47, %v2177_v60  ;;  %v2182_v56 = vor.u32 %v2181_v48, %v2180_v53 }
0x1415   :  { %v2185_v57 = vor.u32 %v2184_v51, %v2183_v49 }
0x1416   :  { %v2191_v59 = vsel %vm2189_vm9, %v2179_v55, 2102212464  ;;  %v2194_v17 = vsel %vm2186_vm8, %v2173_v52, %v2176_v54  ;;  %v2198_v61 = vsel %vm2186_vm8, %v2176_v54, %v2179_v55  ;;  %v2195_v2 = vsel %vm2189_vm9, %v2182_v56, 920167782 }
0x1417   :  { %v2199_v3 = vsel %vm2189_vm9, %v2185_v57, 1326507024  ;;  %v2196_v8 = vsel %vm2188_vm10, %v2179_v55, %v2195_v2  ;;  %v2190_v28 = vsel %vm2186_vm8, %v2170_v63, %v2173_v52  ;;  %v2192_v13 = vsel %vm2188_vm10, %v2176_v54, %v2191_v59 }
0x1418   :  { %v2200_v9 = vsel %vm2188_vm10, %v2182_v56, %v2199_v3  ;;  %v2197_v20 = vsel %vm2187_vm11, %v2194_v17, %v2196_v8  ;;  %v2193_v46 = vsel %vm2187_vm11, %v2190_v28, %v2192_v13 }
0x1419   :  { %v2201_v15 = vsel %vm2187_vm11, %v2198_v61, %v2200_v9  ;;  %v5490_v42 = vmul.u32.u64.low %v2202_v10, %v2197_v20  ;;  %v5491_v19 = vmul.u32.u64.high %v2202_v10, %v2197_v20, %v5490_v42  ;;  %v2209_v25 = vmul.u32 %v2202_v10, %v2193_v46 }
0x141a   :  { %v5487_v22 = vmul.u32.u64.low %v2202_v10, %v2201_v15  ;;  %v5488_v18 = vmul.u32.u64.high %v2202_v10, %v2201_v15, %v5487_v22 }
0x141b   :  { %v2212_v21 = vadd.s32 1, %v5491_v19 }
0x141c   :  { %vm2211_vm12 = vc.u32 %v5488_v18, %v5490_v42  ;;  %v2210_v50 = vadd.s32 %v5490_v42, %v5488_v18 }
0x141d   :  { %v2213_v26 = vsel %vm2211_vm12, %v2212_v21, %v5491_v19 }
0x141e   :  { %v2214_v27 = vadd.s32 %v2213_v26, %v2209_v25 }
0x1420   :  { %v2215_v30 = vadd.s32 536870912, %v2214_v27 }
0x1422   :  { %v2216_v32 = vshrl.u32 %v2215_v30, 30 }
0x1424   :  { %v2217_v35 = vshll.u32 %v2216_v32, 30  ;;  %v2240_v59 = vsub.s32 4, %v2216_v32 }
0x1426   :  { %v2218_v36 = vsub.s32 %v2214_v27, %v2217_v35  ;;  %v2241_v61 = vsel %vm2156_vm15, %v2240_v59, %v2216_v32  ;;  %v5530_v32 = vld [vmem:[%s5777_s4] ss:$0 sm:$0xff]  ;;  %s5041_s4 = smov [#allocation10]  }
0x1427   :  { %v2243_v63 = vsel %vm2155_vm2, 0, %v2241_v61  ;;  %s4092_s3 = sshll.u32 %s5041_s4, 4  ;;  %s4093_s3 = int_to_ptr.vmem [resolvable:$true] %s4092_s3 }
0x1428   :  { %v2220_v38 = vsub.s32 0, %v2218_v36  ;;  %v2247_v2 = vand.u32 3, %v2243_v63  ;;  %s4974_s22 = scalar_lea.vmem %s4093_s3, 128  ;;  %p4979_p3 = scmp.lt.s32.totalorder %s4093_s3, %s4093_s3 }
0x1429   :  { %p4975_p2 = scmp.ne.s32.totalorder %s4093_s3, %s4974_s22  ;;  %p4980_p4 = scmp.lt.s32.totalorder %s4974_s22, %s4974_s22 }
0x142a   :  { %v4154_v39 = vmin.u32 %v2220_v38, %v2218_v36  ;;  %vm2252_vm4 = vcmp.eq.s32.totalorder %v2247_v2, 2  ;;  %vm2249_vm5 = vcmp.eq.s32.totalorder %v2247_v2, 0  ;;  %vm2248_vm6 = vcmp.lt.s32.totalorder %v2247_v2, 2 }
0x142b   :  { %p4981_p5 = por %p4980_p4, %p4979_p3 }
0x142c   :  { %v2222_v41 = vclz %v4154_v39 }
0x142d   :  { %p4982_p6 = pnand %p4981_p5, %p4975_p2 }
0x142e   :  { %v4155_v23 = vadd.s32 4294967294, %v2222_v41 }
0x1430   :  { %vm4156_vm13 = vcmp.lt.s32.totalorder %v4155_v23, 0 }
0x1431   :  { %v2225_v44 = vsel %vm4156_vm13, 0, %v4155_v23 }
0x1432   :  { %v2226_v45 = vsub.s32 32, %v2225_v44  ;;  %v2230_v60 = vsub.s32 4294967266, %v2225_v44  ;;  %v2227_v47 = vshll.u32 %v2218_v36, %v2225_v44 }
0x1434   :  { %v2228_v53 = vshrl.u32 %v2210_v50, %v2226_v45  ;;  %v2231_v48 = vadd.s32 127, %v2230_v60 }
0x1436   :  { %v2229_v49 = vor.u32 %v2228_v53, %v2227_v47  ;;  %v2232_v51 = vshll.u32 %v2231_v48, 23 }
0x1438   :  { %v2233_v11 = vor.u32 4788187, %v2232_v51  ;;  %v2236_v54 = vcvt.s32.f32 %v2229_v49 }
0x143a   :  { %v2234_v52 = vand.u32 2147483647, %v2233_v11 }
0x143c   :  { %v2237_v55 = vmul.f32 %v2236_v54, %v2234_v52 }
0x143e   :  { %v2238_v56 = vxor.u32 2147483648, %v2237_v55 }
0x1440   :  { %v2239_v57 = vsel %vm2156_vm15, %v2238_v56, %v2237_v55 }
0x1441   :  { %v2242_v17 = vsel %vm2155_vm2, %v5470_v24, %v2239_v57 }
0x1442   :  { %4881 = vcosq.f32 %v2242_v17 }
0x1443   :  { %4883 = vsinq.f32 %v2242_v17 }
0x144c   :  { %v4882_v3 = vpop.eup %4881 }
0x144d   :  { %v4884_v8 = vpop.eup %4883  ;;  %v2253_v9 = vxor.u32 2147483648, %v4882_v3 }
0x144e   :  { %v2250_v10 = vxor.u32 2147483648, %v4884_v8 }
0x144f   :  { %v2254_v28 = vsel %vm2252_vm4, %v2253_v9, %v4884_v8 }
0x1450   :  { %v2251_v13 = vsel %vm2249_vm5, %v4882_v3, %v2250_v10 }
0x1451   :  { %v2255_v33 = vsel %vm2248_vm6, %v2251_v13, %v2254_v28 }
0x1452   :  { %v2256_v20 = vsel %vm2246_vm7, nan, %v2255_v33 }
0x1453   :  { %4500 = vmatmul.mubr.msk.f32.vlgmr.msra.gmra.mrb[24].mxu1 %vm261_vm14, %v2256_v20  ;;  %4514 = vmatmul.mubr.msk.f32.vlgmr.msra.gmra.mrb[18].mxu0 %vm261_vm14, %v2256_v20  ;;  %v2470_v19 = vsel %vm5223_vm3, %v2256_v20, 1.0 }
0x1454   :  { %4723 = vmatpush3.bf16.msra.mxu1 %v5198_v58  ;;  %4506 = vmatprep.mubr.msk.f32.mxu1 %vm5031_vm1, %v5032_v1 }
0x1455   :  { %4727 = vmatprep.subr.bf16.mxu1 %v5030_v0  ;;  %4732 = vmatpush3.bf16.msra.mxu0 %v5127_v5 }
0x1456   :  { %4733 = vmatprep.subr.bf16.mxu0 %v5030_v0  ;;  %4531 = vmatprep.mubr.msk.f32.mxu0 %vm5031_vm1, %v5032_v1 }
0x1457   :  { %4507 = vmatmul.mubr.msk.f32.vlgmr.msra.gmra.mrb[26].mxu1 %vm261_vm14, %v2256_v20 }
0x1458   :  { %4729 = vmatpush3.bf16.msra.mxu1 %v5216_v62  ;;  %4520 = vmatprep.mubr.msk.f32.mxu1 %vm5031_vm1, %v5032_v1 }
0x1459   :  { %4735 = vmatpush3.bf16.msra.mxu0 %v5133_v7  ;;  %4736 = vmatprep.subr.bf16.mxu1 %v5030_v0 }
0x145a   :  { %4742 = vmatprep.subr.bf16.mxu0 %v5030_v0 }
0x1526   :  { %v2326_v24 = vpop.f32.mrb[24].mxu1  ;;  %v2466_v15 = vpop.f32.mrb[18].mxu0 }
0x1527   :  { %v2467_v22 = vadd.f32 %v5221_v4, %v2466_v15  ;;  %v4501_v18 = vpop.f32.mrb[25].mxu1  ;;  %v4515_v42 = vpop.f32.mrb[19].mxu0 }
0x1529   :  { %v2472_v46 = vmul.f32 %v2470_v19, %v2467_v22 }
0x152a   :  { %v2396_v21 = vpop.f32.mrb[26].mxu1 }
0x152b   :  { %v2471_v25 = vmul.f32 %v2396_v21, %v2326_v24  ;;  %v4508_v26 = vpop.f32.mrb[27].mxu1 }
0x152d   :  { %v2473_v27 = vmul.f32 %v2472_v46, %v2471_v25 }
0x152f   :  { %4521 = vmatmul.mubr.msk.f32.vlgmr.msra.gmra.mrb[28].mxu1 %vm261_vm14, %v2473_v27 }
0x1530   :  { %4738 = vmatpush3.bf16.msra.mxu1 %v5150_v12  ;;  %4538 = vmatprep.mubr.msk.f32.mxu1 %vm5031_vm1, %v5032_v1 }
0x1531   :  { %4739 = vmatprep.subr.bf16.mxu1 %v5030_v0 }
0x1602   :  { %v2543_v30 = vpop.f32.mrb[28].mxu1 }
0x1603   :  { %v2544_v35 = vadd.f32 %v5530_v32, %v2543_v30  ;;  %v4522_v36 = vpop.f32.mrb[29].mxu1 }
0x1605   :  { %4885 = vtanh.f32 %v2544_v35  ;;  %v4161_v39 = vmul.f32 -1.442695, %v2544_v35 }
0x1607   :  { %4887 = vpow2.f32 %v4161_v39 }
0x160f   :  { %v4886_v38 = vpop.eup %4885 }
0x1610   :  { %2556 = vrot.lane.b32.xlu0 %v4886_v38, %s5039_s19 }
0x1611   :  { %v4888_v41 = vpop.eup %4887 }
0x1612   :  { %v2550_v23 = vadd.f32 1.0, %v4888_v41 }
0x1614   :  { %4889 = vrcp.f32 %v2550_v23 }
0x161e   :  { %v4890_v44 = vpop.eup %4889 }
0x161f   :  { %v2554_v60 = vmul.f32 %v4890_v44, %v5459_v16  ;;  %v2578_v16 = vld [vmem:[#allocation4 + $0x28] sm:$0xff] }
0x1682   :  { %v2557_v50 = vpop.permute.xlu0 %2556 }
0x1683   :  { %v2559_v45 = vmul.f32 %v4890_v44, %v2557_v50 }
0x1685   :  { %2561 = vrot.lane.b32.xlu1 %v2559_v45, %s5040_s20 }
0x16f7   :  { %v2562_v47 = vpop.permute.xlu1 %2561 }
0x16f8   :  { %v5536_v53 = vadd.f32 %v2562_v47, %v2554_v60 }
0x16fa   :  { %4891 = vtanh.f32 %v5536_v53 }
0x1704   :  { %v4892_v48 = vpop.eup %4891 }
0x1705   :  { %2567 = vrot.lane.b32.xlu0 %v4892_v48, %s5039_s19 }
0x1777   :  { %v2568_v49 = vpop.permute.xlu0 %2567 }
0x1778   :  { %v2570_v51 = vmul.f32 %v4890_v44, %v2568_v49 }
0x177a   :  { %2572 = vrot.lane.b32.xlu1 %v2570_v51, %s5039_s19 }
0x17ec   :  { %v2573_v11 = vpop.permute.xlu1 %2572 }
0x17ed   :  { %2576 = vst.msk [vmem:[#allocation9 + $0x20] sm:$0xff] %vm56_vm0, %v2573_v11  ;;  %4532 = vmatmul.mubr.msk.f32.vlgmr.msra.gmra.mrb[20].mxu0 %vm56_vm0, %v2573_v11 }
0x17ee   :  { %4744 = vmatpush3.bf16.msra.mxu0 %v5155_v14  ;;  %4552 = vmatprep.mubr.msk.f32.mxu0 %vm5031_vm1, %v5032_v1 }
0x17ef   :  { %4748 = vmatprep.subr.bf16.mxu0 %v5030_v0 }
0x18c0   :  { %v2647_v52 = vpop.f32.mrb[20].mxu0 }
0x18c1   :  { %v5547_v54 = vadd.f32 %v2647_v52, %v2578_v16  ;;  %v4533_v55 = vpop.f32.mrb[21].mxu0 }
0x18c3   :  { %v2654_v56 = vand.u32 2139095040, %v5547_v54  ;;  %v2651_v61 = vand.u32 2147483647, %v5547_v54  ;;  %vm2653_vm2 = vcmp.lt.s32.totalorder %v5547_v54, 0 }
0x18c5   :  { %v2655_v57 = vshrl.u32 %v2654_v56, 23  ;;  %v2658_v3 = vand.u32 8388607, %v2651_v61  ;;  %vm2652_vm4 = vcmp.le.f32.partialorder %v2651_v61, 0.7853982 }
0x18c7   :  { %v4163_v59 = vadd.s32 4294967169, %v2655_v57  ;;  %v2659_v19 = vor.u32 8388608, %v2658_v3 }
0x18c9   :  { %v2661_v17 = vadd.s32 1, %v4163_v59  ;;  %v2699_v50 = vshll.u32 %v2659_v19, 8 }
0x18cb   :  { %vm2662_vm8 = vcmp.gt.s32.totalorder %v2661_v17, 0 }
0x18cc   :  { %v2663_v63 = vsel %vm2662_vm8, %v2661_v17, 0  ;;  %vm2743_vm8 = vweird.f32 %v5547_v54 }
0x18cd   :  { %v2665_v2 = vand.u32 31, %v2663_v63  ;;  %v2664_v9 = vshrl.u32 %v2663_v63, 5 }
0x18cf   :  { %v2666_v8 = vsub.s32 32, %v2665_v2  ;;  %v2668_v10 = vshll.u32 %v5033_v29, %v2665_v2  ;;  %v2671_v28 = vshll.u32 %v5034_v31, %v2665_v2  ;;  %v2674_v20 = vshll.u32 %v5035_v34, %v2665_v2 }
0x18d0   :  { %v2677_v15 = vshll.u32 %v5036_v37, %v2665_v2  ;;  %v2680_v18 = vshll.u32 %v5037_v40, %v2665_v2  ;;  %vm2683_vm9 = vcmp.lt.s32.totalorder %v2664_v9, 1  ;;  %vm2686_vm10 = vcmp.lt.s32.totalorder %v2664_v9, 4 }
0x18d1   :  { %v2669_v13 = vshrl.u32 %v5034_v31, %v2666_v8  ;;  %v2672_v33 = vshrl.u32 %v5035_v34, %v2666_v8  ;;  %v2675_v24 = vshrl.u32 %v5036_v37, %v2666_v8  ;;  %v2678_v22 = vshrl.u32 %v5037_v40, %v2666_v8 }
0x18d2   :  { %v2681_v42 = vshrl.u32 %v5038_v43, %v2666_v8  ;;  %v2667_v38 = vshrl.u32 %v5033_v29, %v2666_v8  ;;  %vm2685_vm11 = vcmp.lt.s32.totalorder %v2664_v9, 3  ;;  %vm2684_vm12 = vcmp.lt.s32.totalorder %v2664_v9, 2 }
0x18d3   :  { %v2670_v46 = vor.u32 %v2669_v13, %v2668_v10  ;;  %v2673_v21 = vor.u32 %v2672_v33, %v2671_v28  ;;  %v2676_v25 = vor.u32 %v2675_v24, %v2674_v20  ;;  %v2679_v26 = vor.u32 %v2678_v22, %v2677_v15 }
0x18d4   :  { %v2682_v27 = vor.u32 %v2681_v42, %v2680_v18 }
0x18d5   :  { %v2688_v30 = vsel %vm2686_vm10, %v2676_v25, 2102212464  ;;  %v2691_v35 = vsel %vm2683_vm9, %v2670_v46, %v2673_v21  ;;  %v2695_v36 = vsel %vm2683_vm9, %v2673_v21, %v2676_v25  ;;  %v2692_v39 = vsel %vm2686_vm10, %v2679_v26, 920167782 }
0x18d6   :  { %v2696_v41 = vsel %vm2686_vm10, %v2682_v27, 1326507024  ;;  %v2693_v23 = vsel %vm2685_vm11, %v2676_v25, %v2692_v39  ;;  %v2687_v45 = vsel %vm2683_vm9, %v2667_v38, %v2670_v46  ;;  %v2689_v60 = vsel %vm2685_vm11, %v2673_v21, %v2688_v30 }
0x18d7   :  { %v2697_v44 = vsel %vm2685_vm11, %v2679_v26, %v2696_v41  ;;  %v2694_v47 = vsel %vm2684_vm12, %v2691_v35, %v2693_v23  ;;  %v2690_v52 = vsel %vm2684_vm12, %v2687_v45, %v2689_v60 }
0x18d8   :  { %v2698_v48 = vsel %vm2684_vm12, %v2695_v36, %v2697_v44  ;;  %v5567_v11 = vmul.u32.u64.low %v2699_v50, %v2694_v47  ;;  %v5568_v16 = vmul.u32.u64.high %v2699_v50, %v2694_v47, %v5567_v11  ;;  %v2706_v56 = vmul.u32 %v2699_v50, %v2690_v52 }
0x18d9   :  { %v5564_v49 = vmul.u32.u64.low %v2699_v50, %v2698_v48  ;;  %v5565_v51 = vmul.u32.u64.high %v2699_v50, %v2698_v48, %v5564_v49 }
0x18da   :  { %v2709_v55 = vadd.s32 1, %v5568_v16 }
0x18db   :  { %vm2708_vm13 = vc.u32 %v5565_v51, %v5567_v11  ;;  %v2707_v33 = vadd.s32 %v5567_v11, %v5565_v51 }
0x18dc   :  { %v2710_v57 = vsel %vm2708_vm13, %v2709_v55, %v5568_v16 }
0x18dd   :  { %v2711_v59 = vadd.s32 %v2710_v57, %v2706_v56 }
0x18df   :  { %v2712_v17 = vadd.s32 536870912, %v2711_v59 }
0x18e1   :  { %v2713_v63 = vshrl.u32 %v2712_v17, 30 }
0x18e3   :  { %v2714_v2 = vshll.u32 %v2713_v63, 30  ;;  %v2737_v35 = vsub.s32 4, %v2713_v63 }
0x18e5   :  { %v2715_v3 = vsub.s32 %v2711_v59, %v2714_v2  ;;  %v2738_v38 = vsel %vm2653_vm2, %v2737_v35, %v2713_v63 }
0x18e6   :  { %v2740_v39 = vsel %vm2652_vm4, 0, %v2738_v38 }
0x18e7   :  { %v2717_v8 = vsub.s32 0, %v2715_v3  ;;  %v2744_v41 = vand.u32 3, %v2740_v39 }
0x18e9   :  { %v4164_v9 = vmin.u32 %v2717_v8, %v2715_v3  ;;  %vm2749_vm5 = vcmp.eq.s32.totalorder %v2744_v41, 2  ;;  %vm2746_vm6 = vcmp.eq.s32.totalorder %v2744_v41, 0  ;;  %vm2745_vm7 = vcmp.lt.s32.totalorder %v2744_v41, 2 }
0x18eb   :  { %v2719_v10 = vclz %v4164_v9 }
0x18ed   :  { %v4165_v28 = vadd.s32 4294967294, %v2719_v10 }
0x18ef   :  { %vm4166_vm15 = vcmp.lt.s32.totalorder %v4165_v28, 0 }
0x18f0   :  { %v2722_v13 = vsel %vm4166_vm15, 0, %v4165_v28 }
0x18f1   :  { %v2723_v20 = vsub.s32 32, %v2722_v13  ;;  %v2727_v24 = vsub.s32 4294967266, %v2722_v13  ;;  %v2724_v15 = vshll.u32 %v2715_v3, %v2722_v13 }
0x18f3   :  { %v2725_v22 = vshrl.u32 %v2707_v33, %v2723_v20  ;;  %v2728_v18 = vadd.s32 127, %v2727_v24 }
0x18f5   :  { %v2726_v42 = vor.u32 %v2725_v22, %v2724_v15  ;;  %v2729_v19 = vshll.u32 %v2728_v18, 23 }
0x18f7   :  { %v2730_v46 = vor.u32 4788187, %v2729_v19  ;;  %v2733_v25 = vcvt.s32.f32 %v2726_v42 }
0x18f9   :  { %v2731_v21 = vand.u32 2147483647, %v2730_v46 }
0x18fb   :  { %v2734_v26 = vmul.f32 %v2733_v25, %v2731_v21 }
0x18fd   :  { %v2735_v27 = vxor.u32 2147483648, %v2734_v26 }
0x18ff   :  { %v2736_v30 = vsel %vm2653_vm2, %v2735_v27, %v2734_v26 }
0x1900   :  { %v2739_v36 = vsel %vm2652_vm4, %v5547_v54, %v2736_v30 }
0x1901   :  { %4893 = vcosq.f32 %v2739_v36 }
0x1902   :  { %4895 = vsinq.f32 %v2739_v36 }
0x190b   :  { %v4894_v23 = vpop.eup %4893 }
0x190c   :  { %v4896_v44 = vpop.eup %4895  ;;  %v2750_v50 = vxor.u32 2147483648, %v4894_v23 }
0x190d   :  { %v2747_v45 = vxor.u32 2147483648, %v4896_v44 }
0x190e   :  { %v2751_v60 = vsel %vm2749_vm5, %v2750_v50, %v4896_v44 }
0x190f   :  { %v2748_v47 = vsel %vm2746_vm6, %v4894_v23, %v2747_v45 }
0x1910   :  { %v2752_v61 = vsel %vm2745_vm7, %v2748_v47, %v2751_v60 }
0x1911   :  { %v2753_v48 = vsel %vm2743_vm8, nan, %v2752_v61 }
0x1912   :  { %4539 = vmatmul.mubr.msk.f32.vlgmr.msra.gmra.mrb[30].mxu1 %vm261_vm14, %v2753_v48  ;;  %4553 = vmatmul.mubr.msk.f32.vlgmr.msra.gmra.mrb[22].mxu0 %vm261_vm14, %v2753_v48  ;;  %v2967_v52 = vsel %vm5223_vm3, %v2753_v48, 1.0 }
0x1913   :  { %4741 = vmatpush3.bf16.msra.mxu1 %v5198_v58  ;;  %4545 = vmatprep.mubr.msk.f32.mxu1 %vm5031_vm1, %v5032_v1 }
0x1914   :  { %4745 = vmatprep.subr.bf16.mxu1 %v5030_v0  ;;  %4750 = vmatpush3.bf16.msra.mxu0 %v5127_v5 }
0x1915   :  { %4751 = vmatprep.subr.bf16.mxu0 %v5030_v0  ;;  %4570 = vmatprep.mubr.msk.f32.mxu0 %vm5031_vm1, %v5032_v1 }
0x1916   :  { %4546 = vmatmul.mubr.msk.f32.vlgmr.msra.gmra.mrb[32].mxu1 %vm261_vm14, %v2753_v48 }
0x1917   :  { %4747 = vmatpush3.bf16.msra.mxu1 %v5216_v62  ;;  %4559 = vmatprep.mubr.msk.f32.mxu1 %vm5031_vm1, %v5032_v1 }
0x1918   :  { %4753 = vmatpush3.bf16.msra.mxu0 %v5133_v7  ;;  %4754 = vmatprep.subr.bf16.mxu1 %v5030_v0 }
0x1919   :  { %4760 = vmatprep.subr.bf16.mxu0 %v5030_v0 }
0x19e5   :  { %v2823_v54 = vpop.f32.mrb[30].mxu1  ;;  %v2963_v49 = vpop.f32.mrb[22].mxu0 }
0x19e6   :  { %v2964_v51 = vadd.f32 %v5221_v4, %v2963_v49  ;;  %v4540_v11 = vpop.f32.mrb[31].mxu1  ;;  %v4554_v16 = vpop.f32.mrb[23].mxu0 }
0x19e8   :  { %v2969_v55 = vmul.f32 %v2967_v52, %v2964_v51 }
0x19e9   :  { %v2893_v56 = vpop.f32.mrb[32].mxu1 }
0x19ea   :  { %v2968_v57 = vmul.f32 %v2893_v56, %v2823_v54  ;;  %v4547_v59 = vpop.f32.mrb[33].mxu1 }
0x19ec   :  { %v2970_v17 = vmul.f32 %v2969_v55, %v2968_v57 }
0x19ee   :  { %4560 = vmatmul.mubr.msk.f32.vlgmr.msra.gmra.mrb[34].mxu1 %vm261_vm14, %v2970_v17 }
0x19ef   :  { %4756 = vmatpush3.bf16.msra.mxu1 %v5150_v12  ;;  %4577 = vmatprep.mubr.msk.f32.mxu1 %vm5031_vm1, %v5032_v1 }
0x19f0   :  { %4757 = vmatprep.subr.bf16.mxu1 %v5030_v0 }
0x1ac1   :  { %v3040_v63 = vpop.f32.mrb[34].mxu1 }
0x1ac2   :  { %v3041_v2 = vadd.f32 %v5530_v32, %v3040_v63  ;;  %v4561_v3 = vpop.f32.mrb[35].mxu1 }
0x1ac4   :  { %4897 = vtanh.f32 %v3041_v2  ;;  %v4171_v9 = vmul.f32 -1.442695, %v3041_v2 }
0x1ac6   :  { %4899 = vpow2.f32 %v4171_v9 }
0x1ace   :  { %v4898_v8 = vpop.eup %4897 }
0x1acf   :  { %3053 = vrot.lane.b32.xlu0 %v4898_v8, %s5039_s19 }
0x1ad0   :  { %v4900_v10 = vpop.eup %4899 }
0x1ad1   :  { %v3047_v28 = vadd.f32 1.0, %v4900_v10 }
0x1ad3   :  { %4901 = vrcp.f32 %v3047_v28 }
0x1add   :  { %v4902_v13 = vpop.eup %4901 }
0x1ade   :  { %v3051_v24 = vmul.f32 %v4902_v13, %v5536_v53  ;;  %v3075_v53 = vld [vmem:[#allocation4 + $0x30] sm:$0xff] }
0x1b41   :  { %v3054_v33 = vpop.permute.xlu0 %3053 }
0x1b42   :  { %v3056_v20 = vmul.f32 %v4902_v13, %v3054_v33 }
0x1b44   :  { %3058 = vrot.lane.b32.xlu1 %v3056_v20, %s5040_s20 }
0x1bb6   :  { %v3059_v15 = vpop.permute.xlu1 %3058 }
0x1bb7   :  { %v5608_v22 = vadd.f32 %v3059_v15, %v3051_v24 }
0x1bb9   :  { %4903 = vtanh.f32 %v5608_v22 }
0x1bc3   :  { %v4904_v18 = vpop.eup %4903 }
0x1bc4   :  { %3064 = vrot.lane.b32.xlu0 %v4904_v18, %s5039_s19 }
0x1c36   :  { %v3065_v42 = vpop.permute.xlu0 %3064 }
0x1c37   :  { %v3067_v19 = vmul.f32 %v4902_v13, %v3065_v42 }
0x1c39   :  { %3069 = vrot.lane.b32.xlu1 %v3067_v19, %s5039_s19 }
0x1cab   :  { %v3070_v46 = vpop.permute.xlu1 %3069 }
0x1cac   :  { %3073 = vst.msk [vmem:[#allocation9 + $0x28] sm:$0xff] %vm56_vm0, %v3070_v46  ;;  %4571 = vmatmul.mubr.msk.f32.vlgmr.msra.gmra.mrb[24].mxu0 %vm56_vm0, %v3070_v46 }
0x1cad   :  { %4762 = vmatpush3.bf16.msra.mxu0 %v5155_v14  ;;  %4591 = vmatprep.mubr.msk.f32.mxu0 %vm5031_vm1, %v5032_v1 }
0x1cae   :  { %4766 = vmatprep.subr.bf16.mxu0 %v5030_v0 }
0x1d7f   :  { %v3144_v21 = vpop.f32.mrb[24].mxu0 }
0x1d80   :  { %v5619_v25 = vadd.f32 %v3144_v21, %v3075_v53  ;;  %v4572_v26 = vpop.f32.mrb[25].mxu0 }
0x1d82   :  { %v3151_v27 = vand.u32 2139095040, %v5619_v25  ;;  %v3148_v38 = vand.u32 2147483647, %v5619_v25  ;;  %vm3150_vm4 = vcmp.lt.s32.totalorder %v5619_v25, 0 }
0x1d84   :  { %v3152_v30 = vshrl.u32 %v3151_v27, 23  ;;  %v3155_v23 = vand.u32 8388607, %v3148_v38  ;;  %vm3149_vm5 = vcmp.le.f32.partialorder %v3148_v38, 0.7853982 }
0x1d86   :  { %v4173_v35 = vadd.s32 4294967169, %v3152_v30  ;;  %v3156_v52 = vor.u32 8388608, %v3155_v23 }
0x1d88   :  { %v3158_v36 = vadd.s32 1, %v4173_v35  ;;  %v3196_v33 = vshll.u32 %v3156_v52, 8 }
0x1d8a   :  { %vm3159_vm9 = vcmp.gt.s32.totalorder %v3158_v36, 0 }
0x1d8b   :  { %v3160_v39 = vsel %vm3159_vm9, %v3158_v36, 0  ;;  %vm3240_vm9 = vweird.f32 %v5619_v25 }
0x1d8c   :  { %v3162_v41 = vand.u32 31, %v3160_v39  ;;  %v3161_v50 = vshrl.u32 %v3160_v39, 5 }
0x1d8e   :  { %v3163_v44 = vsub.s32 32, %v3162_v41  ;;  %v3165_v45 = vshll.u32 %v5033_v29, %v3162_v41  ;;  %v3168_v60 = vshll.u32 %v5034_v31, %v3162_v41  ;;  %v3171_v48 = vshll.u32 %v5035_v34, %v3162_v41 }
0x1d8f   :  { %v3174_v49 = vshll.u32 %v5036_v37, %v3162_v41  ;;  %v3177_v11 = vshll.u32 %v5037_v40, %v3162_v41  ;;  %vm3180_vm10 = vcmp.lt.s32.totalorder %v3161_v50, 1  ;;  %vm3183_vm11 = vcmp.lt.s32.totalorder %v3161_v50, 4 }
0x1d90   :  { %v3166_v47 = vshrl.u32 %v5034_v31, %v3163_v44  ;;  %v3169_v61 = vshrl.u32 %v5035_v34, %v3163_v44  ;;  %v3172_v54 = vshrl.u32 %v5036_v37, %v3163_v44  ;;  %v3175_v51 = vshrl.u32 %v5037_v40, %v3163_v44 }
0x1d91   :  { %v3178_v16 = vshrl.u32 %v5038_v43, %v3163_v44  ;;  %v3164_v8 = vshrl.u32 %v5033_v29, %v3163_v44  ;;  %vm3182_vm12 = vcmp.lt.s32.totalorder %v3161_v50, 3  ;;  %vm3181_vm13 = vcmp.lt.s32.totalorder %v3161_v50, 2 }
0x1d92   :  { %v3167_v55 = vor.u32 %v3166_v47, %v3165_v45  ;;  %v3170_v56 = vor.u32 %v3169_v61, %v3168_v60  ;;  %v3173_v57 = vor.u32 %v3172_v54, %v3171_v48  ;;  %v3176_v59 = vor.u32 %v3175_v51, %v3174_v49 }
0x1d93   :  { %v3179_v17 = vor.u32 %v3178_v16, %v3177_v11 }
0x1d94   :  { %v3185_v63 = vsel %vm3183_vm11, %v3173_v57, 2102212464  ;;  %v3188_v2 = vsel %vm3180_vm10, %v3167_v55, %v3170_v56  ;;  %v3192_v3 = vsel %vm3180_vm10, %v3170_v56, %v3173_v57  ;;  %v3189_v9 = vsel %vm3183_vm11, %v3176_v59, 920167782 }
0x1d95   :  { %v3193_v10 = vsel %vm3183_vm11, %v3179_v17, 1326507024  ;;  %v3190_v28 = vsel %vm3182_vm12, %v3173_v57, %v3189_v9  ;;  %v3184_v20 = vsel %vm3180_vm10, %v3164_v8, %v3167_v55  ;;  %v3186_v24 = vsel %vm3182_vm12, %v3170_v56, %v3185_v63 }
0x1d96   :  { %v3194_v13 = vsel %vm3182_vm12, %v3176_v59, %v3193_v10  ;;  %v3191_v15 = vsel %vm3181_vm13, %v3188_v2, %v3190_v28  ;;  %v3187_v21 = vsel %vm3181_vm13, %v3184_v20, %v3186_v24 }
0x1d97   :  { %v3195_v18 = vsel %vm3181_vm13, %v3192_v3, %v3194_v13  ;;  %v5639_v46 = vmul.u32.u64.low %v3196_v33, %v3191_v15  ;;  %v5640_v53 = vmul.u32.u64.high %v3196_v33, %v3191_v15, %v5639_v46  ;;  %v3203_v27 = vmul.u32 %v3196_v33, %v3187_v21 }
0x1d98   :  { %v5636_v42 = vmul.u32.u64.low %v3196_v33, %v3195_v18  ;;  %v5637_v19 = vmul.u32.u64.high %v3196_v33, %v3195_v18, %v5636_v42 }
0x1d99   :  { %v3206_v26 = vadd.s32 1, %v5640_v53 }
0x1d9a   :  { %vm3205_vm15 = vc.u32 %v5637_v19, %v5639_v46  ;;  %v3204_v61 = vadd.s32 %v5639_v46, %v5637_v19 }
0x1d9b   :  { %v3207_v30 = vsel %vm3205_vm15, %v3206_v26, %v5640_v53 }
0x1d9c   :  { %v3208_v35 = vadd.s32 %v3207_v30, %v3203_v27 }
0x1d9e   :  { %v3209_v36 = vadd.s32 536870912, %v3208_v35 }
0x1da0   :  { %v3210_v39 = vshrl.u32 %v3209_v36, 30 }
0x1da2   :  { %v3211_v41 = vshll.u32 %v3210_v39, 30  ;;  %v3234_v2 = vsub.s32 4, %v3210_v39 }
0x1da4   :  { %v3212_v23 = vsub.s32 %v3208_v35, %v3211_v41  ;;  %v3235_v8 = vsel %vm3150_vm4, %v3234_v2, %v3210_v39 }
0x1da5   :  { %v3237_v9 = vsel %vm3149_vm5, 0, %v3235_v8 }
0x1da6   :  { %v3214_v44 = vsub.s32 0, %v3212_v23  ;;  %v3241_v10 = vand.u32 3, %v3237_v9 }
0x1da8   :  { %v4174_v50 = vmin.u32 %v3214_v44, %v3212_v23  ;;  %vm3246_vm6 = vcmp.eq.s32.totalorder %v3241_v10, 2  ;;  %vm3243_vm7 = vcmp.eq.s32.totalorder %v3241_v10, 0  ;;  %vm3242_vm8 = vcmp.lt.s32.totalorder %v3241_v10, 2 }
0x1daa   :  { %v3216_v45 = vclz %v4174_v50 }
0x1dac   :  { %v4175_v60 = vadd.s32 4294967294, %v3216_v45 }
0x1dae   :  { %vm4176_vm2 = vcmp.lt.s32.totalorder %v4175_v60, 0 }
0x1daf   :  { %v3219_v47 = vsel %vm4176_vm2, 0, %v4175_v60 }
0x1db0   :  { %v3220_v48 = vsub.s32 32, %v3219_v47  ;;  %v3224_v54 = vsub.s32 4294967266, %v3219_v47  ;;  %v3221_v49 = vshll.u32 %v3212_v23, %v3219_v47 }
0x1db2   :  { %v3222_v51 = vshrl.u32 %v3204_v61, %v3220_v48  ;;  %v3225_v11 = vadd.s32 127, %v3224_v54 }
0x1db4   :  { %v3223_v16 = vor.u32 %v3222_v51, %v3221_v49  ;;  %v3226_v52 = vshll.u32 %v3225_v11, 23 }
0x1db6   :  { %v3227_v55 = vor.u32 4788187, %v3226_v52  ;;  %v3230_v57 = vcvt.s32.f32 %v3223_v16 }
0x1db8   :  { %v3228_v56 = vand.u32 2147483647, %v3227_v55 }
0x1dba   :  { %v3231_v59 = vmul.f32 %v3230_v57, %v3228_v56 }
0x1dbc   :  { %v3232_v17 = vxor.u32 2147483648, %v3231_v59 }
0x1dbe   :  { %v3233_v63 = vsel %vm3150_vm4, %v3232_v17, %v3231_v59 }
0x1dbf   :  { %v3236_v3 = vsel %vm3149_vm5, %v5619_v25, %v3233_v63 }
0x1dc0   :  { %4905 = vcosq.f32 %v3236_v3 }
0x1dc1   :  { %4907 = vsinq.f32 %v3236_v3 }
0x1dca   :  { %v4906_v28 = vpop.eup %4905 }
0x1dcb   :  { %v4908_v13 = vpop.eup %4907  ;;  %v3247_v33 = vxor.u32 2147483648, %v4906_v28 }
0x1dcc   :  { %v3244_v20 = vxor.u32 2147483648, %v4908_v13 }
0x1dcd   :  { %v3248_v24 = vsel %vm3246_vm6, %v3247_v33, %v4908_v13 }
0x1dce   :  { %v3245_v15 = vsel %vm3243_vm7, %v4906_v28, %v3244_v20 }
0x1dcf   :  { %v3249_v38 = vsel %vm3242_vm8, %v3245_v15, %v3248_v24 }
0x1dd0   :  { %v3250_v18 = vsel %vm3240_vm9, nan, %v3249_v38 }
0x1dd1   :  { %4578 = vmatmul.mubr.msk.f32.vlgmr.msra.gmra.mrb[36].mxu1 %vm261_vm14, %v3250_v18  ;;  %4592 = vmatmul.mubr.msk.f32.vlgmr.msra.gmra.mrb[26].mxu0 %vm261_vm14, %v3250_v18  ;;  %v3464_v53 = vsel %vm5223_vm3, %v3250_v18, 1.0 }
0x1dd2   :  { %4759 = vmatpush3.bf16.msra.mxu1 %v5198_v58  ;;  %4584 = vmatprep.mubr.msk.f32.mxu1 %vm5031_vm1, %v5032_v1 }
0x1dd3   :  { %4763 = vmatprep.subr.bf16.mxu1 %v5030_v0  ;;  %4768 = vmatpush3.bf16.msra.mxu0 %v5127_v5 }
0x1dd4   :  { %4769 = vmatprep.subr.bf16.mxu0 %v5030_v0  ;;  %4609 = vmatprep.mubr.msk.f32.mxu0 %vm5031_vm1, %v5032_v1 }
0x1dd5   :  { %4585 = vmatmul.mubr.msk.f32.vlgmr.msra.gmra.mrb[38].mxu1 %vm261_vm14, %v3250_v18 }
0x1dd6   :  { %4765 = vmatpush3.bf16.msra.mxu1 %v5216_v62  ;;  %4598 = vmatprep.mubr.msk.f32.mxu1 %vm5031_vm1, %v5032_v1 }
0x1dd7   :  { %4771 = vmatpush3.bf16.msra.mxu0 %v5133_v7  ;;  %4772 = vmatprep.subr.bf16.mxu1 %v5030_v0 }
0x1dd8   :  { %4778 = vmatprep.subr.bf16.mxu0 %v5030_v0 }
0x1ea4   :  { %v3320_v25 = vpop.f32.mrb[36].mxu1  ;;  %v3460_v5 = vpop.f32.mrb[26].mxu0 }
0x1ea5   :  { %v3461_v42 = vadd.f32 %v5221_v4, %v3460_v5  ;;  %v4579_v19 = vpop.f32.mrb[37].mxu1  ;;  %v4593_v46 = vpop.f32.mrb[27].mxu0 }
0x1ea7   :  { %v3466_v21 = vmul.f32 %v3464_v53, %v3461_v42 }
0x1ea8   :  { %v3390_v26 = vpop.f32.mrb[38].mxu1 }
0x1ea9   :  { %v3465_v27 = vmul.f32 %v3390_v26, %v3320_v25  ;;  %v4586_v30 = vpop.f32.mrb[39].mxu1 }
0x1eab   :  { %v3467_v35 = vmul.f32 %v3466_v21, %v3465_v27 }
0x1ead   :  { %4599 = vmatmul.mubr.msk.f32.vlgmr.msra.gmra.mrb[40].mxu1 %vm261_vm14, %v3467_v35 }
0x1eae   :  { %4774 = vmatpush3.bf16.msra.mxu1 %v5150_v12  ;;  %4616 = vmatprep.mubr.msk.f32.mxu1 %vm5031_vm1, %v5032_v1 }
0x1eaf   :  { %4775 = vmatprep.subr.bf16.mxu1 %v5030_v0 }
0x1f80   :  { %v3537_v7 = vpop.f32.mrb[40].mxu1 }
0x1f81   :  { %v3538_v36 = vadd.f32 %v5530_v32, %v3537_v7  ;;  %v4600_v39 = vpop.f32.mrb[41].mxu1 }
0x1f83   :  { %4909 = vtanh.f32 %v3538_v36  ;;  %v4181_v23 = vmul.f32 -1.442695, %v3538_v36 }
0x1f85   :  { %4911 = vpow2.f32 %v4181_v23 }
0x1f8d   :  { %v4910_v41 = vpop.eup %4909 }
0x1f8e   :  { %3550 = vrot.lane.b32.xlu0 %v4910_v41, %s5039_s19 }
0x1f8f   :  { %v4912_v44 = vpop.eup %4911 }
0x1f90   :  { %v3544_v50 = vadd.f32 1.0, %v4912_v44 }
0x1f92   :  { %4913 = vrcp.f32 %v3544_v50 }
0x1f9c   :  { %v4914_v45 = vpop.eup %4913 }
0x1f9d   :  { %v3548_v47 = vmul.f32 %v4914_v45, %v5608_v22  ;;  %v3572_v22 = vld [vmem:[#allocation4 + $0x38] sm:$0xff] }
0x2000   :  { %v3551_v12 = vpop.permute.xlu0 %3550 }
0x2001   :  { %v3553_v60 = vmul.f32 %v4914_v45, %v3551_v12 }
0x2003   :  { %3555 = vrot.lane.b32.xlu1 %v3553_v60, %s5040_s20 }
0x2075   :  { %v3556_v61 = vpop.permute.xlu1 %3555 }
0x2076   :  { %v5680_v48 = vadd.f32 %v3556_v61, %v3548_v47 }
0x2078   :  { %4915 = vtanh.f32 %v5680_v48 }
0x2082   :  { %v4916_v54 = vpop.eup %4915 }
0x2083   :  { %3561 = vrot.lane.b32.xlu0 %v4916_v54, %s5039_s19 }
0x20f5   :  { %v3562_v49 = vpop.permute.xlu0 %3561 }
0x20f6   :  { %v3564_v51 = vmul.f32 %v4914_v45, %v3562_v49 }
0x20f8   :  { %3566 = vrot.lane.b32.xlu1 %v3564_v51, %s5039_s19 }
0x216a   :  { %v3567_v11 = vpop.permute.xlu1 %3566 }
0x216b   :  { %3570 = vst.msk [vmem:[#allocation9 + $0x30] sm:$0xff] %vm56_vm0, %v3567_v11  ;;  %4610 = vmatmul.mubr.msk.f32.vlgmr.msra.gmra.mrb[28].mxu0 %vm56_vm0, %v3567_v11 }
0x216c   :  { %4780 = vmatpush3.bf16.msra.mxu0 %v5155_v14  ;;  %4630 = vmatprep.mubr.msk.f32.mxu0 %vm5031_vm1, %v5032_v1 }
0x223e   :  { %v3641_v16 = vpop.f32.mrb[28].mxu0 }
0x223f   :  { %v5690_v52 = vadd.f32 %v3641_v16, %v3572_v22  ;;  %v4611_v55 = vpop.f32.mrb[29].mxu0 }
0x2241   :  { %v3648_v56 = vand.u32 2139095040, %v5690_v52  ;;  %v3645_v63 = vand.u32 2147483647, %v5690_v52  ;;  %vm3647_vm5 = vcmp.lt.s32.totalorder %v5690_v52, 0 }
0x2243   :  { %v3649_v57 = vshrl.u32 %v3648_v56, 23  ;;  %v3652_v14 = vand.u32 8388607, %v3645_v63  ;;  %vm3646_vm6 = vcmp.le.f32.partialorder %v3645_v63, 0.7853982 }
0x2245   :  { %v4183_v59 = vadd.s32 4294967169, %v3649_v57  ;;  %v3653_v5 = vor.u32 8388608, %v3652_v14 }
0x2247   :  { %v3655_v17 = vadd.s32 1, %v4183_v59 }
0x2249   :  { %vm3656_vm10 = vcmp.gt.s32.totalorder %v3655_v17, 0 }
0x224a   :  { %v3657_v2 = vsel %vm3656_vm10, %v3655_v17, 0  ;;  %vm3737_vm10 = vweird.f32 %v5690_v52 }
0x224b   :  { %v3659_v3 = vand.u32 31, %v3657_v2  ;;  %v3658_v9 = vshrl.u32 %v3657_v2, 5 }
0x224d   :  { %v3660_v8 = vsub.s32 32, %v3659_v3  ;;  %v3662_v10 = vshll.u32 %v5033_v29, %v3659_v3  ;;  %v3665_v28 = vshll.u32 %v5034_v31, %v3659_v3  ;;  %v3668_v20 = vshll.u32 %v5035_v34, %v3659_v3 }
0x224e   :  { %v3671_v15 = vshll.u32 %v5036_v37, %v3659_v3  ;;  %v3674_v18 = vshll.u32 %v5037_v40, %v3659_v3  ;;  %vm3677_vm11 = vcmp.lt.s32.totalorder %v3658_v9, 1  ;;  %vm3680_vm12 = vcmp.lt.s32.totalorder %v3658_v9, 4 }
0x224f   :  { %v3663_v13 = vshrl.u32 %v5034_v31, %v3660_v8  ;;  %v3666_v33 = vshrl.u32 %v5035_v34, %v3660_v8  ;;  %v3669_v24 = vshrl.u32 %v5036_v37, %v3660_v8  ;;  %v3672_v38 = vshrl.u32 %v5037_v40, %v3660_v8 }
0x2250   :  { %v3675_v25 = vshrl.u32 %v5038_v43, %v3660_v8  ;;  %v3661_v27 = vshrl.u32 %v5033_v29, %v3660_v8  ;;  %vm3679_vm13 = vcmp.lt.s32.totalorder %v3658_v9, 3  ;;  %vm3678_vm15 = vcmp.lt.s32.totalorder %v3658_v9, 2 }
0x2251   :  { %v3664_v42 = vor.u32 %v3663_v13, %v3662_v10  ;;  %v3667_v19 = vor.u32 %v3666_v33, %v3665_v28  ;;  %v3670_v46 = vor.u32 %v3669_v24, %v3668_v20  ;;  %v3673_v53 = vor.u32 %v3672_v38, %v3671_v15 }
0x2252   :  { %v3676_v31 = vor.u32 %v3675_v25, %v3674_v18  ;;  %v3693_v43 = vshll.u32 %v3653_v5, 8 }
0x2253   :  { %v3682_v21 = vsel %vm3680_vm12, %v3670_v46, 2102212464  ;;  %v3685_v34 = vsel %vm3677_vm11, %v3664_v42, %v3667_v19  ;;  %v3689_v26 = vsel %vm3677_vm11, %v3667_v19, %v3670_v46  ;;  %v3686_v37 = vsel %vm3680_vm12, %v3673_v53, 920167782 }
0x2254   :  { %v3690_v30 = vsel %vm3680_vm12, %v3676_v31, 1326507024  ;;  %v3687_v40 = vsel %vm3679_vm13, %v3670_v46, %v3686_v37  ;;  %v3681_v7 = vsel %vm3677_vm11, %v3661_v27, %v3664_v42  ;;  %v3683_v36 = vsel %vm3679_vm13, %v3667_v19, %v3682_v21 }
0x2255   :  { %v3691_v35 = vsel %vm3679_vm13, %v3673_v53, %v3690_v30  ;;  %v3688_v39 = vsel %vm3678_vm15, %v3685_v34, %v3687_v40  ;;  %v3684_v12 = vsel %vm3678_vm15, %v3681_v7, %v3683_v36 }
0x2256   :  { %v3692_v41 = vsel %vm3678_vm15, %v3689_v26, %v3691_v35  ;;  %v5710_v50 = vmul.u32.u64.low %v3693_v43, %v3688_v39  ;;  %v5711_v45 = vmul.u32.u64.high %v3693_v43, %v3688_v39, %v5710_v50  ;;  %v3700_v60 = vmul.u32 %v3693_v43, %v3684_v12 }
0x2257   :  { %v5707_v23 = vmul.u32.u64.low %v3693_v43, %v3692_v41  ;;  %v5708_v44 = vmul.u32.u64.high %v3693_v43, %v3692_v41, %v5707_v23 }
0x2258   :  { %v3703_v29 = vadd.s32 1, %v5711_v45 }
0x2259   :  { %vm3702_vm2 = vc.u32 %v5708_v44, %v5710_v50  ;;  %v3701_v59 = vadd.s32 %v5710_v50, %v5708_v44 }
0x225a   :  { %v3704_v47 = vsel %vm3702_vm2, %v3703_v29, %v5711_v45 }
0x225b   :  { %v3705_v61 = vadd.s32 %v3704_v47, %v3700_v60 }
0x225d   :  { %v3706_v54 = vadd.s32 536870912, %v3705_v61 }
0x225f   :  { %v3707_v49 = vshrl.u32 %v3706_v54, 30 }
0x2261   :  { %v3708_v51 = vshll.u32 %v3707_v49, 30  ;;  %v3731_v38 = vsub.s32 4, %v3707_v49 }
0x2263   :  { %v3709_v11 = vsub.s32 %v3705_v61, %v3708_v51  ;;  %v3732_v25 = vsel %vm3647_vm5, %v3731_v38, %v3707_v49 }
0x2264   :  { %v3734_v5 = vsel %vm3646_vm6, 0, %v3732_v25 }
0x2265   :  { %v3711_v22 = vsub.s32 0, %v3709_v11  ;;  %v3738_v42 = vand.u32 3, %v3734_v5 }
0x2267   :  { %v4184_v16 = vmin.u32 %v3711_v22, %v3709_v11  ;;  %vm3743_vm7 = vcmp.eq.s32.totalorder %v3738_v42, 2  ;;  %vm3740_vm8 = vcmp.eq.s32.totalorder %v3738_v42, 0  ;;  %vm3739_vm9 = vcmp.lt.s32.totalorder %v3738_v42, 2 }
0x2269   :  { %v3713_v55 = vclz %v4184_v16 }
0x226b   :  { %v4185_v56 = vadd.s32 4294967294, %v3713_v55 }
0x226d   :  { %vm4186_vm4 = vcmp.lt.s32.totalorder %v4185_v56, 0 }
0x226e   :  { %v3716_v57 = vsel %vm4186_vm4, 0, %v4185_v56 }
0x226f   :  { %v3717_v17 = vsub.s32 32, %v3716_v57  ;;  %v3721_v2 = vsub.s32 4294967266, %v3716_v57  ;;  %v3718_v3 = vshll.u32 %v3709_v11, %v3716_v57 }
0x2271   :  { %v3719_v14 = vshrl.u32 %v3701_v59, %v3717_v17  ;;  %v3722_v8 = vadd.s32 127, %v3721_v2 }
0x2273   :  { %v3720_v9 = vor.u32 %v3719_v14, %v3718_v3  ;;  %v3723_v10 = vshll.u32 %v3722_v8, 23 }
0x2275   :  { %v3724_v28 = vor.u32 4788187, %v3723_v10  ;;  %v3727_v33 = vcvt.s32.f32 %v3720_v9 }
0x2277   :  { %v3725_v13 = vand.u32 2147483647, %v3724_v28 }
0x2279   :  { %v3728_v20 = vmul.f32 %v3727_v33, %v3725_v13 }
0x227b   :  { %v3729_v24 = vxor.u32 2147483648, %v3728_v20 }
0x227d   :  { %v3730_v15 = vsel %vm3647_vm5, %v3729_v24, %v3728_v20 }
0x227e   :  { %v3733_v18 = vsel %vm3646_vm6, %v5690_v52, %v3730_v15 }
0x227f   :  { %4917 = vcosq.f32 %v3733_v18 }
0x2280   :  { %4919 = vsinq.f32 %v3733_v18 }
0x2289   :  { %v4918_v19 = vpop.eup %4917 }
0x228a   :  { %v4920_v46 = vpop.eup %4919  ;;  %v3744_v53 = vxor.u32 2147483648, %v4918_v19 }
0x228b   :  { %v3741_v31 = vxor.u32 2147483648, %v4920_v46 }
0x228c   :  { %v3745_v21 = vsel %vm3743_vm7, %v3744_v53, %v4920_v46 }
0x228d   :  { %v3742_v34 = vsel %vm3740_vm8, %v4918_v19, %v3741_v31 }
0x228e   :  { %v3746_v63 = vsel %vm3739_vm9, %v3742_v34, %v3745_v21 }
0x228f   :  { %v3747_v26 = vsel %vm3737_vm10, nan, %v3746_v63 }
0x2290   :  { %4617 = vmatmul.mubr.msk.f32.vlgmr.msra.gmra.mrb[42].mxu1 %vm261_vm14, %v3747_v26  ;;  %4631 = vmatmul.mubr.msk.f32.vlgmr.msra.gmra.mrb[30].mxu0 %vm261_vm14, %v3747_v26 }
0x2291   :  { %4777 = vmatpush3.bf16.msra.mxu1 %v5198_v58  ;;  %4623 = vmatprep.mubr.msk.f32.mxu1 %vm5031_vm1, %v5032_v1  ;;  %v3961_v58 = vsel %vm5223_vm3, %v3747_v26, 1.0 }
0x2292   :  { %4781 = vmatprep.subr.bf16.mxu1 %v5030_v0 }
0x2294   :  { %4624 = vmatmul.mubr.msk.f32.vlgmr.msra.gmra.mrb[44].mxu1 %vm261_vm14, %v3747_v26 }
0x2295   :  { %4783 = vmatpush3.bf16.msra.mxu1 %v5216_v62  ;;  %4637 = vmatprep.mubr.msk.f32.mxu1 %vm5031_vm1, %v5032_v1 }
0x2363   :  { %v3817_v52 = vpop.f32.mrb[42].mxu1  ;;  %v3957_v27 = vpop.f32.mrb[30].mxu0 }
0x2364   :  { %v3958_v37 = vadd.f32 %v5221_v4, %v3957_v27  ;;  %v4618_v30 = vpop.f32.mrb[43].mxu1  ;;  %v4632_v40 = vpop.f32.mrb[31].mxu0 }
0x2366   :  { %v3963_v35 = vmul.f32 %v3961_v58, %v3958_v37 }
0x2367   :  { %v3887_v43 = vpop.f32.mrb[44].mxu1 }
0x2368   :  { %v3962_v7 = vmul.f32 %v3887_v43, %v3817_v52  ;;  %v4625_v0 = vpop.f32.mrb[45].mxu1 }
0x236a   :  { %v3964_v36 = vmul.f32 %v3963_v35, %v3962_v7 }
0x236c   :  { %4638 = vmatmul.mubr.msk.f32.vlgmr.msra.gmra.mrb[46].mxu1 %vm261_vm14, %v3964_v36 }
0x243f   :  { %v4034_v62 = vpop.f32.mrb[46].mxu1 }
0x2440   :  { %v4035_v39 = vadd.f32 %v5530_v32, %v4034_v62  ;;  %v4639_v1 = vpop.f32.mrb[47].mxu1 }
0x2442   :  { %4921 = vtanh.f32 %v4035_v39  ;;  %v4191_v4 = vmul.f32 -1.442695, %v4035_v39 }
0x2444   :  { %4923 = vpow2.f32 %v4191_v4 }
0x244c   :  { %v4922_v41 = vpop.eup %4921 }
0x244d   :  { %4047 = vrot.lane.b32.xlu0 %v4922_v41, %s5039_s19 }
0x244e   :  { %v4924_v23 = vpop.eup %4923 }
0x244f   :  { %v4041_v6 = vadd.f32 1.0, %v4924_v23 }
0x2451   :  { %4925 = vrcp.f32 %v4041_v6 }
0x245b   :  { %v4926_v44 = vpop.eup %4925 }
0x245c   :  { %v4045_v12 = vmul.f32 %v4926_v44, %v5680_v48 }
0x24bf   :  { %v4048_v50 = vpop.permute.xlu0 %4047 }
0x24c0   :  { %v4050_v45 = vmul.f32 %v4926_v44, %v4048_v50 }
0x24c2   :  { %4052 = vrot.lane.b32.xlu1 %v4050_v45, %s5040_s20 }
0x2534   :  { %v4053_v29 = vpop.permute.xlu1 %4052 }
0x2535   :  { %v4055_v60 = vadd.f32 %v4053_v29, %v4045_v12 }
0x2537   :  { %4927 = vtanh.f32 %v4055_v60  ;;  %4069 = vst.msk [vmem:[#allocation3] sm:$0xff] %vm56_vm0, %v4055_v60  ;;  %4073 = vst.msk [vmem:[#allocation10] sm:$0xff] %vm56_vm0, %v4055_v60 }
0x2541   :  { %v4928_v32 = vpop.eup %4927 }
0x2542   :  { %4058 = vrot.lane.b32.xlu0 %v4928_v32, %s5039_s19 }
0x2543   :  { %4985 = shalt.err (!%p4982_p6)
}
0x2544   :  { %s4986_s25 = scalar_lea.hbm %s5779_s6, 128 }
0x2545   :  { %p4987_p7 = scmp.ne.s32.totalorder %s5779_s6, %s4986_s25  ;;  %p4990_p8 = scmp.lt.u32.totalorder %s4986_s25, %s5779_s6 }
0x2547   :  { %p4992_p9 = pnand %p4990_p8, %p4987_p7 }
0x2549   :  { %4995 = shalt.err (!%p4992_p9)
}
0x254a   :  { %4095 = dma.vmem_to_hbm [thread:$0]  %s4093_s3, 128, %s5779_s6, [#allocation11]  }
0x254b   :  { %s5042_s9 = smov [#allocation9]  }
0x254c   :  { %s4079_s10 = sshll.u32 %s5042_s9, 4  ;;  %s4080_s10 = int_to_ptr.vmem [resolvable:$true] %s4079_s10 }
0x254d   :  { %s4996_s11 = scalar_lea.vmem %s4080_s10, 1024  ;;  %p5001_p11 = scmp.lt.s32.totalorder %s4080_s10, %s4080_s10 }
0x254e   :  { %p4997_p10 = scmp.ne.s32.totalorder %s4080_s10, %s4996_s11  ;;  %p5002_p12 = scmp.lt.s32.totalorder %s4996_s11, %s4996_s11 }
0x2550   :  { %p5003_p13 = por %p5002_p12, %p5001_p11 }
0x2552   :  { %p5004_p0 = pnand %p5003_p13, %p4997_p10 }
0x25b4   :  { %v4059_v48 = vpop.permute.xlu0 %4058 }
0x25b5   :  { %v4061_v47 = vmul.f32 %v4926_v44, %v4059_v48 }
0x25b7   :  { %4063 = vrot.lane.b32.xlu1 %v4061_v47, %s5039_s19 }
0x2629   :  { %v4064_v61 = vpop.permute.xlu1 %4063 }
0x262a   :  { %4067 = vst.msk [vmem:[#allocation9 + $0x38] sm:$0xff] %vm56_vm0, %v4064_v61  ;;  %4068 = vst.msk [vmem:[#allocation2] sm:$0xff] %vm56_vm0, %v4064_v61 }
0x262b   :  { %5007 = shalt.err (!%p5004_p0)
}
0x262c   :  { %s5008_s13 = scalar_lea.hbm %s5778_s5, 1024 }
0x262d   :  { %p5009_p1 = scmp.ne.s32.totalorder %s5778_s5, %s5008_s13  ;;  %p5012_p2 = scmp.lt.u32.totalorder %s5008_s13, %s5778_s5 }
0x262f   :  { %p5014_p3 = pnand %p5012_p2, %p5009_p1 }
0x2631   :  { %5017 = shalt.err (!%p5014_p3)
}
0x2632   :  { %4085 = dma.vmem_to_hbm [thread:$0]  %s4080_s10, 1024, %s5778_s5, [#allocation6], %s5027_s7, %s5027_s7, %s5028_s8  }
0x2633   :  { %5022 = dma.done.wait [#allocation6], 1024  }
0x2634   :  { %5023 = vsyncadd [#allocation6], 4294966272 }
0x2635   :  { %5024 = dma.done.wait [#allocation11], 128  }
0x2636   :  { %5025 = vsyncadd [#allocation11], 4294967168 }
0x2637   :  { %4102 = vsyncpa [#allocation5], 1 }
0x2638   :  { %4103 = vsyncpa [#allocation8], 1 }
0x2639   :  { %4104 = vsyncpa [#allocation6], 1 }
0x263a   :  { %4105 = vsyncpa [#allocation11], 1 }

</bundles_post_ra>
